<compile_context>
chip_gen: v5e
topology: v5e:2x2
jax: 0.10.0
libtpu: 0.0.40
codegen_flags: <defaults>
</compile_context>

<pallas_src>
import jax
import jax.numpy as jnp
import numpy as np
from jax.experimental import pallas as pl
from jax.experimental.pallas import tpu as pltpu

_GROUP = 128                 # pixels per resident-image row
_GROUP_LANES = 3 * _GROUP    # 384 lanes / resident row (multiple of 128)
_K_OUT = 32                  # pixels per packed output row
_OUT_LANES = 3 * _K_OUT      # 96 lanes / output row
_TILE_N = 256                # pixels gathered per grid step (=> (8, 96) out block)


def _get_colors_kernel(rows_ref, offs_ref, img_ref, out_ref):
    """One grid step gathers _TILE_N pixels.

    rows_ref : SMEM (N_pad,) int32  -- resident-image row of each pixel (idx // 128)
    offs_ref : SMEM (N_pad,) int32  -- lane offset of each pixel (3 * (idx % 128))
    img_ref  : VMEM (G, 384)        -- lane-dense packed image (constant block)
    out_ref  : VMEM (8, 96)         -- packed output tile (32 pixels per row)
    """
    base = pl.multiple_of(pl.program_id(0) * _TILE_N, _TILE_N)
    lane_ids = jax.lax.broadcasted_iota(jnp.int32, (1, _GROUP_LANES), 1)  # hoisted

    def body(g, carry):
        pix0 = base + g * _K_OUT
        for j in range(_K_OUT):                       # static -> static lane offsets
            r = rows_ref[pix0 + j]
            off = offs_ref[pix0 + j]
            pix_row = img_ref[pl.ds(r, 1), :]         # (1, 384) dynamic sublane slice
            for ch in range(3):
                sel = lane_ids == off + ch
                val = jnp.sum(jnp.where(sel, pix_row, 0.0), axis=1, keepdims=True)
                out_ref[pl.ds(g, 1), 3 * j + ch:3 * j + ch + 1] = (
                    val.astype(out_ref.dtype))
        return carry

    jax.lax.fori_loop(0, _TILE_N // _K_OUT, body, 0)


def get_colors(coords, image, width):
    """Pallas equivalent of Get_Colors(width)(coords, image).

    coords: (N, 2) (row, col); image: (H, width, 3); returns (N, 3).
    """
    n = coords.shape[0]
    h, w, c = image.shape
    assert c == 3 and w == width, "image must be (H, width, 3)"
    hw = h * w
    dtype = image.dtype

    # --- indices: same op order as the torch module (mul/add, then truncate) ----
    indic = (coords[:, 0] * width + coords[:, 1]).astype(jnp.int32)
    indic = jnp.clip(indic, 0, hw - 1)         # torch.take raises; we clip (DMA-safe)
    rows = (indic // _GROUP).astype(jnp.int32)
    offs = (3 * (indic % _GROUP)).astype(jnp.int32)

    # --- lane-dense packed image: (ceil(HW/128), 384), pure reshape + pad -------
    g_rows = pl.cdiv(hw, _GROUP)
    hw_pad = g_rows * _GROUP
    img_flat = image.reshape(hw, 3)
    if hw_pad != hw:
        img_flat = jnp.pad(img_flat, ((0, hw_pad - hw), (0, 0)))
    img_packed = img_flat.reshape(g_rows, _GROUP_LANES)

    resident_bytes = 2 * img_packed.size * img_packed.dtype.itemsize  # dbl-buffered
    if resident_bytes > (48 << 20):
        # TODO(synk): chunked-resident / per-index HBM DMA gather for huge images.
        raise NotImplementedError("image too large for the VMEM-resident gather path")

    # --- pad N to a whole number of tiles ----------------------------------------
    n_tiles = pl.cdiv(n, _TILE_N)
    n_pad = n_tiles * _TILE_N
    if n_pad != n:
        rows = jnp.pad(rows, (0, n_pad - n))   # padded pixels gather pixel 0
        offs = jnp.pad(offs, (0, n_pad - n))

    grid_spec = pltpu.PrefetchScalarGridSpec(
        num_scalar_prefetch=2,                 # rows, offs -> SMEM
        grid=(n_tiles,),
        in_specs=[
            # Whole packed image as one constant block: fetched once in the
            # pipeline prologue, stays resident in VMEM across all tiles.
            pl.BlockSpec((g_rows, _GROUP_LANES), lambda i, rows_s, offs_s: (0, 0)),
        ],
        out_specs=pl.BlockSpec((_TILE_N // _K_OUT, _OUT_LANES),
                               lambda i, rows_s, offs_s: (i, 0)),
    )

    out_packed = pl.pallas_call(
        _get_colors_kernel,
        out_shape=jax.ShapeDtypeStruct((n_pad // _K_OUT, _OUT_LANES), dtype),
        grid_spec=grid_spec,
        compiler_params=pltpu.CompilerParams(
            dimension_semantics=("parallel",),   # no cross-step state -> megacore OK
            vmem_limit_bytes=int(max(32 << 20, resident_bytes + (8 << 20))),
        ),
    )(rows, offs, img_packed)

    return out_packed.reshape(n_pad, 3)[:n]


if __name__ == "__main__":
    key = jax.random.PRNGKey(0)
    H, W, N = 16, 16, 20

    k_img, k_row, k_col = jax.random.split(key, 3)
    image = jax.random.uniform(k_img, (H, W, 3), dtype=jnp.float32)
    rr = jax.random.randint(k_row, (N,), 0, H)
    cc = jax.random.randint(k_col, (N,), 0, W)
    coords = jnp.stack([rr, cc], axis=-1).astype(jnp.float32)   # (N, 2)

    out = get_colors(coords, image, W)
    out = jax.block_until_ready(out)

    # Pure-JAX reference with the torch.take semantics.
    indic = (coords[:, 0] * W + coords[:, 1]).astype(jnp.int32)
    ref = jnp.stack(
        [jnp.take(image[..., ch].reshape(-1), indic) for ch in range(3)], axis=-1
    )
    np.testing.assert_allclose(np.asarray(out), np.asarray(ref), rtol=1e-6, atol=1e-6)
    print("KERNEL_OK")
</pallas_src>

<mosaic_0001>
module attributes {stable_mosaic.version = 11 : i64} {
  func.func @_get_colors_kernel(%arg0: i32, %arg1: memref<256xi32, #tpu.memory_space<smem>>, %arg2: memref<256xi32, #tpu.memory_space<smem>>, %arg3: memref<2x384xf32, #tpu.memory_space<vmem>>, %arg4: memref<8x96xf32, #tpu.memory_space<vmem>>) attributes {dimension_semantics = [#tpu.dimension_semantics<parallel>], iteration_bounds = array<i64: 1>, scalar_prefetch = 2 : i64, scratch_operands = 0 : i64, tpu.core_type = #tpu.core_type<tc>, window_params = [{pipeline_mode = #tpu.pipeline_mode<synchronous>, transform_indices = @transform_0, window_bounds = array<i64: 2, 384>}, {transform_indices = @transform_1, window_bounds = array<i64: 8, 96>}]} {
    %c256_i32 = arith.constant 256 : i32
    %0 = arith.muli %arg0, %c256_i32 : i32
    %1 = tpu.assume_multiple %0, 256 : i32
    %2 = tpu.iota {dimensions = array<i32: 1>} : vector<1x384xi32>
    %c0_i32 = arith.constant 0 : i32
    %c8_i32 = arith.constant 8 : i32
    %3 = arith.addi %c0_i32, %c8_i32 : i32
    %c1_i32 = arith.constant 1 : i32
    scf.for %arg5 = %c0_i32 to %3 step %c1_i32  : i32 {
      %c32_i32 = arith.constant 32 : i32
      %4 = arith.muli %arg5, %c32_i32 : i32
      %5 = arith.addi %1, %4 : i32
      %c0_i32_1 = arith.constant 0 : i32
      %6 = arith.addi %5, %c0_i32_1 : i32
      %7 = arith.index_cast %6 : i32 to index
      %8 = memref.load %arg1[%7] : memref<256xi32, #tpu.memory_space<smem>>
      %c0_i32_2 = arith.constant 0 : i32
      %9 = arith.addi %5, %c0_i32_2 : i32
      %10 = arith.index_cast %9 : i32 to index
      %11 = memref.load %arg2[%10] : memref<256xi32, #tpu.memory_space<smem>>
      %12 = arith.index_cast %8 : i32 to index
      %c0 = arith.constant 0 : index
      %13 = vector.load %arg3[%12, %c0] : memref<2x384xf32, #tpu.memory_space<vmem>>, vector<1x384xf32>
      %c0_i32_3 = arith.constant 0 : i32
      %14 = arith.addi %11, %c0_i32_3 : i32
      %15 = vector.broadcast %14 : i32 to vector<1x384xi32>
      %16 = arith.cmpi eq, %2, %15 : vector<1x384xi32>
      %cst = arith.constant 0.000000e+00 : f32
      %17 = vector.broadcast %cst : f32 to vector<1x384xf32>
      %18 = arith.select %16, %13, %17 : vector<1x384xi1>, vector<1x384xf32>
      %cst_4 = arith.constant dense<0.000000e+00> : vector<1xf32>
      %19 = vector.multi_reduction <add>, %18, %cst_4 [1] : vector<1x384xf32> to vector<1xf32>
      %20 = vector.shape_cast %19 : vector<1xf32> to vector<1x1xf32>
      %21 = arith.index_cast %arg5 : i32 to index
      %c0_5 = arith.constant 0 : index
      %22 = vector.load %arg4[%21, %c0_5] : memref<8x96xf32, #tpu.memory_space<vmem>>, vector<1x1xf32>
      tpu.vector_store %arg4[%21, %c0_5], %20 {strides = array<i32>} : memref<8x96xf32, #tpu.memory_space<vmem>>, vector<1x1xf32>,
      %c1_i32_6 = arith.constant 1 : i32
      %23 = arith.addi %11, %c1_i32_6 : i32
      %24 = vector.broadcast %23 : i32 to vector<1x384xi32>
      %25 = arith.cmpi eq, %2, %24 : vector<1x384xi32>
      %cst_7 = arith.constant 0.000000e+00 : f32
      %26 = vector.broadcast %cst_7 : f32 to vector<1x384xf32>
      %27 = arith.select %25, %13, %26 : vector<1x384xi1>, vector<1x384xf32>
      %cst_8 = arith.constant dense<0.000000e+00> : vector<1xf32>
      %28 = vector.multi_reduction <add>, %27, %cst_8 [1] : vector<1x384xf32> to vector<1xf32>
      %29 = vector.shape_cast %28 : vector<1xf32> to vector<1x1xf32>
      %30 = arith.index_cast %arg5 : i32 to index
      %c1 = arith.constant 1 : index
      %31 = vector.load %arg4[%30, %c1] : memref<8x96xf32, #tpu.memory_space<vmem>>, vector<1x1xf32>
      tpu.vector_store %arg4[%30, %c1], %29 {strides = array<i32>} : memref<8x96xf32, #tpu.memory_space<vmem>>, vector<1x1xf32>,
      %c2_i32 = arith.constant 2 : i32
      %32 = arith.addi %11, %c2_i32 : i32
      %33 = vector.broadcast %32 : i32 to vector<1x384xi32>
      %34 = arith.cmpi eq, %2, %33 : vector<1x384xi32>
      %cst_9 = arith.constant 0.000000e+00 : f32
      %35 = vector.broadcast %cst_9 : f32 to vector<1x384xf32>
      %36 = arith.select %34, %13, %35 : vector<1x384xi1>, vector<1x384xf32>
      %cst_10 = arith.constant dense<0.000000e+00> : vector<1xf32>
      %37 = vector.multi_reduction <add>, %36, %cst_10 [1] : vector<1x384xf32> to vector<1xf32>
      %38 = vector.shape_cast %37 : vector<1xf32> to vector<1x1xf32>
      %39 = arith.index_cast %arg5 : i32 to index
      %c2 = arith.constant 2 : index
      %40 = vector.load %arg4[%39, %c2] : memref<8x96xf32, #tpu.memory_space<vmem>>, vector<1x1xf32>
      tpu.vector_store %arg4[%39, %c2], %38 {strides = array<i32>} : memref<8x96xf32, #tpu.memory_space<vmem>>, vector<1x1xf32>,
      %c1_i32_11 = arith.constant 1 : i32
      %41 = arith.addi %5, %c1_i32_11 : i32
      %42 = arith.index_cast %41 : i32 to index
      %43 = memref.load %arg1[%42] : memref<256xi32, #tpu.memory_space<smem>>
      %c1_i32_12 = arith.constant 1 : i32
      %44 = arith.addi %5, %c1_i32_12 : i32
      %45 = arith.index_cast %44 : i32 to index
      %46 = memref.load %arg2[%45] : memref<256xi32, #tpu.memory_space<smem>>
      %47 = arith.index_cast %43 : i32 to index
      %c0_13 = arith.constant 0 : index
      %48 = vector.load %arg3[%47, %c0_13] : memref<2x384xf32, #tpu.memory_space<vmem>>, vector<1x384xf32>
      %c0_i32_14 = arith.constant 0 : i32
      %49 = arith.addi %46, %c0_i32_14 : i32
      %50 = vector.broadcast %49 : i32 to vector<1x384xi32>
      %51 = arith.cmpi eq, %2, %50 : vector<1x384xi32>
      %cst_15 = arith.constant 0.000000e+00 : f32
      %52 = vector.broadcast %cst_15 : f32 to vector<1x384xf32>
      %53 = arith.select %51, %48, %52 : vector<1x384xi1>, vector<1x384xf32>
      %cst_16 = arith.constant dense<0.000000e+00> : vector<1xf32>
      %54 = vector.multi_reduction <add>, %53, %cst_16 [1] : vector<1x384xf32> to vector<1xf32>
      %55 = vector.shape_cast %54 : vector<1xf32> to vector<1x1xf32>
      %56 = arith.index_cast %arg5 : i32 to index
      %c3 = arith.constant 3 : index
      %57 = vector.load %arg4[%56, %c3] : memref<8x96xf32, #tpu.memory_space<vmem>>, vector<1x1xf32>
      tpu.vector_store %arg4[%56, %c3], %55 {strides = array<i32>} : memref<8x96xf32, #tpu.memory_space<vmem>>, vector<1x1xf32>,
      %c1_i32_17 = arith.constant 1 : i32
      %58 = arith.addi %46, %c1_i32_17 : i32
      %59 = vector.broadcast %58 : i32 to vector<1x384xi32>
      %60 = arith.cmpi eq, %2, %59 : vector<1x384xi32>
      %cst_18 = arith.constant 0.000000e+00 : f32
      %61 = vector.broadcast %cst_18 : f32 to vector<1x384xf32>
      %62 = arith.select %60, %48, %61 : vector<1x384xi1>, vector<1x384xf32>
      %cst_19 = arith.constant dense<0.000000e+00> : vector<1xf32>
      %63 = vector.multi_reduction <add>, %62, %cst_19 [1] : vector<1x384xf32> to vector<1xf32>
      %64 = vector.shape_cast %63 : vector<1xf32> to vector<1x1xf32>
      %65 = arith.index_cast %arg5 : i32 to index
      %c4 = arith.constant 4 : index
      %66 = vector.load %arg4[%65, %c4] : memref<8x96xf32, #tpu.memory_space<vmem>>, vector<1x1xf32>
      tpu.vector_store %arg4[%65, %c4], %64 {strides = array<i32>} : memref<8x96xf32, #tpu.memory_space<vmem>>, vector<1x1xf32>,
      %c2_i32_20 = arith.constant 2 : i32
      %67 = arith.addi %46, %c2_i32_20 : i32
      %68 = vector.broadcast %67 : i32 to vector<1x384xi32>
      %69 = arith.cmpi eq, %2, %68 : vector<1x384xi32>
      %cst_21 = arith.constant 0.000000e+00 : f32
      %70 = vector.broadcast %cst_21 : f32 to vector<1x384xf32>
      %71 = arith.select %69, %48, %70 : vector<1x384xi1>, vector<1x384xf32>
      %cst_22 = arith.constant dense<0.000000e+00> : vector<1xf32>
      %72 = vector.multi_reduction <add>, %71, %cst_22 [1] : vector<1x384xf32> to vector<1xf32>
      %73 = vector.shape_cast %72 : vector<1xf32> to vector<1x1xf32>
      %74 = arith.index_cast %arg5 : i32 to index
      %c5 = arith.constant 5 : index
      %75 = vector.load %arg4[%74, %c5] : memref<8x96xf32, #tpu.memory_space<vmem>>, vector<1x1xf32>
      tpu.vector_store %arg4[%74, %c5], %73 {strides = array<i32>} : memref<8x96xf32, #tpu.memory_space<vmem>>, vector<1x1xf32>,
      %c2_i32_23 = arith.constant 2 : i32
      %76 = arith.addi %5, %c2_i32_23 : i32
      %77 = arith.index_cast %76 : i32 to index
      %78 = memref.load %arg1[%77] : memref<256xi32, #tpu.memory_space<smem>>
      %c2_i32_24 = arith.constant 2 : i32
      %79 = arith.addi %5, %c2_i32_24 : i32
      %80 = arith.index_cast %79 : i32 to index
      %81 = memref.load %arg2[%80] : memref<256xi32, #tpu.memory_space<smem>>
      %82 = arith.index_cast %78 : i32 to index
      %c0_25 = arith.constant 0 : index
      %83 = vector.load %arg3[%82, %c0_25] : memref<2x384xf32, #tpu.memory_space<vmem>>, vector<1x384xf32>
      %c0_i32_26 = arith.constant 0 : i32
      %84 = arith.addi %81, %c0_i32_26 : i32
      %85 = vector.broadcast %84 : i32 to vector<1x384xi32>
      %86 = arith.cmpi eq, %2, %85 : vector<1x384xi32>
      %cst_27 = arith.constant 0.000000e+00 : f32
      %87 = vector.broadcast %cst_27 : f32 to vector<1x384xf32>
      %88 = arith.select %86, %83, %87 : vector<1x384xi1>, vector<1x384xf32>
      %cst_28 = arith.constant dense<0.000000e+00> : vector<1xf32>
      %89 = vector.multi_reduction <add>, %88, %cst_28 [1] : vector<1x384xf32> to vector<1xf32>
      %90 = vector.shape_cast %89 : vector<1xf32> to vector<1x1xf32>
      %91 = arith.index_cast %arg5 : i32 to index
      %c6 = arith.constant 6 : index
      %92 = vector.load %arg4[%91, %c6] : memref<8x96xf32, #tpu.memory_space<vmem>>, vector<1x1xf32>
      tpu.vector_store %arg4[%91, %c6], %90 {strides = array<i32>} : memref<8x96xf32, #tpu.memory_space<vmem>>, vector<1x1xf32>,
      %c1_i32_29 = arith.constant 1 : i32
      %93 = arith.addi %81, %c1_i32_29 : i32
      %94 = vector.broadcast %93 : i32 to vector<1x384xi32>
      %95 = arith.cmpi eq, %2, %94 : vector<1x384xi32>
      %cst_30 = arith.constant 0.000000e+00 : f32
      %96 = vector.broadcast %cst_30 : f32 to vector<1x384xf32>
      %97 = arith.select %95, %83, %96 : vector<1x384xi1>, vector<1x384xf32>
      %cst_31 = arith.constant dense<0.000000e+00> : vector<1xf32>
      %98 = vector.multi_reduction <add>, %97, %cst_31 [1] : vector<1x384xf32> to vector<1xf32>
      %99 = vector.shape_cast %98 : vector<1xf32> to vector<1x1xf32>
      %100 = arith.index_cast %arg5 : i32 to index
      %c7 = arith.constant 7 : index
      %101 = vector.load %arg4[%100, %c7] : memref<8x96xf32, #tpu.memory_space<vmem>>, vector<1x1xf32>
      tpu.vector_store %arg4[%100, %c7], %99 {strides = array<i32>} : memref<8x96xf32, #tpu.memory_space<vmem>>, vector<1x1xf32>,
      %c2_i32_32 = arith.constant 2 : i32
      %102 = arith.addi %81, %c2_i32_32 : i32
      %103 = vector.broadcast %102 : i32 to vector<1x384xi32>
      %104 = arith.cmpi eq, %2, %103 : vector<1x384xi32>
      %cst_33 = arith.constant 0.000000e+00 : f32
      %105 = vector.broadcast %cst_33 : f32 to vector<1x384xf32>
      %106 = arith.select %104, %83, %105 : vector<1x384xi1>, vector<1x384xf32>
      %cst_34 = arith.constant dense<0.000000e+00> : vector<1xf32>
      %107 = vector.multi_reduction <add>, %106, %cst_34 [1] : vector<1x384xf32> to vector<1xf32>
      %108 = vector.shape_cast %107 : vector<1xf32> to vector<1x1xf32>
      %109 = arith.index_cast %arg5 : i32 to index
      %c8 = arith.constant 8 : index
      %110 = vector.load %arg4[%109, %c8] : memref<8x96xf32, #tpu.memory_space<vmem>>, vector<1x1xf32>
      tpu.vector_store %arg4[%109, %c8], %108 {strides = array<i32>} : memref<8x96xf32, #tpu.memory_space<vmem>>, vector<1x1xf32>,
      %c3_i32 = arith.constant 3 : i32
      %111 = arith.addi %5, %c3_i32 : i32
      %112 = arith.index_cast %111 : i32 to index
      %113 = memref.load %arg1[%112] : memref<256xi32, #tpu.memory_space<smem>>
      %c3_i32_35 = arith.constant 3 : i32
      %114 = arith.addi %5, %c3_i32_35 : i32
      %115 = arith.index_cast %114 : i32 to index
      %116 = memref.load %arg2[%115] : memref<256xi32, #tpu.memory_space<smem>>
      %117 = arith.index_cast %113 : i32 to index
      %c0_36 = arith.constant 0 : index
      %118 = vector.load %arg3[%117, %c0_36] : memref<2x384xf32, #tpu.memory_space<vmem>>, vector<1x384xf32>
      %c0_i32_37 = arith.constant 0 : i32
      %119 = arith.addi %116, %c0_i32_37 : i32
      %120 = vector.broadcast %119 : i32 to vector<1x384xi32>
      %121 = arith.cmpi eq, %2, %120 : vector<1x384xi32>
      %cst_38 = arith.constant 0.000000e+00 : f32
      %122 = vector.broadcast %cst_38 : f32 to vector<1x384xf32>
      %123 = arith.select %121, %118, %122 : vector<1x384xi1>, vector<1x384xf32>
      %cst_39 = arith.constant dense<0.000000e+00> : vector<1xf32>
      %124 = vector.multi_reduction <add>, %123, %cst_39 [1] : vector<1x384xf32> to vector<1xf32>
      %125 = vector.shape_cast %124 : vector<1xf32> to vector<1x1xf32>
      %126 = arith.index_cast %arg5 : i32 to index
      %c9 = arith.constant 9 : index
      %127 = vector.load %arg4[%126, %c9] : memref<8x96xf32, #tpu.memory_space<vmem>>, vector<1x1xf32>
      tpu.vector_store %arg4[%126, %c9], %125 {strides = array<i32>} : memref<8x96xf32, #tpu.memory_space<vmem>>, vector<1x1xf32>,
      %c1_i32_40 = arith.constant 1 : i32
      %128 = arith.addi %116, %c1_i32_40 : i32
      %129 = vector.broadcast %128 : i32 to vector<1x384xi32>
      %130 = arith.cmpi eq, %2, %129 : vector<1x384xi32>
      %cst_41 = arith.constant 0.000000e+00 : f32
      %131 = vector.broadcast %cst_41 : f32 to vector<1x384xf32>
      %132 = arith.select %130, %118, %131 : vector<1x384xi1>, vector<1x384xf32>
      %cst_42 = arith.constant dense<0.000000e+00> : vector<1xf32>
      %133 = vector.multi_reduction <add>, %132, %cst_42 [1] : vector<1x384xf32> to vector<1xf32>
      %134 = vector.shape_cast %133 : vector<1xf32> to vector<1x1xf32>
      %135 = arith.index_cast %arg5 : i32 to index
      %c10 = arith.constant 10 : index
      %136 = vector.load %arg4[%135, %c10] : memref<8x96xf32, #tpu.memory_space<vmem>>, vector<1x1xf32>
      tpu.vector_store %arg4[%135, %c10], %134 {strides = array<i32>} : memref<8x96xf32, #tpu.memory_space<vmem>>, vector<1x1xf32>,
      %c2_i32_43 = arith.constant 2 : i32
      %137 = arith.addi %116, %c2_i32_43 : i32
      %138 = vector.broadcast %137 : i32 to vector<1x384xi32>
      %139 = arith.cmpi eq, %2, %138 : vector<1x384xi32>
      %cst_44 = arith.constant 0.000000e+00 : f32
      %140 = vector.broadcast %cst_44 : f32 to vector<1x384xf32>
      %141 = arith.select %139, %118, %140 : vector<1x384xi1>, vector<1x384xf32>
      %cst_45 = arith.constant dense<0.000000e+00> : vector<1xf32>
      %142 = vector.multi_reduction <add>, %141, %cst_45 [1] : vector<1x384xf32> to vector<1xf32>
      %143 = vector.shape_cast %142 : vector<1xf32> to vector<1x1xf32>
      %144 = arith.index_cast %arg5 : i32 to index
      %c11 = arith.constant 11 : index
      %145 = vector.load %arg4[%144, %c11] : memref<8x96xf32, #tpu.memory_space<vmem>>, vector<1x1xf32>
      tpu.vector_store %arg4[%144, %c11], %143 {strides = array<i32>} : memref<8x96xf32, #tpu.memory_space<vmem>>, vector<1x1xf32>,
      %c4_i32 = arith.constant 4 : i32
      %146 = arith.addi %5, %c4_i32 : i32
      %147 = arith.index_cast %146 : i32 to index
      %148 = memref.load %arg1[%147] : memref<256xi32, #tpu.memory_space<smem>>
      %c4_i32_46 = arith.constant 4 : i32
      %149 = arith.addi %5, %c4_i32_46 : i32
      %150 = arith.index_cast %149 : i32 to index
      %151 = memref.load %arg2[%150] : memref<256xi32, #tpu.memory_space<smem>>
      %152 = arith.index_cast %148 : i32 to index
      %c0_47 = arith.constant 0 : index
      %153 = vector.load %arg3[%152, %c0_47] : memref<2x384xf32, #tpu.memory_space<vmem>>, vector<1x384xf32>
      %c0_i32_48 = arith.constant 0 : i32
      %154 = arith.addi %151, %c0_i32_48 : i32
      %155 = vector.broadcast %154 : i32 to vector<1x384xi32>
      %156 = arith.cmpi eq, %2, %155 : vector<1x384xi32>
      %cst_49 = arith.constant 0.000000e+00 : f32
      %157 = vector.broadcast %cst_49 : f32 to vector<1x384xf32>
      %158 = arith.select %156, %153, %157 : vector<1x384xi1>, vector<1x384xf32>
      %cst_50 = arith.constant dense<0.000000e+00> : vector<1xf32>
      %159 = vector.multi_reduction <add>, %158, %cst_50 [1] : vector<1x384xf32> to vector<1xf32>
      %160 = vector.shape_cast %159 : vector<1xf32> to vector<1x1xf32>
      %161 = arith.index_cast %arg5 : i32 to index
      %c12 = arith.constant 12 : index
      %162 = vector.load %arg4[%161, %c12] : memref<8x96xf32, #tpu.memory_space<vmem>>, vector<1x1xf32>
      tpu.vector_store %arg4[%161, %c12], %160 {strides = array<i32>} : memref<8x96xf32, #tpu.memory_space<vmem>>, vector<1x1xf32>,
      %c1_i32_51 = arith.constant 1 : i32
      %163 = arith.addi %151, %c1_i32_51 : i32
      %164 = vector.broadcast %163 : i32 to vector<1x384xi32>
      %165 = arith.cmpi eq, %2, %164 : vector<1x384xi32>
      %cst_52 = arith.constant 0.000000e+00 : f32
      %166 = vector.broadcast %cst_52 : f32 to vector<1x384xf32>
      %167 = arith.select %165, %153, %166 : vector<1x384xi1>, vector<1x384xf32>
      %cst_53 = arith.constant dense<0.000000e+00> : vector<1xf32>
      %168 = vector.multi_reduction <add>, %167, %cst_53 [1] : vector<1x384xf32> to vector<1xf32>
      %169 = vector.shape_cast %168 : vector<1xf32> to vector<1x1xf32>
      %170 = arith.index_cast %arg5 : i32 to index
      %c13 = arith.constant 13 : index
      %171 = vector.load %arg4[%170, %c13] : memref<8x96xf32, #tpu.memory_space<vmem>>, vector<1x1xf32>
      tpu.vector_store %arg4[%170, %c13], %169 {strides = array<i32>} : memref<8x96xf32, #tpu.memory_space<vmem>>, vector<1x1xf32>,
      %c2_i32_54 = arith.constant 2 : i32
      %172 = arith.addi %151, %c2_i32_54 : i32
      %173 = vector.broadcast %172 : i32 to vector<1x384xi32>
      %174 = arith.cmpi eq, %2, %173 : vector<1x384xi32>
      %cst_55 = arith.constant 0.000000e+00 : f32
      %175 = vector.broadcast %cst_55 : f32 to vector<1x384xf32>
      %176 = arith.select %174, %153, %175 : vector<1x384xi1>, vector<1x384xf32>
      %cst_56 = arith.constant dense<0.000000e+00> : vector<1xf32>
      %177 = vector.multi_reduction <add>, %176, %cst_56 [1] : vector<1x384xf32> to vector<1xf32>
      %178 = vector.shape_cast %177 : vector<1xf32> to vector<1x1xf32>
      %179 = arith.index_cast %arg5 : i32 to index
      %c14 = arith.constant 14 : index
      %180 = vector.load %arg4[%179, %c14] : memref<8x96xf32, #tpu.memory_space<vmem>>, vector<1x1xf32>
      tpu.vector_store %arg4[%179, %c14], %178 {strides = array<i32>} : memref<8x96xf32, #tpu.memory_space<vmem>>, vector<1x1xf32>,
      %c5_i32 = arith.constant 5 : i32
      %181 = arith.addi %5, %c5_i32 : i32
      %182 = arith.index_cast %181 : i32 to index
      %183 = memref.load %arg1[%182] : memref<256xi32, #tpu.memory_space<smem>>
      %c5_i32_57 = arith.constant 5 : i32
      %184 = arith.addi %5, %c5_i32_57 : i32
      %185 = arith.index_cast %184 : i32 to index
      %186 = memref.load %arg2[%185] : memref<256xi32, #tpu.memory_space<smem>>
      %187 = arith.index_cast %183 : i32 to index
      %c0_58 = arith.constant 0 : index
      %188 = vector.load %arg3[%187, %c0_58] : memref<2x384xf32, #tpu.memory_space<vmem>>, vector<1x384xf32>
      %c0_i32_59 = arith.constant 0 : i32
      %189 = arith.addi %186, %c0_i32_59 : i32
      %190 = vector.broadcast %189 : i32 to vector<1x384xi32>
      %191 = arith.cmpi eq, %2, %190 : vector<1x384xi32>
      %cst_60 = arith.constant 0.000000e+00 : f32
      %192 = vector.broadcast %cst_60 : f32 to vector<1x384xf32>
      %193 = arith.select %191, %188, %192 : vector<1x384xi1>, vector<1x384xf32>
      %cst_61 = arith.constant dense<0.000000e+00> : vector<1xf32>
      %194 = vector.multi_reduction <add>, %193, %cst_61 [1] : vector<1x384xf32> to vector<1xf32>
      %195 = vector.shape_cast %194 : vector<1xf32> to vector<1x1xf32>
      %196 = arith.index_cast %arg5 : i32 to index
      %c15 = arith.constant 15 : index
      %197 = vector.load %arg4[%196, %c15] : memref<8x96xf32, #tpu.memory_space<vmem>>, vector<1x1xf32>
      tpu.vector_store %arg4[%196, %c15], %195 {strides = array<i32>} : memref<8x96xf32, #tpu.memory_space<vmem>>, vector<1x1xf32>,
      %c1_i32_62 = arith.constant 1 : i32
      %198 = arith.addi %186, %c1_i32_62 : i32
      %199 = vector.broadcast %198 : i32 to vector<1x384xi32>
      %200 = arith.cmpi eq, %2, %199 : vector<1x384xi32>
      %cst_63 = arith.constant 0.000000e+00 : f32
      %201 = vector.broadcast %cst_63 : f32 to vector<1x384xf32>
      %202 = arith.select %200, %188, %201 : vector<1x384xi1>, vector<1x384xf32>
      %cst_64 = arith.constant dense<0.000000e+00> : vector<1xf32>
      %203 = vector.multi_reduction <add>, %202, %cst_64 [1] : vector<1x384xf32> to vector<1xf32>
      %204 = vector.shape_cast %203 : vector<1xf32> to vector<1x1xf32>
      %205 = arith.index_cast %arg5 : i32 to index
      %c16 = arith.constant 16 : index
      %206 = vector.load %arg4[%205, %c16] : memref<8x96xf32, #tpu.memory_space<vmem>>, vector<1x1xf32>
      tpu.vector_store %arg4[%205, %c16], %204 {strides = array<i32>} : memref<8x96xf32, #tpu.memory_space<vmem>>, vector<1x1xf32>,
      %c2_i32_65 = arith.constant 2 : i32
      %207 = arith.addi %186, %c2_i32_65 : i32
      %208 = vector.broadcast %207 : i32 to vector<1x384xi32>
      %209 = arith.cmpi eq, %2, %208 : vector<1x384xi32>
      %cst_66 = arith.constant 0.000000e+00 : f32
      %210 = vector.broadcast %cst_66 : f32 to vector<1x384xf32>
      %211 = arith.select %209, %188, %210 : vector<1x384xi1>, vector<1x384xf32>
      %cst_67 = arith.constant dense<0.000000e+00> : vector<1xf32>
      %212 = vector.multi_reduction <add>, %211, %cst_67 [1] : vector<1x384xf32> to vector<1xf32>
      %213 = vector.shape_cast %212 : vector<1xf32> to vector<1x1xf32>
      %214 = arith.index_cast %arg5 : i32 to index
      %c17 = arith.constant 17 : index
      %215 = vector.load %arg4[%214, %c17] : memref<8x96xf32, #tpu.memory_space<vmem>>, vector<1x1xf32>
      tpu.vector_store %arg4[%214, %c17], %213 {strides = array<i32>} : memref<8x96xf32, #tpu.memory_space<vmem>>, vector<1x1xf32>,
      %c6_i32 = arith.constant 6 : i32
      %216 = arith.addi %5, %c6_i32 : i32
      %217 = arith.index_cast %216 : i32 to index
      %218 = memref.load %arg1[%217] : memref<256xi32, #tpu.memory_space<smem>>
      %c6_i32_68 = arith.constant 6 : i32
      %219 = arith.addi %5, %c6_i32_68 : i32
      %220 = arith.index_cast %219 : i32 to index
      %221 = memref.load %arg2[%220] : memref<256xi32, #tpu.memory_space<smem>>
      %222 = arith.index_cast %218 : i32 to index
      %c0_69 = arith.constant 0 : index
      %223 = vector.load %arg3[%222, %c0_69] : memref<2x384xf32, #tpu.memory_space<vmem>>, vector<1x384xf32>
      %c0_i32_70 = arith.constant 0 : i32
      %224 = arith.addi %221, %c0_i32_70 : i32
      %225 = vector.broadcast %224 : i32 to vector<1x384xi32>
      %226 = arith.cmpi eq, %2, %225 : vector<1x384xi32>
      %cst_71 = arith.constant 0.000000e+00 : f32
      %227 = vector.broadcast %cst_71 : f32 to vector<1x384xf32>
      %228 = arith.select %226, %223, %227 : vector<1x384xi1>, vector<1x384xf32>
      %cst_72 = arith.constant dense<0.000000e+00> : vector<1xf32>
      %229 = vector.multi_reduction <add>, %228, %cst_72 [1] : vector<1x384xf32> to vector<1xf32>
      %230 = vector.shape_cast %229 : vector<1xf32> to vector<1x1xf32>
      %231 = arith.index_cast %arg5 : i32 to index
      %c18 = arith.constant 18 : index
      %232 = vector.load %arg4[%231, %c18] : memref<8x96xf32, #tpu.memory_space<vmem>>, vector<1x1xf32>
      tpu.vector_store %arg4[%231, %c18], %230 {strides = array<i32>} : memref<8x96xf32, #tpu.memory_space<vmem>>, vector<1x1xf32>,
      %c1_i32_73 = arith.constant 1 : i32
      %233 = arith.addi %221, %c1_i32_73 : i32
      %234 = vector.broadcast %233 : i32 to vector<1x384xi32>
      %235 = arith.cmpi eq, %2, %234 : vector<1x384xi32>
      %cst_74 = arith.constant 0.000000e+00 : f32
      %236 = vector.broadcast %cst_74 : f32 to vector<1x384xf32>
      %237 = arith.select %235, %223, %236 : vector<1x384xi1>, vector<1x384xf32>
      %cst_75 = arith.constant dense<0.000000e+00> : vector<1xf32>
      %238 = vector.multi_reduction <add>, %237, %cst_75 [1] : vector<1x384xf32> to vector<1xf32>
      %239 = vector.shape_cast %238 : vector<1xf32> to vector<1x1xf32>
      %240 = arith.index_cast %arg5 : i32 to index
      %c19 = arith.constant 19 : index
      %241 = vector.load %arg4[%240, %c19] : memref<8x96xf32, #tpu.memory_space<vmem>>, vector<1x1xf32>
      tpu.vector_store %arg4[%240, %c19], %239 {strides = array<i32>} : memref<8x96xf32, #tpu.memory_space<vmem>>, vector<1x1xf32>,
      %c2_i32_76 = arith.constant 2 : i32
      %242 = arith.addi %221, %c2_i32_76 : i32
      %243 = vector.broadcast %242 : i32 to vector<1x384xi32>
      %244 = arith.cmpi eq, %2, %243 : vector<1x384xi32>
      %cst_77 = arith.constant 0.000000e+00 : f32
      %245 = vector.broadcast %cst_77 : f32 to vector<1x384xf32>
      %246 = arith.select %244, %223, %245 : vector<1x384xi1>, vector<1x384xf32>
      %cst_78 = arith.constant dense<0.000000e+00> : vector<1xf32>
      %247 = vector.multi_reduction <add>, %246, %cst_78 [1] : vector<1x384xf32> to vector<1xf32>
      %248 = vector.shape_cast %247 : vector<1xf32> to vector<1x1xf32>
      %249 = arith.index_cast %arg5 : i32 to index
      %c20 = arith.constant 20 : index
      %250 = vector.load %arg4[%249, %c20] : memref<8x96xf32, #tpu.memory_space<vmem>>, vector<1x1xf32>
      tpu.vector_store %arg4[%249, %c20], %248 {strides = array<i32>} : memref<8x96xf32, #tpu.memory_space<vmem>>, vector<1x1xf32>,
      %c7_i32 = arith.constant 7 : i32
      %251 = arith.addi %5, %c7_i32 : i32
      %252 = arith.index_cast %251 : i32 to index
      %253 = memref.load %arg1[%252] : memref<256xi32, #tpu.memory_space<smem>>
      %c7_i32_79 = arith.constant 7 : i32
      %254 = arith.addi %5, %c7_i32_79 : i32
      %255 = arith.index_cast %254 : i32 to index
      %256 = memref.load %arg2[%255] : memref<256xi32, #tpu.memory_space<smem>>
      %257 = arith.index_cast %253 : i32 to index
      %c0_80 = arith.constant 0 : index
      %258 = vector.load %arg3[%257, %c0_80] : memref<2x384xf32, #tpu.memory_space<vmem>>, vector<1x384xf32>
      %c0_i32_81 = arith.constant 0 : i32
      %259 = arith.addi %256, %c0_i32_81 : i32
      %260 = vector.broadcast %259 : i32 to vector<1x384xi32>
      %261 = arith.cmpi eq, %2, %260 : vector<1x384xi32>
      %cst_82 = arith.constant 0.000000e+00 : f32
      %262 = vector.broadcast %cst_82 : f32 to vector<1x384xf32>
      %263 = arith.select %261, %258, %262 : vector<1x384xi1>, vector<1x384xf32>
      %cst_83 = arith.constant dense<0.000000e+00> : vector<1xf32>
      %264 = vector.multi_reduction <add>, %263, %cst_83 [1] : vector<1x384xf32> to vector<1xf32>
      %265 = vector.shape_cast %264 : vector<1xf32> to vector<1x1xf32>
      %266 = arith.index_cast %arg5 : i32 to index
      %c21 = arith.constant 21 : index
      %267 = vector.load %arg4[%266, %c21] : memref<8x96xf32, #tpu.memory_space<vmem>>, vector<1x1xf32>
      tpu.vector_store %arg4[%266, %c21], %265 {strides = array<i32>} : memref<8x96xf32, #tpu.memory_space<vmem>>, vector<1x1xf32>,
      %c1_i32_84 = arith.constant 1 : i32
      %268 = arith.addi %256, %c1_i32_84 : i32
      %269 = vector.broadcast %268 : i32 to vector<1x384xi32>
      %270 = arith.cmpi eq, %2, %269 : vector<1x384xi32>
      %cst_85 = arith.constant 0.000000e+00 : f32
      %271 = vector.broadcast %cst_85 : f32 to vector<1x384xf32>
      %272 = arith.select %270, %258, %271 : vector<1x384xi1>, vector<1x384xf32>
      %cst_86 = arith.constant dense<0.000000e+00> : vector<1xf32>
      %273 = vector.multi_reduction <add>, %272, %cst_86 [1] : vector<1x384xf32> to vector<1xf32>
      %274 = vector.shape_cast %273 : vector<1xf32> to vector<1x1xf32>
      %275 = arith.index_cast %arg5 : i32 to index
      %c22 = arith.constant 22 : index
      %276 = vector.load %arg4[%275, %c22] : memref<8x96xf32, #tpu.memory_space<vmem>>, vector<1x1xf32>
      tpu.vector_store %arg4[%275, %c22], %274 {strides = array<i32>} : memref<8x96xf32, #tpu.memory_space<vmem>>, vector<1x1xf32>,
      %c2_i32_87 = arith.constant 2 : i32
      %277 = arith.addi %256, %c2_i32_87 : i32
      %278 = vector.broadcast %277 : i32 to vector<1x384xi32>
      %279 = arith.cmpi eq, %2, %278 : vector<1x384xi32>
      %cst_88 = arith.constant 0.000000e+00 : f32
      %280 = vector.broadcast %cst_88 : f32 to vector<1x384xf32>
      %281 = arith.select %279, %258, %280 : vector<1x384xi1>, vector<1x384xf32>
      %cst_89 = arith.constant dense<0.000000e+00> : vector<1xf32>
      %282 = vector.multi_reduction <add>, %281, %cst_89 [1] : vector<1x384xf32> to vector<1xf32>
      %283 = vector.shape_cast %282 : vector<1xf32> to vector<1x1xf32>
      %284 = arith.index_cast %arg5 : i32 to index
      %c23 = arith.constant 23 : index
      %285 = vector.load %arg4[%284, %c23] : memref<8x96xf32, #tpu.memory_space<vmem>>, vector<1x1xf32>
      tpu.vector_store %arg4[%284, %c23], %283 {strides = array<i32>} : memref<8x96xf32, #tpu.memory_space<vmem>>, vector<1x1xf32>,
      %c8_i32_90 = arith.constant 8 : i32
      %286 = arith.addi %5, %c8_i32_90 : i32
      %287 = arith.index_cast %286 : i32 to index
      %288 = memref.load %arg1[%287] : memref<256xi32, #tpu.memory_space<smem>>
      %c8_i32_91 = arith.constant 8 : i32
      %289 = arith.addi %5, %c8_i32_91 : i32
      %290 = arith.index_cast %289 : i32 to index
      %291 = memref.load %arg2[%290] : memref<256xi32, #tpu.memory_space<smem>>
      %292 = arith.index_cast %288 : i32 to index
      %c0_92 = arith.constant 0 : index
      %293 = vector.load %arg3[%292, %c0_92] : memref<2x384xf32, #tpu.memory_space<vmem>>, vector<1x384xf32>
      %c0_i32_93 = arith.constant 0 : i32
      %294 = arith.addi %291, %c0_i32_93 : i32
      %295 = vector.broadcast %294 : i32 to vector<1x384xi32>
      %296 = arith.cmpi eq, %2, %295 : vector<1x384xi32>
      %cst_94 = arith.constant 0.000000e+00 : f32
      %297 = vector.broadcast %cst_94 : f32 to vector<1x384xf32>
      %298 = arith.select %296, %293, %297 : vector<1x384xi1>, vector<1x384xf32>
      %cst_95 = arith.constant dense<0.000000e+00> : vector<1xf32>
      %299 = vector.multi_reduction <add>, %298, %cst_95 [1] : vector<1x384xf32> to vector<1xf32>
      %300 = vector.shape_cast %299 : vector<1xf32> to vector<1x1xf32>
      %301 = arith.index_cast %arg5 : i32 to index
      %c24 = arith.constant 24 : index
      %302 = vector.load %arg4[%301, %c24] : memref<8x96xf32, #tpu.memory_space<vmem>>, vector<1x1xf32>
      tpu.vector_store %arg4[%301, %c24], %300 {strides = array<i32>} : memref<8x96xf32, #tpu.memory_space<vmem>>, vector<1x1xf32>,
      %c1_i32_96 = arith.constant 1 : i32
      %303 = arith.addi %291, %c1_i32_96 : i32
      %304 = vector.broadcast %303 : i32 to vector<1x384xi32>
      %305 = arith.cmpi eq, %2, %304 : vector<1x384xi32>
      %cst_97 = arith.constant 0.000000e+00 : f32
      %306 = vector.broadcast %cst_97 : f32 to vector<1x384xf32>
      %307 = arith.select %305, %293, %306 : vector<1x384xi1>, vector<1x384xf32>
      %cst_98 = arith.constant dense<0.000000e+00> : vector<1xf32>
      %308 = vector.multi_reduction <add>, %307, %cst_98 [1] : vector<1x384xf32> to vector<1xf32>
      %309 = vector.shape_cast %308 : vector<1xf32> to vector<1x1xf32>
      %310 = arith.index_cast %arg5 : i32 to index
      %c25 = arith.constant 25 : index
      %311 = vector.load %arg4[%310, %c25] : memref<8x96xf32, #tpu.memory_space<vmem>>, vector<1x1xf32>
      tpu.vector_store %arg4[%310, %c25], %309 {strides = array<i32>} : memref<8x96xf32, #tpu.memory_space<vmem>>, vector<1x1xf32>,
      %c2_i32_99 = arith.constant 2 : i32
      %312 = arith.addi %291, %c2_i32_99 : i32
      %313 = vector.broadcast %312 : i32 to vector<1x384xi32>
      %314 = arith.cmpi eq, %2, %313 : vector<1x384xi32>
      %cst_100 = arith.constant 0.000000e+00 : f32
      %315 = vector.broadcast %cst_100 : f32 to vector<1x384xf32>
      %316 = arith.select %314, %293, %315 : vector<1x384xi1>, vector<1x384xf32>
      %cst_101 = arith.constant dense<0.000000e+00> : vector<1xf32>
      %317 = vector.multi_reduction <add>, %316, %cst_101 [1] : vector<1x384xf32> to vector<1xf32>
      %318 = vector.shape_cast %317 : vector<1xf32> to vector<1x1xf32>
      %319 = arith.index_cast %arg5 : i32 to index
      %c26 = arith.constant 26 : index
      %320 = vector.load %arg4[%319, %c26] : memref<8x96xf32, #tpu.memory_space<vmem>>, vector<1x1xf32>
      tpu.vector_store %arg4[%319, %c26], %318 {strides = array<i32>} : memref<8x96xf32, #tpu.memory_space<vmem>>, vector<1x1xf32>,
      %c9_i32 = arith.constant 9 : i32
      %321 = arith.addi %5, %c9_i32 : i32
      %322 = arith.index_cast %321 : i32 to index
      %323 = memref.load %arg1[%322] : memref<256xi32, #tpu.memory_space<smem>>
      %c9_i32_102 = arith.constant 9 : i32
      %324 = arith.addi %5, %c9_i32_102 : i32
      %325 = arith.index_cast %324 : i32 to index
      %326 = memref.load %arg2[%325] : memref<256xi32, #tpu.memory_space<smem>>
      %327 = arith.index_cast %323 : i32 to index
      %c0_103 = arith.constant 0 : index
      %328 = vector.load %arg3[%327, %c0_103] : memref<2x384xf32, #tpu.memory_space<vmem>>, vector<1x384xf32>
      %c0_i32_104 = arith.constant 0 : i32
      %329 = arith.addi %326, %c0_i32_104 : i32
      %330 = vector.broadcast %329 : i32 to vector<1x384xi32>
      %331 = arith.cmpi eq, %2, %330 : vector<1x384xi32>
      %cst_105 = arith.constant 0.000000e+00 : f32
      %332 = vector.broadcast %cst_105 : f32 to vector<1x384xf32>
      %333 = arith.select %331, %328, %332 : vector<1x384xi1>, vector<1x384xf32>
      %cst_106 = arith.constant dense<0.000000e+00> : vector<1xf32>
      %334 = vector.multi_reduction <add>, %333, %cst_106 [1] : vector<1x384xf32> to vector<1xf32>
      %335 = vector.shape_cast %334 : vector<1xf32> to vector<1x1xf32>
      %336 = arith.index_cast %arg5 : i32 to index
      %c27 = arith.constant 27 : index
      %337 = vector.load %arg4[%336, %c27] : memref<8x96xf32, #tpu.memory_space<vmem>>, vector<1x1xf32>
      tpu.vector_store %arg4[%336, %c27], %335 {strides = array<i32>} : memref<8x96xf32, #tpu.memory_space<vmem>>, vector<1x1xf32>,
      %c1_i32_107 = arith.constant 1 : i32
      %338 = arith.addi %326, %c1_i32_107 : i32
      %339 = vector.broadcast %338 : i32 to vector<1x384xi32>
      %340 = arith.cmpi eq, %2, %339 : vector<1x384xi32>
      %cst_108 = arith.constant 0.000000e+00 : f32
      %341 = vector.broadcast %cst_108 : f32 to vector<1x384xf32>
      %342 = arith.select %340, %328, %341 : vector<1x384xi1>, vector<1x384xf32>
      %cst_109 = arith.constant dense<0.000000e+00> : vector<1xf32>
      %343 = vector.multi_reduction <add>, %342, %cst_109 [1] : vector<1x384xf32> to vector<1xf32>
      %344 = vector.shape_cast %343 : vector<1xf32> to vector<1x1xf32>
      %345 = arith.index_cast %arg5 : i32 to index
      %c28 = arith.constant 28 : index
      %346 = vector.load %arg4[%345, %c28] : memref<8x96xf32, #tpu.memory_space<vmem>>, vector<1x1xf32>
      tpu.vector_store %arg4[%345, %c28], %344 {strides = array<i32>} : memref<8x96xf32, #tpu.memory_space<vmem>>, vector<1x1xf32>,
      %c2_i32_110 = arith.constant 2 : i32
      %347 = arith.addi %326, %c2_i32_110 : i32
      %348 = vector.broadcast %347 : i32 to vector<1x384xi32>
      %349 = arith.cmpi eq, %2, %348 : vector<1x384xi32>
      %cst_111 = arith.constant 0.000000e+00 : f32
      %350 = vector.broadcast %cst_111 : f32 to vector<1x384xf32>
      %351 = arith.select %349, %328, %350 : vector<1x384xi1>, vector<1x384xf32>
      %cst_112 = arith.constant dense<0.000000e+00> : vector<1xf32>
      %352 = vector.multi_reduction <add>, %351, %cst_112 [1] : vector<1x384xf32> to vector<1xf32>
      %353 = vector.shape_cast %352 : vector<1xf32> to vector<1x1xf32>
      %354 = arith.index_cast %arg5 : i32 to index
      %c29 = arith.constant 29 : index
      %355 = vector.load %arg4[%354, %c29] : memref<8x96xf32, #tpu.memory_space<vmem>>, vector<1x1xf32>
      tpu.vector_store %arg4[%354, %c29], %353 {strides = array<i32>} : memref<8x96xf32, #tpu.memory_space<vmem>>, vector<1x1xf32>,
      %c10_i32 = arith.constant 10 : i32
      %356 = arith.addi %5, %c10_i32 : i32
      %357 = arith.index_cast %356 : i32 to index
      %358 = memref.load %arg1[%357] : memref<256xi32, #tpu.memory_space<smem>>
      %c10_i32_113 = arith.constant 10 : i32
      %359 = arith.addi %5, %c10_i32_113 : i32
      %360 = arith.index_cast %359 : i32 to index
      %361 = memref.load %arg2[%360] : memref<256xi32, #tpu.memory_space<smem>>
      %362 = arith.index_cast %358 : i32 to index
      %c0_114 = arith.constant 0 : index
      %363 = vector.load %arg3[%362, %c0_114] : memref<2x384xf32, #tpu.memory_space<vmem>>, vector<1x384xf32>
      %c0_i32_115 = arith.constant 0 : i32
      %364 = arith.addi %361, %c0_i32_115 : i32
      %365 = vector.broadcast %364 : i32 to vector<1x384xi32>
      %366 = arith.cmpi eq, %2, %365 : vector<1x384xi32>
      %cst_116 = arith.constant 0.000000e+00 : f32
      %367 = vector.broadcast %cst_116 : f32 to vector<1x384xf32>
      %368 = arith.select %366, %363, %367 : vector<1x384xi1>, vector<1x384xf32>
      %cst_117 = arith.constant dense<0.000000e+00> : vector<1xf32>
      %369 = vector.multi_reduction <add>, %368, %cst_117 [1] : vector<1x384xf32> to vector<1xf32>
      %370 = vector.shape_cast %369 : vector<1xf32> to vector<1x1xf32>
      %371 = arith.index_cast %arg5 : i32 to index
      %c30 = arith.constant 30 : index
      %372 = vector.load %arg4[%371, %c30] : memref<8x96xf32, #tpu.memory_space<vmem>>, vector<1x1xf32>
      tpu.vector_store %arg4[%371, %c30], %370 {strides = array<i32>} : memref<8x96xf32, #tpu.memory_space<vmem>>, vector<1x1xf32>,
      %c1_i32_118 = arith.constant 1 : i32
      %373 = arith.addi %361, %c1_i32_118 : i32
      %374 = vector.broadcast %373 : i32 to vector<1x384xi32>
      %375 = arith.cmpi eq, %2, %374 : vector<1x384xi32>
      %cst_119 = arith.constant 0.000000e+00 : f32
      %376 = vector.broadcast %cst_119 : f32 to vector<1x384xf32>
      %377 = arith.select %375, %363, %376 : vector<1x384xi1>, vector<1x384xf32>
      %cst_120 = arith.constant dense<0.000000e+00> : vector<1xf32>
      %378 = vector.multi_reduction <add>, %377, %cst_120 [1] : vector<1x384xf32> to vector<1xf32>
      %379 = vector.shape_cast %378 : vector<1xf32> to vector<1x1xf32>
      %380 = arith.index_cast %arg5 : i32 to index
      %c31 = arith.constant 31 : index
      %381 = vector.load %arg4[%380, %c31] : memref<8x96xf32, #tpu.memory_space<vmem>>, vector<1x1xf32>
      tpu.vector_store %arg4[%380, %c31], %379 {strides = array<i32>} : memref<8x96xf32, #tpu.memory_space<vmem>>, vector<1x1xf32>,
      %c2_i32_121 = arith.constant 2 : i32
      %382 = arith.addi %361, %c2_i32_121 : i32
      %383 = vector.broadcast %382 : i32 to vector<1x384xi32>
      %384 = arith.cmpi eq, %2, %383 : vector<1x384xi32>
      %cst_122 = arith.constant 0.000000e+00 : f32
      %385 = vector.broadcast %cst_122 : f32 to vector<1x384xf32>
      %386 = arith.select %384, %363, %385 : vector<1x384xi1>, vector<1x384xf32>
      %cst_123 = arith.constant dense<0.000000e+00> : vector<1xf32>
      %387 = vector.multi_reduction <add>, %386, %cst_123 [1] : vector<1x384xf32> to vector<1xf32>
      %388 = vector.shape_cast %387 : vector<1xf32> to vector<1x1xf32>
      %389 = arith.index_cast %arg5 : i32 to index
      %c32 = arith.constant 32 : index
      %390 = vector.load %arg4[%389, %c32] : memref<8x96xf32, #tpu.memory_space<vmem>>, vector<1x1xf32>
      tpu.vector_store %arg4[%389, %c32], %388 {strides = array<i32>} : memref<8x96xf32, #tpu.memory_space<vmem>>, vector<1x1xf32>,
      %c11_i32 = arith.constant 11 : i32
      %391 = arith.addi %5, %c11_i32 : i32
      %392 = arith.index_cast %391 : i32 to index
      %393 = memref.load %arg1[%392] : memref<256xi32, #tpu.memory_space<smem>>
      %c11_i32_124 = arith.constant 11 : i32
      %394 = arith.addi %5, %c11_i32_124 : i32
      %395 = arith.index_cast %394 : i32 to index
      %396 = memref.load %arg2[%395] : memref<256xi32, #tpu.memory_space<smem>>
      %397 = arith.index_cast %393 : i32 to index
      %c0_125 = arith.constant 0 : index
      %398 = vector.load %arg3[%397, %c0_125] : memref<2x384xf32, #tpu.memory_space<vmem>>, vector<1x384xf32>
      %c0_i32_126 = arith.constant 0 : i32
      %399 = arith.addi %396, %c0_i32_126 : i32
      %400 = vector.broadcast %399 : i32 to vector<1x384xi32>
      %401 = arith.cmpi eq, %2, %400 : vector<1x384xi32>
      %cst_127 = arith.constant 0.000000e+00 : f32
      %402 = vector.broadcast %cst_127 : f32 to vector<1x384xf32>
      %403 = arith.select %401, %398, %402 : vector<1x384xi1>, vector<1x384xf32>
      %cst_128 = arith.constant dense<0.000000e+00> : vector<1xf32>
      %404 = vector.multi_reduction <add>, %403, %cst_128 [1] : vector<1x384xf32> to vector<1xf32>
      %405 = vector.shape_cast %404 : vector<1xf32> to vector<1x1xf32>
      %406 = arith.index_cast %arg5 : i32 to index
      %c33 = arith.constant 33 : index
      %407 = vector.load %arg4[%406, %c33] : memref<8x96xf32, #tpu.memory_space<vmem>>, vector<1x1xf32>
      tpu.vector_store %arg4[%406, %c33], %405 {strides = array<i32>} : memref<8x96xf32, #tpu.memory_space<vmem>>, vector<1x1xf32>,
      %c1_i32_129 = arith.constant 1 : i32
      %408 = arith.addi %396, %c1_i32_129 : i32
      %409 = vector.broadcast %408 : i32 to vector<1x384xi32>
      %410 = arith.cmpi eq, %2, %409 : vector<1x384xi32>
      %cst_130 = arith.constant 0.000000e+00 : f32
      %411 = vector.broadcast %cst_130 : f32 to vector<1x384xf32>
      %412 = arith.select %410, %398, %411 : vector<1x384xi1>, vector<1x384xf32>
      %cst_131 = arith.constant dense<0.000000e+00> : vector<1xf32>
      %413 = vector.multi_reduction <add>, %412, %cst_131 [1] : vector<1x384xf32> to vector<1xf32>
      %414 = vector.shape_cast %413 : vector<1xf32> to vector<1x1xf32>
      %415 = arith.index_cast %arg5 : i32 to index
      %c34 = arith.constant 34 : index
      %416 = vector.load %arg4[%415, %c34] : memref<8x96xf32, #tpu.memory_space<vmem>>, vector<1x1xf32>
      tpu.vector_store %arg4[%415, %c34], %414 {strides = array<i32>} : memref<8x96xf32, #tpu.memory_space<vmem>>, vector<1x1xf32>,
      %c2_i32_132 = arith.constant 2 : i32
      %417 = arith.addi %396, %c2_i32_132 : i32
      %418 = vector.broadcast %417 : i32 to vector<1x384xi32>
      %419 = arith.cmpi eq, %2, %418 : vector<1x384xi32>
      %cst_133 = arith.constant 0.000000e+00 : f32
      %420 = vector.broadcast %cst_133 : f32 to vector<1x384xf32>
      %421 = arith.select %419, %398, %420 : vector<1x384xi1>, vector<1x384xf32>
      %cst_134 = arith.constant dense<0.000000e+00> : vector<1xf32>
      %422 = vector.multi_reduction <add>, %421, %cst_134 [1] : vector<1x384xf32> to vector<1xf32>
      %423 = vector.shape_cast %422 : vector<1xf32> to vector<1x1xf32>
      %424 = arith.index_cast %arg5 : i32 to index
      %c35 = arith.constant 35 : index
      %425 = vector.load %arg4[%424, %c35] : memref<8x96xf32, #tpu.memory_space<vmem>>, vector<1x1xf32>
      tpu.vector_store %arg4[%424, %c35], %423 {strides = array<i32>} : memref<8x96xf32, #tpu.memory_space<vmem>>, vector<1x1xf32>,
      %c12_i32 = arith.constant 12 : i32
      %426 = arith.addi %5, %c12_i32 : i32
      %427 = arith.index_cast %426 : i32 to index
      %428 = memref.load %arg1[%427] : memref<256xi32, #tpu.memory_space<smem>>
      %c12_i32_135 = arith.constant 12 : i32
      %429 = arith.addi %5, %c12_i32_135 : i32
      %430 = arith.index_cast %429 : i32 to index
      %431 = memref.load %arg2[%430] : memref<256xi32, #tpu.memory_space<smem>>
      %432 = arith.index_cast %428 : i32 to index
      %c0_136 = arith.constant 0 : index
      %433 = vector.load %arg3[%432, %c0_136] : memref<2x384xf32, #tpu.memory_space<vmem>>, vector<1x384xf32>
      %c0_i32_137 = arith.constant 0 : i32
      %434 = arith.addi %431, %c0_i32_137 : i32
      %435 = vector.broadcast %434 : i32 to vector<1x384xi32>
      %436 = arith.cmpi eq, %2, %435 : vector<1x384xi32>
      %cst_138 = arith.constant 0.000000e+00 : f32
      %437 = vector.broadcast %cst_138 : f32 to vector<1x384xf32>
      %438 = arith.select %436, %433, %437 : vector<1x384xi1>, vector<1x384xf32>
      %cst_139 = arith.constant dense<0.000000e+00> : vector<1xf32>
      %439 = vector.multi_reduction <add>, %438, %cst_139 [1] : vector<1x384xf32> to vector<1xf32>
      %440 = vector.shape_cast %439 : vector<1xf32> to vector<1x1xf32>
      %441 = arith.index_cast %arg5 : i32 to index
      %c36 = arith.constant 36 : index
      %442 = vector.load %arg4[%441, %c36] : memref<8x96xf32, #tpu.memory_space<vmem>>, vector<1x1xf32>
      tpu.vector_store %arg4[%441, %c36], %440 {strides = array<i32>} : memref<8x96xf32, #tpu.memory_space<vmem>>, vector<1x1xf32>,
      %c1_i32_140 = arith.constant 1 : i32
      %443 = arith.addi %431, %c1_i32_140 : i32
      %444 = vector.broadcast %443 : i32 to vector<1x384xi32>
      %445 = arith.cmpi eq, %2, %444 : vector<1x384xi32>
      %cst_141 = arith.constant 0.000000e+00 : f32
      %446 = vector.broadcast %cst_141 : f32 to vector<1x384xf32>
      %447 = arith.select %445, %433, %446 : vector<1x384xi1>, vector<1x384xf32>
      %cst_142 = arith.constant dense<0.000000e+00> : vector<1xf32>
      %448 = vector.multi_reduction <add>, %447, %cst_142 [1] : vector<1x384xf32> to vector<1xf32>
      %449 = vector.shape_cast %448 : vector<1xf32> to vector<1x1xf32>
      %450 = arith.index_cast %arg5 : i32 to index
      %c37 = arith.constant 37 : index
      %451 = vector.load %arg4[%450, %c37] : memref<8x96xf32, #tpu.memory_space<vmem>>, vector<1x1xf32>
      tpu.vector_store %arg4[%450, %c37], %449 {strides = array<i32>} : memref<8x96xf32, #tpu.memory_space<vmem>>, vector<1x1xf32>,
      %c2_i32_143 = arith.constant 2 : i32
      %452 = arith.addi %431, %c2_i32_143 : i32
      %453 = vector.broadcast %452 : i32 to vector<1x384xi32>
      %454 = arith.cmpi eq, %2, %453 : vector<1x384xi32>
      %cst_144 = arith.constant 0.000000e+00 : f32
      %455 = vector.broadcast %cst_144 : f32 to vector<1x384xf32>
      %456 = arith.select %454, %433, %455 : vector<1x384xi1>, vector<1x384xf32>
      %cst_145 = arith.constant dense<0.000000e+00> : vector<1xf32>
      %457 = vector.multi_reduction <add>, %456, %cst_145 [1] : vector<1x384xf32> to vector<1xf32>
      %458 = vector.shape_cast %457 : vector<1xf32> to vector<1x1xf32>
      %459 = arith.index_cast %arg5 : i32 to index
      %c38 = arith.constant 38 : index
      %460 = vector.load %arg4[%459, %c38] : memref<8x96xf32, #tpu.memory_space<vmem>>, vector<1x1xf32>
      tpu.vector_store %arg4[%459, %c38], %458 {strides = array<i32>} : memref<8x96xf32, #tpu.memory_space<vmem>>, vector<1x1xf32>,
      %c13_i32 = arith.constant 13 : i32
      %461 = arith.addi %5, %c13_i32 : i32
      %462 = arith.index_cast %461 : i32 to index
      %463 = memref.load %arg1[%462] : memref<256xi32, #tpu.memory_space<smem>>
      %c13_i32_146 = arith.constant 13 : i32
      %464 = arith.addi %5, %c13_i32_146 : i32
      %465 = arith.index_cast %464 : i32 to index
      %466 = memref.load %arg2[%465] : memref<256xi32, #tpu.memory_space<smem>>
      %467 = arith.index_cast %463 : i32 to index
      %c0_147 = arith.constant 0 : index
      %468 = vector.load %arg3[%467, %c0_147] : memref<2x384xf32, #tpu.memory_space<vmem>>, vector<1x384xf32>
      %c0_i32_148 = arith.constant 0 : i32
      %469 = arith.addi %466, %c0_i32_148 : i32
      %470 = vector.broadcast %469 : i32 to vector<1x384xi32>
      %471 = arith.cmpi eq, %2, %470 : vector<1x384xi32>
      %cst_149 = arith.constant 0.000000e+00 : f32
      %472 = vector.broadcast %cst_149 : f32 to vector<1x384xf32>
      %473 = arith.select %471, %468, %472 : vector<1x384xi1>, vector<1x384xf32>
      %cst_150 = arith.constant dense<0.000000e+00> : vector<1xf32>
      %474 = vector.multi_reduction <add>, %473, %cst_150 [1] : vector<1x384xf32> to vector<1xf32>
      %475 = vector.shape_cast %474 : vector<1xf32> to vector<1x1xf32>
      %476 = arith.index_cast %arg5 : i32 to index
      %c39 = arith.constant 39 : index
      %477 = vector.load %arg4[%476, %c39] : memref<8x96xf32, #tpu.memory_space<vmem>>, vector<1x1xf32>
      tpu.vector_store %arg4[%476, %c39], %475 {strides = array<i32>} : memref<8x96xf32, #tpu.memory_space<vmem>>, vector<1x1xf32>,
      %c1_i32_151 = arith.constant 1 : i32
      %478 = arith.addi %466, %c1_i32_151 : i32
      %479 = vector.broadcast %478 : i32 to vector<1x384xi32>
      %480 = arith.cmpi eq, %2, %479 : vector<1x384xi32>
      %cst_152 = arith.constant 0.000000e+00 : f32
      %481 = vector.broadcast %cst_152 : f32 to vector<1x384xf32>
      %482 = arith.select %480, %468, %481 : vector<1x384xi1>, vector<1x384xf32>
      %cst_153 = arith.constant dense<0.000000e+00> : vector<1xf32>
      %483 = vector.multi_reduction <add>, %482, %cst_153 [1] : vector<1x384xf32> to vector<1xf32>
      %484 = vector.shape_cast %483 : vector<1xf32> to vector<1x1xf32>
      %485 = arith.index_cast %arg5 : i32 to index
      %c40 = arith.constant 40 : index
      %486 = vector.load %arg4[%485, %c40] : memref<8x96xf32, #tpu.memory_space<vmem>>, vector<1x1xf32>
      tpu.vector_store %arg4[%485, %c40], %484 {strides = array<i32>} : memref<8x96xf32, #tpu.memory_space<vmem>>, vector<1x1xf32>,
      %c2_i32_154 = arith.constant 2 : i32
      %487 = arith.addi %466, %c2_i32_154 : i32
      %488 = vector.broadcast %487 : i32 to vector<1x384xi32>
      %489 = arith.cmpi eq, %2, %488 : vector<1x384xi32>
      %cst_155 = arith.constant 0.000000e+00 : f32
      %490 = vector.broadcast %cst_155 : f32 to vector<1x384xf32>
      %491 = arith.select %489, %468, %490 : vector<1x384xi1>, vector<1x384xf32>
      %cst_156 = arith.constant dense<0.000000e+00> : vector<1xf32>
      %492 = vector.multi_reduction <add>, %491, %cst_156 [1] : vector<1x384xf32> to vector<1xf32>
      %493 = vector.shape_cast %492 : vector<1xf32> to vector<1x1xf32>
      %494 = arith.index_cast %arg5 : i32 to index
      %c41 = arith.constant 41 : index
      %495 = vector.load %arg4[%494, %c41] : memref<8x96xf32, #tpu.memory_space<vmem>>, vector<1x1xf32>
      tpu.vector_store %arg4[%494, %c41], %493 {strides = array<i32>} : memref<8x96xf32, #tpu.memory_space<vmem>>, vector<1x1xf32>,
      %c14_i32 = arith.constant 14 : i32
      %496 = arith.addi %5, %c14_i32 : i32
      %497 = arith.index_cast %496 : i32 to index
      %498 = memref.load %arg1[%497] : memref<256xi32, #tpu.memory_space<smem>>
      %c14_i32_157 = arith.constant 14 : i32
      %499 = arith.addi %5, %c14_i32_157 : i32
      %500 = arith.index_cast %499 : i32 to index
      %501 = memref.load %arg2[%500] : memref<256xi32, #tpu.memory_space<smem>>
      %502 = arith.index_cast %498 : i32 to index
      %c0_158 = arith.constant 0 : index
      %503 = vector.load %arg3[%502, %c0_158] : memref<2x384xf32, #tpu.memory_space<vmem>>, vector<1x384xf32>
      %c0_i32_159 = arith.constant 0 : i32
      %504 = arith.addi %501, %c0_i32_159 : i32
      %505 = vector.broadcast %504 : i32 to vector<1x384xi32>
      %506 = arith.cmpi eq, %2, %505 : vector<1x384xi32>
      %cst_160 = arith.constant 0.000000e+00 : f32
      %507 = vector.broadcast %cst_160 : f32 to vector<1x384xf32>
      %508 = arith.select %506, %503, %507 : vector<1x384xi1>, vector<1x384xf32>
      %cst_161 = arith.constant dense<0.000000e+00> : vector<1xf32>
      %509 = vector.multi_reduction <add>, %508, %cst_161 [1] : vector<1x384xf32> to vector<1xf32>
      %510 = vector.shape_cast %509 : vector<1xf32> to vector<1x1xf32>
      %511 = arith.index_cast %arg5 : i32 to index
      %c42 = arith.constant 42 : index
      %512 = vector.load %arg4[%511, %c42] : memref<8x96xf32, #tpu.memory_space<vmem>>, vector<1x1xf32>
      tpu.vector_store %arg4[%511, %c42], %510 {strides = array<i32>} : memref<8x96xf32, #tpu.memory_space<vmem>>, vector<1x1xf32>,
      %c1_i32_162 = arith.constant 1 : i32
      %513 = arith.addi %501, %c1_i32_162 : i32
      %514 = vector.broadcast %513 : i32 to vector<1x384xi32>
      %515 = arith.cmpi eq, %2, %514 : vector<1x384xi32>
      %cst_163 = arith.constant 0.000000e+00 : f32
      %516 = vector.broadcast %cst_163 : f32 to vector<1x384xf32>
      %517 = arith.select %515, %503, %516 : vector<1x384xi1>, vector<1x384xf32>
      %cst_164 = arith.constant dense<0.000000e+00> : vector<1xf32>
      %518 = vector.multi_reduction <add>, %517, %cst_164 [1] : vector<1x384xf32> to vector<1xf32>
      %519 = vector.shape_cast %518 : vector<1xf32> to vector<1x1xf32>
      %520 = arith.index_cast %arg5 : i32 to index
      %c43 = arith.constant 43 : index
      %521 = vector.load %arg4[%520, %c43] : memref<8x96xf32, #tpu.memory_space<vmem>>, vector<1x1xf32>
      tpu.vector_store %arg4[%520, %c43], %519 {strides = array<i32>} : memref<8x96xf32, #tpu.memory_space<vmem>>, vector<1x1xf32>,
      %c2_i32_165 = arith.constant 2 : i32
      %522 = arith.addi %501, %c2_i32_165 : i32
      %523 = vector.broadcast %522 : i32 to vector<1x384xi32>
      %524 = arith.cmpi eq, %2, %523 : vector<1x384xi32>
      %cst_166 = arith.constant 0.000000e+00 : f32
      %525 = vector.broadcast %cst_166 : f32 to vector<1x384xf32>
      %526 = arith.select %524, %503, %525 : vector<1x384xi1>, vector<1x384xf32>
      %cst_167 = arith.constant dense<0.000000e+00> : vector<1xf32>
      %527 = vector.multi_reduction <add>, %526, %cst_167 [1] : vector<1x384xf32> to vector<1xf32>
      %528 = vector.shape_cast %527 : vector<1xf32> to vector<1x1xf32>
      %529 = arith.index_cast %arg5 : i32 to index
      %c44 = arith.constant 44 : index
      %530 = vector.load %arg4[%529, %c44] : memref<8x96xf32, #tpu.memory_space<vmem>>, vector<1x1xf32>
      tpu.vector_store %arg4[%529, %c44], %528 {strides = array<i32>} : memref<8x96xf32, #tpu.memory_space<vmem>>, vector<1x1xf32>,
      %c15_i32 = arith.constant 15 : i32
      %531 = arith.addi %5, %c15_i32 : i32
      %532 = arith.index_cast %531 : i32 to index
      %533 = memref.load %arg1[%532] : memref<256xi32, #tpu.memory_space<smem>>
      %c15_i32_168 = arith.constant 15 : i32
      %534 = arith.addi %5, %c15_i32_168 : i32
      %535 = arith.index_cast %534 : i32 to index
      %536 = memref.load %arg2[%535] : memref<256xi32, #tpu.memory_space<smem>>
      %537 = arith.index_cast %533 : i32 to index
      %c0_169 = arith.constant 0 : index
      %538 = vector.load %arg3[%537, %c0_169] : memref<2x384xf32, #tpu.memory_space<vmem>>, vector<1x384xf32>
      %c0_i32_170 = arith.constant 0 : i32
      %539 = arith.addi %536, %c0_i32_170 : i32
      %540 = vector.broadcast %539 : i32 to vector<1x384xi32>
      %541 = arith.cmpi eq, %2, %540 : vector<1x384xi32>
      %cst_171 = arith.constant 0.000000e+00 : f32
      %542 = vector.broadcast %cst_171 : f32 to vector<1x384xf32>
      %543 = arith.select %541, %538, %542 : vector<1x384xi1>, vector<1x384xf32>
      %cst_172 = arith.constant dense<0.000000e+00> : vector<1xf32>
      %544 = vector.multi_reduction <add>, %543, %cst_172 [1] : vector<1x384xf32> to vector<1xf32>
      %545 = vector.shape_cast %544 : vector<1xf32> to vector<1x1xf32>
      %546 = arith.index_cast %arg5 : i32 to index
      %c45 = arith.constant 45 : index
      %547 = vector.load %arg4[%546, %c45] : memref<8x96xf32, #tpu.memory_space<vmem>>, vector<1x1xf32>
      tpu.vector_store %arg4[%546, %c45], %545 {strides = array<i32>} : memref<8x96xf32, #tpu.memory_space<vmem>>, vector<1x1xf32>,
      %c1_i32_173 = arith.constant 1 : i32
      %548 = arith.addi %536, %c1_i32_173 : i32
      %549 = vector.broadcast %548 : i32 to vector<1x384xi32>
      %550 = arith.cmpi eq, %2, %549 : vector<1x384xi32>
      %cst_174 = arith.constant 0.000000e+00 : f32
      %551 = vector.broadcast %cst_174 : f32 to vector<1x384xf32>
      %552 = arith.select %550, %538, %551 : vector<1x384xi1>, vector<1x384xf32>
      %cst_175 = arith.constant dense<0.000000e+00> : vector<1xf32>
      %553 = vector.multi_reduction <add>, %552, %cst_175 [1] : vector<1x384xf32> to vector<1xf32>
      %554 = vector.shape_cast %553 : vector<1xf32> to vector<1x1xf32>
      %555 = arith.index_cast %arg5 : i32 to index
      %c46 = arith.constant 46 : index
      %556 = vector.load %arg4[%555, %c46] : memref<8x96xf32, #tpu.memory_space<vmem>>, vector<1x1xf32>
      tpu.vector_store %arg4[%555, %c46], %554 {strides = array<i32>} : memref<8x96xf32, #tpu.memory_space<vmem>>, vector<1x1xf32>,
      %c2_i32_176 = arith.constant 2 : i32
      %557 = arith.addi %536, %c2_i32_176 : i32
      %558 = vector.broadcast %557 : i32 to vector<1x384xi32>
      %559 = arith.cmpi eq, %2, %558 : vector<1x384xi32>
      %cst_177 = arith.constant 0.000000e+00 : f32
      %560 = vector.broadcast %cst_177 : f32 to vector<1x384xf32>
      %561 = arith.select %559, %538, %560 : vector<1x384xi1>, vector<1x384xf32>
      %cst_178 = arith.constant dense<0.000000e+00> : vector<1xf32>
      %562 = vector.multi_reduction <add>, %561, %cst_178 [1] : vector<1x384xf32> to vector<1xf32>
      %563 = vector.shape_cast %562 : vector<1xf32> to vector<1x1xf32>
      %564 = arith.index_cast %arg5 : i32 to index
      %c47 = arith.constant 47 : index
      %565 = vector.load %arg4[%564, %c47] : memref<8x96xf32, #tpu.memory_space<vmem>>, vector<1x1xf32>
      tpu.vector_store %arg4[%564, %c47], %563 {strides = array<i32>} : memref<8x96xf32, #tpu.memory_space<vmem>>, vector<1x1xf32>,
      %c16_i32 = arith.constant 16 : i32
      %566 = arith.addi %5, %c16_i32 : i32
      %567 = arith.index_cast %566 : i32 to index
      %568 = memref.load %arg1[%567] : memref<256xi32, #tpu.memory_space<smem>>
      %c16_i32_179 = arith.constant 16 : i32
      %569 = arith.addi %5, %c16_i32_179 : i32
      %570 = arith.index_cast %569 : i32 to index
      %571 = memref.load %arg2[%570] : memref<256xi32, #tpu.memory_space<smem>>
      %572 = arith.index_cast %568 : i32 to index
      %c0_180 = arith.constant 0 : index
      %573 = vector.load %arg3[%572, %c0_180] : memref<2x384xf32, #tpu.memory_space<vmem>>, vector<1x384xf32>
      %c0_i32_181 = arith.constant 0 : i32
      %574 = arith.addi %571, %c0_i32_181 : i32
      %575 = vector.broadcast %574 : i32 to vector<1x384xi32>
      %576 = arith.cmpi eq, %2, %575 : vector<1x384xi32>
      %cst_182 = arith.constant 0.000000e+00 : f32
      %577 = vector.broadcast %cst_182 : f32 to vector<1x384xf32>
      %578 = arith.select %576, %573, %577 : vector<1x384xi1>, vector<1x384xf32>
      %cst_183 = arith.constant dense<0.000000e+00> : vector<1xf32>
      %579 = vector.multi_reduction <add>, %578, %cst_183 [1] : vector<1x384xf32> to vector<1xf32>
      %580 = vector.shape_cast %579 : vector<1xf32> to vector<1x1xf32>
      %581 = arith.index_cast %arg5 : i32 to index
      %c48 = arith.constant 48 : index
      %582 = vector.load %arg4[%581, %c48] : memref<8x96xf32, #tpu.memory_space<vmem>>, vector<1x1xf32>
      tpu.vector_store %arg4[%581, %c48], %580 {strides = array<i32>} : memref<8x96xf32, #tpu.memory_space<vmem>>, vector<1x1xf32>,
      %c1_i32_184 = arith.constant 1 : i32
      %583 = arith.addi %571, %c1_i32_184 : i32
      %584 = vector.broadcast %583 : i32 to vector<1x384xi32>
      %585 = arith.cmpi eq, %2, %584 : vector<1x384xi32>
      %cst_185 = arith.constant 0.000000e+00 : f32
      %586 = vector.broadcast %cst_185 : f32 to vector<1x384xf32>
      %587 = arith.select %585, %573, %586 : vector<1x384xi1>, vector<1x384xf32>
      %cst_186 = arith.constant dense<0.000000e+00> : vector<1xf32>
      %588 = vector.multi_reduction <add>, %587, %cst_186 [1] : vector<1x384xf32> to vector<1xf32>
      %589 = vector.shape_cast %588 : vector<1xf32> to vector<1x1xf32>
      %590 = arith.index_cast %arg5 : i32 to index
      %c49 = arith.constant 49 : index
      %591 = vector.load %arg4[%590, %c49] : memref<8x96xf32, #tpu.memory_space<vmem>>, vector<1x1xf32>
      tpu.vector_store %arg4[%590, %c49], %589 {strides = array<i32>} : memref<8x96xf32, #tpu.memory_space<vmem>>, vector<1x1xf32>,
      %c2_i32_187 = arith.constant 2 : i32
      %592 = arith.addi %571, %c2_i32_187 : i32
      %593 = vector.broadcast %592 : i32 to vector<1x384xi32>
      %594 = arith.cmpi eq, %2, %593 : vector<1x384xi32>
      %cst_188 = arith.constant 0.000000e+00 : f32
      %595 = vector.broadcast %cst_188 : f32 to vector<1x384xf32>
      %596 = arith.select %594, %573, %595 : vector<1x384xi1>, vector<1x384xf32>
      %cst_189 = arith.constant dense<0.000000e+00> : vector<1xf32>
      %597 = vector.multi_reduction <add>, %596, %cst_189 [1] : vector<1x384xf32> to vector<1xf32>
      %598 = vector.shape_cast %597 : vector<1xf32> to vector<1x1xf32>
      %599 = arith.index_cast %arg5 : i32 to index
      %c50 = arith.constant 50 : index
      %600 = vector.load %arg4[%599, %c50] : memref<8x96xf32, #tpu.memory_space<vmem>>, vector<1x1xf32>
      tpu.vector_store %arg4[%599, %c50], %598 {strides = array<i32>} : memref<8x96xf32, #tpu.memory_space<vmem>>, vector<1x1xf32>,
      %c17_i32 = arith.constant 17 : i32
      %601 = arith.addi %5, %c17_i32 : i32
      %602 = arith.index_cast %601 : i32 to index
      %603 = memref.load %arg1[%602] : memref<256xi32, #tpu.memory_space<smem>>
      %c17_i32_190 = arith.constant 17 : i32
      %604 = arith.addi %5, %c17_i32_190 : i32
      %605 = arith.index_cast %604 : i32 to index
      %606 = memref.load %arg2[%605] : memref<256xi32, #tpu.memory_space<smem>>
      %607 = arith.index_cast %603 : i32 to index
      %c0_191 = arith.constant 0 : index
      %608 = vector.load %arg3[%607, %c0_191] : memref<2x384xf32, #tpu.memory_space<vmem>>, vector<1x384xf32>
      %c0_i32_192 = arith.constant 0 : i32
      %609 = arith.addi %606, %c0_i32_192 : i32
      %610 = vector.broadcast %609 : i32 to vector<1x384xi32>
      %611 = arith.cmpi eq, %2, %610 : vector<1x384xi32>
      %cst_193 = arith.constant 0.000000e+00 : f32
      %612 = vector.broadcast %cst_193 : f32 to vector<1x384xf32>
      %613 = arith.select %611, %608, %612 : vector<1x384xi1>, vector<1x384xf32>
      %cst_194 = arith.constant dense<0.000000e+00> : vector<1xf32>
      %614 = vector.multi_reduction <add>, %613, %cst_194 [1] : vector<1x384xf32> to vector<1xf32>
      %615 = vector.shape_cast %614 : vector<1xf32> to vector<1x1xf32>
      %616 = arith.index_cast %arg5 : i32 to index
      %c51 = arith.constant 51 : index
      %617 = vector.load %arg4[%616, %c51] : memref<8x96xf32, #tpu.memory_space<vmem>>, vector<1x1xf32>
      tpu.vector_store %arg4[%616, %c51], %615 {strides = array<i32>} : memref<8x96xf32, #tpu.memory_space<vmem>>, vector<1x1xf32>,
      %c1_i32_195 = arith.constant 1 : i32
      %618 = arith.addi %606, %c1_i32_195 : i32
      %619 = vector.broadcast %618 : i32 to vector<1x384xi32>
      %620 = arith.cmpi eq, %2, %619 : vector<1x384xi32>
      %cst_196 = arith.constant 0.000000e+00 : f32
      %621 = vector.broadcast %cst_196 : f32 to vector<1x384xf32>
      %622 = arith.select %620, %608, %621 : vector<1x384xi1>, vector<1x384xf32>
      %cst_197 = arith.constant dense<0.000000e+00> : vector<1xf32>
      %623 = vector.multi_reduction <add>, %622, %cst_197 [1] : vector<1x384xf32> to vector<1xf32>
      %624 = vector.shape_cast %623 : vector<1xf32> to vector<1x1xf32>
      %625 = arith.index_cast %arg5 : i32 to index
      %c52 = arith.constant 52 : index
      %626 = vector.load %arg4[%625, %c52] : memref<8x96xf32, #tpu.memory_space<vmem>>, vector<1x1xf32>
      tpu.vector_store %arg4[%625, %c52], %624 {strides = array<i32>} : memref<8x96xf32, #tpu.memory_space<vmem>>, vector<1x1xf32>,
      %c2_i32_198 = arith.constant 2 : i32
      %627 = arith.addi %606, %c2_i32_198 : i32
      %628 = vector.broadcast %627 : i32 to vector<1x384xi32>
      %629 = arith.cmpi eq, %2, %628 : vector<1x384xi32>
      %cst_199 = arith.constant 0.000000e+00 : f32
      %630 = vector.broadcast %cst_199 : f32 to vector<1x384xf32>
      %631 = arith.select %629, %608, %630 : vector<1x384xi1>, vector<1x384xf32>
      %cst_200 = arith.constant dense<0.000000e+00> : vector<1xf32>
      %632 = vector.multi_reduction <add>, %631, %cst_200 [1] : vector<1x384xf32> to vector<1xf32>
      %633 = vector.shape_cast %632 : vector<1xf32> to vector<1x1xf32>
      %634 = arith.index_cast %arg5 : i32 to index
      %c53 = arith.constant 53 : index
      %635 = vector.load %arg4[%634, %c53] : memref<8x96xf32, #tpu.memory_space<vmem>>, vector<1x1xf32>
      tpu.vector_store %arg4[%634, %c53], %633 {strides = array<i32>} : memref<8x96xf32, #tpu.memory_space<vmem>>, vector<1x1xf32>,
      %c18_i32 = arith.constant 18 : i32
      %636 = arith.addi %5, %c18_i32 : i32
      %637 = arith.index_cast %636 : i32 to index
      %638 = memref.load %arg1[%637] : memref<256xi32, #tpu.memory_space<smem>>
      %c18_i32_201 = arith.constant 18 : i32
      %639 = arith.addi %5, %c18_i32_201 : i32
      %640 = arith.index_cast %639 : i32 to index
      %641 = memref.load %arg2[%640] : memref<256xi32, #tpu.memory_space<smem>>
      %642 = arith.index_cast %638 : i32 to index
      %c0_202 = arith.constant 0 : index
      %643 = vector.load %arg3[%642, %c0_202] : memref<2x384xf32, #tpu.memory_space<vmem>>, vector<1x384xf32>
      %c0_i32_203 = arith.constant 0 : i32
      %644 = arith.addi %641, %c0_i32_203 : i32
      %645 = vector.broadcast %644 : i32 to vector<1x384xi32>
      %646 = arith.cmpi eq, %2, %645 : vector<1x384xi32>
      %cst_204 = arith.constant 0.000000e+00 : f32
      %647 = vector.broadcast %cst_204 : f32 to vector<1x384xf32>
      %648 = arith.select %646, %643, %647 : vector<1x384xi1>, vector<1x384xf32>
      %cst_205 = arith.constant dense<0.000000e+00> : vector<1xf32>
      %649 = vector.multi_reduction <add>, %648, %cst_205 [1] : vector<1x384xf32> to vector<1xf32>
      %650 = vector.shape_cast %649 : vector<1xf32> to vector<1x1xf32>
      %651 = arith.index_cast %arg5 : i32 to index
      %c54 = arith.constant 54 : index
      %652 = vector.load %arg4[%651, %c54] : memref<8x96xf32, #tpu.memory_space<vmem>>, vector<1x1xf32>
      tpu.vector_store %arg4[%651, %c54], %650 {strides = array<i32>} : memref<8x96xf32, #tpu.memory_space<vmem>>, vector<1x1xf32>,
      %c1_i32_206 = arith.constant 1 : i32
      %653 = arith.addi %641, %c1_i32_206 : i32
      %654 = vector.broadcast %653 : i32 to vector<1x384xi32>
      %655 = arith.cmpi eq, %2, %654 : vector<1x384xi32>
      %cst_207 = arith.constant 0.000000e+00 : f32
      %656 = vector.broadcast %cst_207 : f32 to vector<1x384xf32>
      %657 = arith.select %655, %643, %656 : vector<1x384xi1>, vector<1x384xf32>
      %cst_208 = arith.constant dense<0.000000e+00> : vector<1xf32>
      %658 = vector.multi_reduction <add>, %657, %cst_208 [1] : vector<1x384xf32> to vector<1xf32>
      %659 = vector.shape_cast %658 : vector<1xf32> to vector<1x1xf32>
      %660 = arith.index_cast %arg5 : i32 to index
      %c55 = arith.constant 55 : index
      %661 = vector.load %arg4[%660, %c55] : memref<8x96xf32, #tpu.memory_space<vmem>>, vector<1x1xf32>
      tpu.vector_store %arg4[%660, %c55], %659 {strides = array<i32>} : memref<8x96xf32, #tpu.memory_space<vmem>>, vector<1x1xf32>,
      %c2_i32_209 = arith.constant 2 : i32
      %662 = arith.addi %641, %c2_i32_209 : i32
      %663 = vector.broadcast %662 : i32 to vector<1x384xi32>
      %664 = arith.cmpi eq, %2, %663 : vector<1x384xi32>
      %cst_210 = arith.constant 0.000000e+00 : f32
      %665 = vector.broadcast %cst_210 : f32 to vector<1x384xf32>
      %666 = arith.select %664, %643, %665 : vector<1x384xi1>, vector<1x384xf32>
      %cst_211 = arith.constant dense<0.000000e+00> : vector<1xf32>
      %667 = vector.multi_reduction <add>, %666, %cst_211 [1] : vector<1x384xf32> to vector<1xf32>
      %668 = vector.shape_cast %667 : vector<1xf32> to vector<1x1xf32>
      %669 = arith.index_cast %arg5 : i32 to index
      %c56 = arith.constant 56 : index
      %670 = vector.load %arg4[%669, %c56] : memref<8x96xf32, #tpu.memory_space<vmem>>, vector<1x1xf32>
      tpu.vector_store %arg4[%669, %c56], %668 {strides = array<i32>} : memref<8x96xf32, #tpu.memory_space<vmem>>, vector<1x1xf32>,
      %c19_i32 = arith.constant 19 : i32
      %671 = arith.addi %5, %c19_i32 : i32
      %672 = arith.index_cast %671 : i32 to index
      %673 = memref.load %arg1[%672] : memref<256xi32, #tpu.memory_space<smem>>
      %c19_i32_212 = arith.constant 19 : i32
      %674 = arith.addi %5, %c19_i32_212 : i32
      %675 = arith.index_cast %674 : i32 to index
      %676 = memref.load %arg2[%675] : memref<256xi32, #tpu.memory_space<smem>>
      %677 = arith.index_cast %673 : i32 to index
      %c0_213 = arith.constant 0 : index
      %678 = vector.load %arg3[%677, %c0_213] : memref<2x384xf32, #tpu.memory_space<vmem>>, vector<1x384xf32>
      %c0_i32_214 = arith.constant 0 : i32
      %679 = arith.addi %676, %c0_i32_214 : i32
      %680 = vector.broadcast %679 : i32 to vector<1x384xi32>
      %681 = arith.cmpi eq, %2, %680 : vector<1x384xi32>
      %cst_215 = arith.constant 0.000000e+00 : f32
      %682 = vector.broadcast %cst_215 : f32 to vector<1x384xf32>
      %683 = arith.select %681, %678, %682 : vector<1x384xi1>, vector<1x384xf32>
      %cst_216 = arith.constant dense<0.000000e+00> : vector<1xf32>
      %684 = vector.multi_reduction <add>, %683, %cst_216 [1] : vector<1x384xf32> to vector<1xf32>
      %685 = vector.shape_cast %684 : vector<1xf32> to vector<1x1xf32>
      %686 = arith.index_cast %arg5 : i32 to index
      %c57 = arith.constant 57 : index
      %687 = vector.load %arg4[%686, %c57] : memref<8x96xf32, #tpu.memory_space<vmem>>, vector<1x1xf32>
      tpu.vector_store %arg4[%686, %c57], %685 {strides = array<i32>} : memref<8x96xf32, #tpu.memory_space<vmem>>, vector<1x1xf32>,
      %c1_i32_217 = arith.constant 1 : i32
      %688 = arith.addi %676, %c1_i32_217 : i32
      %689 = vector.broadcast %688 : i32 to vector<1x384xi32>
      %690 = arith.cmpi eq, %2, %689 : vector<1x384xi32>
      %cst_218 = arith.constant 0.000000e+00 : f32
      %691 = vector.broadcast %cst_218 : f32 to vector<1x384xf32>
      %692 = arith.select %690, %678, %691 : vector<1x384xi1>, vector<1x384xf32>
      %cst_219 = arith.constant dense<0.000000e+00> : vector<1xf32>
      %693 = vector.multi_reduction <add>, %692, %cst_219 [1] : vector<1x384xf32> to vector<1xf32>
      %694 = vector.shape_cast %693 : vector<1xf32> to vector<1x1xf32>
      %695 = arith.index_cast %arg5 : i32 to index
      %c58 = arith.constant 58 : index
      %696 = vector.load %arg4[%695, %c58] : memref<8x96xf32, #tpu.memory_space<vmem>>, vector<1x1xf32>
      tpu.vector_store %arg4[%695, %c58], %694 {strides = array<i32>} : memref<8x96xf32, #tpu.memory_space<vmem>>, vector<1x1xf32>,
      %c2_i32_220 = arith.constant 2 : i32
      %697 = arith.addi %676, %c2_i32_220 : i32
      %698 = vector.broadcast %697 : i32 to vector<1x384xi32>
      %699 = arith.cmpi eq, %2, %698 : vector<1x384xi32>
      %cst_221 = arith.constant 0.000000e+00 : f32
      %700 = vector.broadcast %cst_221 : f32 to vector<1x384xf32>
      %701 = arith.select %699, %678, %700 : vector<1x384xi1>, vector<1x384xf32>
      %cst_222 = arith.constant dense<0.000000e+00> : vector<1xf32>
      %702 = vector.multi_reduction <add>, %701, %cst_222 [1] : vector<1x384xf32> to vector<1xf32>
      %703 = vector.shape_cast %702 : vector<1xf32> to vector<1x1xf32>
      %704 = arith.index_cast %arg5 : i32 to index
      %c59 = arith.constant 59 : index
      %705 = vector.load %arg4[%704, %c59] : memref<8x96xf32, #tpu.memory_space<vmem>>, vector<1x1xf32>
      tpu.vector_store %arg4[%704, %c59], %703 {strides = array<i32>} : memref<8x96xf32, #tpu.memory_space<vmem>>, vector<1x1xf32>,
      %c20_i32 = arith.constant 20 : i32
      %706 = arith.addi %5, %c20_i32 : i32
      %707 = arith.index_cast %706 : i32 to index
      %708 = memref.load %arg1[%707] : memref<256xi32, #tpu.memory_space<smem>>
      %c20_i32_223 = arith.constant 20 : i32
      %709 = arith.addi %5, %c20_i32_223 : i32
      %710 = arith.index_cast %709 : i32 to index
      %711 = memref.load %arg2[%710] : memref<256xi32, #tpu.memory_space<smem>>
      %712 = arith.index_cast %708 : i32 to index
      %c0_224 = arith.constant 0 : index
      %713 = vector.load %arg3[%712, %c0_224] : memref<2x384xf32, #tpu.memory_space<vmem>>, vector<1x384xf32>
      %c0_i32_225 = arith.constant 0 : i32
      %714 = arith.addi %711, %c0_i32_225 : i32
      %715 = vector.broadcast %714 : i32 to vector<1x384xi32>
      %716 = arith.cmpi eq, %2, %715 : vector<1x384xi32>
      %cst_226 = arith.constant 0.000000e+00 : f32
      %717 = vector.broadcast %cst_226 : f32 to vector<1x384xf32>
      %718 = arith.select %716, %713, %717 : vector<1x384xi1>, vector<1x384xf32>
      %cst_227 = arith.constant dense<0.000000e+00> : vector<1xf32>
      %719 = vector.multi_reduction <add>, %718, %cst_227 [1] : vector<1x384xf32> to vector<1xf32>
      %720 = vector.shape_cast %719 : vector<1xf32> to vector<1x1xf32>
      %721 = arith.index_cast %arg5 : i32 to index
      %c60 = arith.constant 60 : index
      %722 = vector.load %arg4[%721, %c60] : memref<8x96xf32, #tpu.memory_space<vmem>>, vector<1x1xf32>
      tpu.vector_store %arg4[%721, %c60], %720 {strides = array<i32>} : memref<8x96xf32, #tpu.memory_space<vmem>>, vector<1x1xf32>,
      %c1_i32_228 = arith.constant 1 : i32
      %723 = arith.addi %711, %c1_i32_228 : i32
      %724 = vector.broadcast %723 : i32 to vector<1x384xi32>
      %725 = arith.cmpi eq, %2, %724 : vector<1x384xi32>
      %cst_229 = arith.constant 0.000000e+00 : f32
      %726 = vector.broadcast %cst_229 : f32 to vector<1x384xf32>
      %727 = arith.select %725, %713, %726 : vector<1x384xi1>, vector<1x384xf32>
      %cst_230 = arith.constant dense<0.000000e+00> : vector<1xf32>
      %728 = vector.multi_reduction <add>, %727, %cst_230 [1] : vector<1x384xf32> to vector<1xf32>
      %729 = vector.shape_cast %728 : vector<1xf32> to vector<1x1xf32>
      %730 = arith.index_cast %arg5 : i32 to index
      %c61 = arith.constant 61 : index
      %731 = vector.load %arg4[%730, %c61] : memref<8x96xf32, #tpu.memory_space<vmem>>, vector<1x1xf32>
      tpu.vector_store %arg4[%730, %c61], %729 {strides = array<i32>} : memref<8x96xf32, #tpu.memory_space<vmem>>, vector<1x1xf32>,
      %c2_i32_231 = arith.constant 2 : i32
      %732 = arith.addi %711, %c2_i32_231 : i32
      %733 = vector.broadcast %732 : i32 to vector<1x384xi32>
      %734 = arith.cmpi eq, %2, %733 : vector<1x384xi32>
      %cst_232 = arith.constant 0.000000e+00 : f32
      %735 = vector.broadcast %cst_232 : f32 to vector<1x384xf32>
      %736 = arith.select %734, %713, %735 : vector<1x384xi1>, vector<1x384xf32>
      %cst_233 = arith.constant dense<0.000000e+00> : vector<1xf32>
      %737 = vector.multi_reduction <add>, %736, %cst_233 [1] : vector<1x384xf32> to vector<1xf32>
      %738 = vector.shape_cast %737 : vector<1xf32> to vector<1x1xf32>
      %739 = arith.index_cast %arg5 : i32 to index
      %c62 = arith.constant 62 : index
      %740 = vector.load %arg4[%739, %c62] : memref<8x96xf32, #tpu.memory_space<vmem>>, vector<1x1xf32>
      tpu.vector_store %arg4[%739, %c62], %738 {strides = array<i32>} : memref<8x96xf32, #tpu.memory_space<vmem>>, vector<1x1xf32>,
      %c21_i32 = arith.constant 21 : i32
      %741 = arith.addi %5, %c21_i32 : i32
      %742 = arith.index_cast %741 : i32 to index
      %743 = memref.load %arg1[%742] : memref<256xi32, #tpu.memory_space<smem>>
      %c21_i32_234 = arith.constant 21 : i32
      %744 = arith.addi %5, %c21_i32_234 : i32
      %745 = arith.index_cast %744 : i32 to index
      %746 = memref.load %arg2[%745] : memref<256xi32, #tpu.memory_space<smem>>
      %747 = arith.index_cast %743 : i32 to index
      %c0_235 = arith.constant 0 : index
      %748 = vector.load %arg3[%747, %c0_235] : memref<2x384xf32, #tpu.memory_space<vmem>>, vector<1x384xf32>
      %c0_i32_236 = arith.constant 0 : i32
      %749 = arith.addi %746, %c0_i32_236 : i32
      %750 = vector.broadcast %749 : i32 to vector<1x384xi32>
      %751 = arith.cmpi eq, %2, %750 : vector<1x384xi32>
      %cst_237 = arith.constant 0.000000e+00 : f32
      %752 = vector.broadcast %cst_237 : f32 to vector<1x384xf32>
      %753 = arith.select %751, %748, %752 : vector<1x384xi1>, vector<1x384xf32>
      %cst_238 = arith.constant dense<0.000000e+00> : vector<1xf32>
      %754 = vector.multi_reduction <add>, %753, %cst_238 [1] : vector<1x384xf32> to vector<1xf32>
      %755 = vector.shape_cast %754 : vector<1xf32> to vector<1x1xf32>
      %756 = arith.index_cast %arg5 : i32 to index
      %c63 = arith.constant 63 : index
      %757 = vector.load %arg4[%756, %c63] : memref<8x96xf32, #tpu.memory_space<vmem>>, vector<1x1xf32>
      tpu.vector_store %arg4[%756, %c63], %755 {strides = array<i32>} : memref<8x96xf32, #tpu.memory_space<vmem>>, vector<1x1xf32>,
      %c1_i32_239 = arith.constant 1 : i32
      %758 = arith.addi %746, %c1_i32_239 : i32
      %759 = vector.broadcast %758 : i32 to vector<1x384xi32>
      %760 = arith.cmpi eq, %2, %759 : vector<1x384xi32>
      %cst_240 = arith.constant 0.000000e+00 : f32
      %761 = vector.broadcast %cst_240 : f32 to vector<1x384xf32>
      %762 = arith.select %760, %748, %761 : vector<1x384xi1>, vector<1x384xf32>
      %cst_241 = arith.constant dense<0.000000e+00> : vector<1xf32>
      %763 = vector.multi_reduction <add>, %762, %cst_241 [1] : vector<1x384xf32> to vector<1xf32>
      %764 = vector.shape_cast %763 : vector<1xf32> to vector<1x1xf32>
      %765 = arith.index_cast %arg5 : i32 to index
      %c64 = arith.constant 64 : index
      %766 = vector.load %arg4[%765, %c64] : memref<8x96xf32, #tpu.memory_space<vmem>>, vector<1x1xf32>
      tpu.vector_store %arg4[%765, %c64], %764 {strides = array<i32>} : memref<8x96xf32, #tpu.memory_space<vmem>>, vector<1x1xf32>,
      %c2_i32_242 = arith.constant 2 : i32
      %767 = arith.addi %746, %c2_i32_242 : i32
      %768 = vector.broadcast %767 : i32 to vector<1x384xi32>
      %769 = arith.cmpi eq, %2, %768 : vector<1x384xi32>
      %cst_243 = arith.constant 0.000000e+00 : f32
      %770 = vector.broadcast %cst_243 : f32 to vector<1x384xf32>
      %771 = arith.select %769, %748, %770 : vector<1x384xi1>, vector<1x384xf32>
      %cst_244 = arith.constant dense<0.000000e+00> : vector<1xf32>
      %772 = vector.multi_reduction <add>, %771, %cst_244 [1] : vector<1x384xf32> to vector<1xf32>
      %773 = vector.shape_cast %772 : vector<1xf32> to vector<1x1xf32>
      %774 = arith.index_cast %arg5 : i32 to index
      %c65 = arith.constant 65 : index
      %775 = vector.load %arg4[%774, %c65] : memref<8x96xf32, #tpu.memory_space<vmem>>, vector<1x1xf32>
      tpu.vector_store %arg4[%774, %c65], %773 {strides = array<i32>} : memref<8x96xf32, #tpu.memory_space<vmem>>, vector<1x1xf32>,
      %c22_i32 = arith.constant 22 : i32
      %776 = arith.addi %5, %c22_i32 : i32
      %777 = arith.index_cast %776 : i32 to index
      %778 = memref.load %arg1[%777] : memref<256xi32, #tpu.memory_space<smem>>
      %c22_i32_245 = arith.constant 22 : i32
      %779 = arith.addi %5, %c22_i32_245 : i32
      %780 = arith.index_cast %779 : i32 to index
      %781 = memref.load %arg2[%780] : memref<256xi32, #tpu.memory_space<smem>>
      %782 = arith.index_cast %778 : i32 to index
      %c0_246 = arith.constant 0 : index
      %783 = vector.load %arg3[%782, %c0_246] : memref<2x384xf32, #tpu.memory_space<vmem>>, vector<1x384xf32>
      %c0_i32_247 = arith.constant 0 : i32
      %784 = arith.addi %781, %c0_i32_247 : i32
      %785 = vector.broadcast %784 : i32 to vector<1x384xi32>
      %786 = arith.cmpi eq, %2, %785 : vector<1x384xi32>
      %cst_248 = arith.constant 0.000000e+00 : f32
      %787 = vector.broadcast %cst_248 : f32 to vector<1x384xf32>
      %788 = arith.select %786, %783, %787 : vector<1x384xi1>, vector<1x384xf32>
      %cst_249 = arith.constant dense<0.000000e+00> : vector<1xf32>
      %789 = vector.multi_reduction <add>, %788, %cst_249 [1] : vector<1x384xf32> to vector<1xf32>
      %790 = vector.shape_cast %789 : vector<1xf32> to vector<1x1xf32>
      %791 = arith.index_cast %arg5 : i32 to index
      %c66 = arith.constant 66 : index
      %792 = vector.load %arg4[%791, %c66] : memref<8x96xf32, #tpu.memory_space<vmem>>, vector<1x1xf32>
      tpu.vector_store %arg4[%791, %c66], %790 {strides = array<i32>} : memref<8x96xf32, #tpu.memory_space<vmem>>, vector<1x1xf32>,
      %c1_i32_250 = arith.constant 1 : i32
      %793 = arith.addi %781, %c1_i32_250 : i32
      %794 = vector.broadcast %793 : i32 to vector<1x384xi32>
      %795 = arith.cmpi eq, %2, %794 : vector<1x384xi32>
      %cst_251 = arith.constant 0.000000e+00 : f32
      %796 = vector.broadcast %cst_251 : f32 to vector<1x384xf32>
      %797 = arith.select %795, %783, %796 : vector<1x384xi1>, vector<1x384xf32>
      %cst_252 = arith.constant dense<0.000000e+00> : vector<1xf32>
      %798 = vector.multi_reduction <add>, %797, %cst_252 [1] : vector<1x384xf32> to vector<1xf32>
      %799 = vector.shape_cast %798 : vector<1xf32> to vector<1x1xf32>
      %800 = arith.index_cast %arg5 : i32 to index
      %c67 = arith.constant 67 : index
      %801 = vector.load %arg4[%800, %c67] : memref<8x96xf32, #tpu.memory_space<vmem>>, vector<1x1xf32>
      tpu.vector_store %arg4[%800, %c67], %799 {strides = array<i32>} : memref<8x96xf32, #tpu.memory_space<vmem>>, vector<1x1xf32>,
      %c2_i32_253 = arith.constant 2 : i32
      %802 = arith.addi %781, %c2_i32_253 : i32
      %803 = vector.broadcast %802 : i32 to vector<1x384xi32>
      %804 = arith.cmpi eq, %2, %803 : vector<1x384xi32>
      %cst_254 = arith.constant 0.000000e+00 : f32
      %805 = vector.broadcast %cst_254 : f32 to vector<1x384xf32>
      %806 = arith.select %804, %783, %805 : vector<1x384xi1>, vector<1x384xf32>
      %cst_255 = arith.constant dense<0.000000e+00> : vector<1xf32>
      %807 = vector.multi_reduction <add>, %806, %cst_255 [1] : vector<1x384xf32> to vector<1xf32>
      %808 = vector.shape_cast %807 : vector<1xf32> to vector<1x1xf32>
      %809 = arith.index_cast %arg5 : i32 to index
      %c68 = arith.constant 68 : index
      %810 = vector.load %arg4[%809, %c68] : memref<8x96xf32, #tpu.memory_space<vmem>>, vector<1x1xf32>
      tpu.vector_store %arg4[%809, %c68], %808 {strides = array<i32>} : memref<8x96xf32, #tpu.memory_space<vmem>>, vector<1x1xf32>,
      %c23_i32 = arith.constant 23 : i32
      %811 = arith.addi %5, %c23_i32 : i32
      %812 = arith.index_cast %811 : i32 to index
      %813 = memref.load %arg1[%812] : memref<256xi32, #tpu.memory_space<smem>>
      %c23_i32_256 = arith.constant 23 : i32
      %814 = arith.addi %5, %c23_i32_256 : i32
      %815 = arith.index_cast %814 : i32 to index
      %816 = memref.load %arg2[%815] : memref<256xi32, #tpu.memory_space<smem>>
      %817 = arith.index_cast %813 : i32 to index
      %c0_257 = arith.constant 0 : index
      %818 = vector.load %arg3[%817, %c0_257] : memref<2x384xf32, #tpu.memory_space<vmem>>, vector<1x384xf32>
      %c0_i32_258 = arith.constant 0 : i32
      %819 = arith.addi %816, %c0_i32_258 : i32
      %820 = vector.broadcast %819 : i32 to vector<1x384xi32>
      %821 = arith.cmpi eq, %2, %820 : vector<1x384xi32>
      %cst_259 = arith.constant 0.000000e+00 : f32
      %822 = vector.broadcast %cst_259 : f32 to vector<1x384xf32>
      %823 = arith.select %821, %818, %822 : vector<1x384xi1>, vector<1x384xf32>
      %cst_260 = arith.constant dense<0.000000e+00> : vector<1xf32>
      %824 = vector.multi_reduction <add>, %823, %cst_260 [1] : vector<1x384xf32> to vector<1xf32>
      %825 = vector.shape_cast %824 : vector<1xf32> to vector<1x1xf32>
      %826 = arith.index_cast %arg5 : i32 to index
      %c69 = arith.constant 69 : index
      %827 = vector.load %arg4[%826, %c69] : memref<8x96xf32, #tpu.memory_space<vmem>>, vector<1x1xf32>
      tpu.vector_store %arg4[%826, %c69], %825 {strides = array<i32>} : memref<8x96xf32, #tpu.memory_space<vmem>>, vector<1x1xf32>,
      %c1_i32_261 = arith.constant 1 : i32
      %828 = arith.addi %816, %c1_i32_261 : i32
      %829 = vector.broadcast %828 : i32 to vector<1x384xi32>
      %830 = arith.cmpi eq, %2, %829 : vector<1x384xi32>
      %cst_262 = arith.constant 0.000000e+00 : f32
      %831 = vector.broadcast %cst_262 : f32 to vector<1x384xf32>
      %832 = arith.select %830, %818, %831 : vector<1x384xi1>, vector<1x384xf32>
      %cst_263 = arith.constant dense<0.000000e+00> : vector<1xf32>
      %833 = vector.multi_reduction <add>, %832, %cst_263 [1] : vector<1x384xf32> to vector<1xf32>
      %834 = vector.shape_cast %833 : vector<1xf32> to vector<1x1xf32>
      %835 = arith.index_cast %arg5 : i32 to index
      %c70 = arith.constant 70 : index
      %836 = vector.load %arg4[%835, %c70] : memref<8x96xf32, #tpu.memory_space<vmem>>, vector<1x1xf32>
      tpu.vector_store %arg4[%835, %c70], %834 {strides = array<i32>} : memref<8x96xf32, #tpu.memory_space<vmem>>, vector<1x1xf32>,
      %c2_i32_264 = arith.constant 2 : i32
      %837 = arith.addi %816, %c2_i32_264 : i32
      %838 = vector.broadcast %837 : i32 to vector<1x384xi32>
      %839 = arith.cmpi eq, %2, %838 : vector<1x384xi32>
      %cst_265 = arith.constant 0.000000e+00 : f32
      %840 = vector.broadcast %cst_265 : f32 to vector<1x384xf32>
      %841 = arith.select %839, %818, %840 : vector<1x384xi1>, vector<1x384xf32>
      %cst_266 = arith.constant dense<0.000000e+00> : vector<1xf32>
      %842 = vector.multi_reduction <add>, %841, %cst_266 [1] : vector<1x384xf32> to vector<1xf32>
      %843 = vector.shape_cast %842 : vector<1xf32> to vector<1x1xf32>
      %844 = arith.index_cast %arg5 : i32 to index
      %c71 = arith.constant 71 : index
      %845 = vector.load %arg4[%844, %c71] : memref<8x96xf32, #tpu.memory_space<vmem>>, vector<1x1xf32>
      tpu.vector_store %arg4[%844, %c71], %843 {strides = array<i32>} : memref<8x96xf32, #tpu.memory_space<vmem>>, vector<1x1xf32>,
      %c24_i32 = arith.constant 24 : i32
      %846 = arith.addi %5, %c24_i32 : i32
      %847 = arith.index_cast %846 : i32 to index
      %848 = memref.load %arg1[%847] : memref<256xi32, #tpu.memory_space<smem>>
      %c24_i32_267 = arith.constant 24 : i32
      %849 = arith.addi %5, %c24_i32_267 : i32
      %850 = arith.index_cast %849 : i32 to index
      %851 = memref.load %arg2[%850] : memref<256xi32, #tpu.memory_space<smem>>
      %852 = arith.index_cast %848 : i32 to index
      %c0_268 = arith.constant 0 : index
      %853 = vector.load %arg3[%852, %c0_268] : memref<2x384xf32, #tpu.memory_space<vmem>>, vector<1x384xf32>
      %c0_i32_269 = arith.constant 0 : i32
      %854 = arith.addi %851, %c0_i32_269 : i32
      %855 = vector.broadcast %854 : i32 to vector<1x384xi32>
      %856 = arith.cmpi eq, %2, %855 : vector<1x384xi32>
      %cst_270 = arith.constant 0.000000e+00 : f32
      %857 = vector.broadcast %cst_270 : f32 to vector<1x384xf32>
      %858 = arith.select %856, %853, %857 : vector<1x384xi1>, vector<1x384xf32>
      %cst_271 = arith.constant dense<0.000000e+00> : vector<1xf32>
      %859 = vector.multi_reduction <add>, %858, %cst_271 [1] : vector<1x384xf32> to vector<1xf32>
      %860 = vector.shape_cast %859 : vector<1xf32> to vector<1x1xf32>
      %861 = arith.index_cast %arg5 : i32 to index
      %c72 = arith.constant 72 : index
      %862 = vector.load %arg4[%861, %c72] : memref<8x96xf32, #tpu.memory_space<vmem>>, vector<1x1xf32>
      tpu.vector_store %arg4[%861, %c72], %860 {strides = array<i32>} : memref<8x96xf32, #tpu.memory_space<vmem>>, vector<1x1xf32>,
      %c1_i32_272 = arith.constant 1 : i32
      %863 = arith.addi %851, %c1_i32_272 : i32
      %864 = vector.broadcast %863 : i32 to vector<1x384xi32>
      %865 = arith.cmpi eq, %2, %864 : vector<1x384xi32>
      %cst_273 = arith.constant 0.000000e+00 : f32
      %866 = vector.broadcast %cst_273 : f32 to vector<1x384xf32>
      %867 = arith.select %865, %853, %866 : vector<1x384xi1>, vector<1x384xf32>
      %cst_274 = arith.constant dense<0.000000e+00> : vector<1xf32>
      %868 = vector.multi_reduction <add>, %867, %cst_274 [1] : vector<1x384xf32> to vector<1xf32>
      %869 = vector.shape_cast %868 : vector<1xf32> to vector<1x1xf32>
      %870 = arith.index_cast %arg5 : i32 to index
      %c73 = arith.constant 73 : index
      %871 = vector.load %arg4[%870, %c73] : memref<8x96xf32, #tpu.memory_space<vmem>>, vector<1x1xf32>
      tpu.vector_store %arg4[%870, %c73], %869 {strides = array<i32>} : memref<8x96xf32, #tpu.memory_space<vmem>>, vector<1x1xf32>,
      %c2_i32_275 = arith.constant 2 : i32
      %872 = arith.addi %851, %c2_i32_275 : i32
      %873 = vector.broadcast %872 : i32 to vector<1x384xi32>
      %874 = arith.cmpi eq, %2, %873 : vector<1x384xi32>
      %cst_276 = arith.constant 0.000000e+00 : f32
      %875 = vector.broadcast %cst_276 : f32 to vector<1x384xf32>
      %876 = arith.select %874, %853, %875 : vector<1x384xi1>, vector<1x384xf32>
      %cst_277 = arith.constant dense<0.000000e+00> : vector<1xf32>
      %877 = vector.multi_reduction <add>, %876, %cst_277 [1] : vector<1x384xf32> to vector<1xf32>
      %878 = vector.shape_cast %877 : vector<1xf32> to vector<1x1xf32>
      %879 = arith.index_cast %arg5 : i32 to index
      %c74 = arith.constant 74 : index
      %880 = vector.load %arg4[%879, %c74] : memref<8x96xf32, #tpu.memory_space<vmem>>, vector<1x1xf32>
      tpu.vector_store %arg4[%879, %c74], %878 {strides = array<i32>} : memref<8x96xf32, #tpu.memory_space<vmem>>, vector<1x1xf32>,
      %c25_i32 = arith.constant 25 : i32
      %881 = arith.addi %5, %c25_i32 : i32
      %882 = arith.index_cast %881 : i32 to index
      %883 = memref.load %arg1[%882] : memref<256xi32, #tpu.memory_space<smem>>
      %c25_i32_278 = arith.constant 25 : i32
      %884 = arith.addi %5, %c25_i32_278 : i32
      %885 = arith.index_cast %884 : i32 to index
      %886 = memref.load %arg2[%885] : memref<256xi32, #tpu.memory_space<smem>>
      %887 = arith.index_cast %883 : i32 to index
      %c0_279 = arith.constant 0 : index
      %888 = vector.load %arg3[%887, %c0_279] : memref<2x384xf32, #tpu.memory_space<vmem>>, vector<1x384xf32>
      %c0_i32_280 = arith.constant 0 : i32
      %889 = arith.addi %886, %c0_i32_280 : i32
      %890 = vector.broadcast %889 : i32 to vector<1x384xi32>
      %891 = arith.cmpi eq, %2, %890 : vector<1x384xi32>
      %cst_281 = arith.constant 0.000000e+00 : f32
      %892 = vector.broadcast %cst_281 : f32 to vector<1x384xf32>
      %893 = arith.select %891, %888, %892 : vector<1x384xi1>, vector<1x384xf32>
      %cst_282 = arith.constant dense<0.000000e+00> : vector<1xf32>
      %894 = vector.multi_reduction <add>, %893, %cst_282 [1] : vector<1x384xf32> to vector<1xf32>
      %895 = vector.shape_cast %894 : vector<1xf32> to vector<1x1xf32>
      %896 = arith.index_cast %arg5 : i32 to index
      %c75 = arith.constant 75 : index
      %897 = vector.load %arg4[%896, %c75] : memref<8x96xf32, #tpu.memory_space<vmem>>, vector<1x1xf32>
      tpu.vector_store %arg4[%896, %c75], %895 {strides = array<i32>} : memref<8x96xf32, #tpu.memory_space<vmem>>, vector<1x1xf32>,
      %c1_i32_283 = arith.constant 1 : i32
      %898 = arith.addi %886, %c1_i32_283 : i32
      %899 = vector.broadcast %898 : i32 to vector<1x384xi32>
      %900 = arith.cmpi eq, %2, %899 : vector<1x384xi32>
      %cst_284 = arith.constant 0.000000e+00 : f32
      %901 = vector.broadcast %cst_284 : f32 to vector<1x384xf32>
      %902 = arith.select %900, %888, %901 : vector<1x384xi1>, vector<1x384xf32>
      %cst_285 = arith.constant dense<0.000000e+00> : vector<1xf32>
      %903 = vector.multi_reduction <add>, %902, %cst_285 [1] : vector<1x384xf32> to vector<1xf32>
      %904 = vector.shape_cast %903 : vector<1xf32> to vector<1x1xf32>
      %905 = arith.index_cast %arg5 : i32 to index
      %c76 = arith.constant 76 : index
      %906 = vector.load %arg4[%905, %c76] : memref<8x96xf32, #tpu.memory_space<vmem>>, vector<1x1xf32>
      tpu.vector_store %arg4[%905, %c76], %904 {strides = array<i32>} : memref<8x96xf32, #tpu.memory_space<vmem>>, vector<1x1xf32>,
      %c2_i32_286 = arith.constant 2 : i32
      %907 = arith.addi %886, %c2_i32_286 : i32
      %908 = vector.broadcast %907 : i32 to vector<1x384xi32>
      %909 = arith.cmpi eq, %2, %908 : vector<1x384xi32>
      %cst_287 = arith.constant 0.000000e+00 : f32
      %910 = vector.broadcast %cst_287 : f32 to vector<1x384xf32>
      %911 = arith.select %909, %888, %910 : vector<1x384xi1>, vector<1x384xf32>
      %cst_288 = arith.constant dense<0.000000e+00> : vector<1xf32>
      %912 = vector.multi_reduction <add>, %911, %cst_288 [1] : vector<1x384xf32> to vector<1xf32>
      %913 = vector.shape_cast %912 : vector<1xf32> to vector<1x1xf32>
      %914 = arith.index_cast %arg5 : i32 to index
      %c77 = arith.constant 77 : index
      %915 = vector.load %arg4[%914, %c77] : memref<8x96xf32, #tpu.memory_space<vmem>>, vector<1x1xf32>
      tpu.vector_store %arg4[%914, %c77], %913 {strides = array<i32>} : memref<8x96xf32, #tpu.memory_space<vmem>>, vector<1x1xf32>,
      %c26_i32 = arith.constant 26 : i32
      %916 = arith.addi %5, %c26_i32 : i32
      %917 = arith.index_cast %916 : i32 to index
      %918 = memref.load %arg1[%917] : memref<256xi32, #tpu.memory_space<smem>>
      %c26_i32_289 = arith.constant 26 : i32
      %919 = arith.addi %5, %c26_i32_289 : i32
      %920 = arith.index_cast %919 : i32 to index
      %921 = memref.load %arg2[%920] : memref<256xi32, #tpu.memory_space<smem>>
      %922 = arith.index_cast %918 : i32 to index
      %c0_290 = arith.constant 0 : index
      %923 = vector.load %arg3[%922, %c0_290] : memref<2x384xf32, #tpu.memory_space<vmem>>, vector<1x384xf32>
      %c0_i32_291 = arith.constant 0 : i32
      %924 = arith.addi %921, %c0_i32_291 : i32
      %925 = vector.broadcast %924 : i32 to vector<1x384xi32>
      %926 = arith.cmpi eq, %2, %925 : vector<1x384xi32>
      %cst_292 = arith.constant 0.000000e+00 : f32
      %927 = vector.broadcast %cst_292 : f32 to vector<1x384xf32>
      %928 = arith.select %926, %923, %927 : vector<1x384xi1>, vector<1x384xf32>
      %cst_293 = arith.constant dense<0.000000e+00> : vector<1xf32>
      %929 = vector.multi_reduction <add>, %928, %cst_293 [1] : vector<1x384xf32> to vector<1xf32>
      %930 = vector.shape_cast %929 : vector<1xf32> to vector<1x1xf32>
      %931 = arith.index_cast %arg5 : i32 to index
      %c78 = arith.constant 78 : index
      %932 = vector.load %arg4[%931, %c78] : memref<8x96xf32, #tpu.memory_space<vmem>>, vector<1x1xf32>
      tpu.vector_store %arg4[%931, %c78], %930 {strides = array<i32>} : memref<8x96xf32, #tpu.memory_space<vmem>>, vector<1x1xf32>,
      %c1_i32_294 = arith.constant 1 : i32
      %933 = arith.addi %921, %c1_i32_294 : i32
      %934 = vector.broadcast %933 : i32 to vector<1x384xi32>
      %935 = arith.cmpi eq, %2, %934 : vector<1x384xi32>
      %cst_295 = arith.constant 0.000000e+00 : f32
      %936 = vector.broadcast %cst_295 : f32 to vector<1x384xf32>
      %937 = arith.select %935, %923, %936 : vector<1x384xi1>, vector<1x384xf32>
      %cst_296 = arith.constant dense<0.000000e+00> : vector<1xf32>
      %938 = vector.multi_reduction <add>, %937, %cst_296 [1] : vector<1x384xf32> to vector<1xf32>
      %939 = vector.shape_cast %938 : vector<1xf32> to vector<1x1xf32>
      %940 = arith.index_cast %arg5 : i32 to index
      %c79 = arith.constant 79 : index
      %941 = vector.load %arg4[%940, %c79] : memref<8x96xf32, #tpu.memory_space<vmem>>, vector<1x1xf32>
      tpu.vector_store %arg4[%940, %c79], %939 {strides = array<i32>} : memref<8x96xf32, #tpu.memory_space<vmem>>, vector<1x1xf32>,
      %c2_i32_297 = arith.constant 2 : i32
      %942 = arith.addi %921, %c2_i32_297 : i32
      %943 = vector.broadcast %942 : i32 to vector<1x384xi32>
      %944 = arith.cmpi eq, %2, %943 : vector<1x384xi32>
      %cst_298 = arith.constant 0.000000e+00 : f32
      %945 = vector.broadcast %cst_298 : f32 to vector<1x384xf32>
      %946 = arith.select %944, %923, %945 : vector<1x384xi1>, vector<1x384xf32>
      %cst_299 = arith.constant dense<0.000000e+00> : vector<1xf32>
      %947 = vector.multi_reduction <add>, %946, %cst_299 [1] : vector<1x384xf32> to vector<1xf32>
      %948 = vector.shape_cast %947 : vector<1xf32> to vector<1x1xf32>
      %949 = arith.index_cast %arg5 : i32 to index
      %c80 = arith.constant 80 : index
      %950 = vector.load %arg4[%949, %c80] : memref<8x96xf32, #tpu.memory_space<vmem>>, vector<1x1xf32>
      tpu.vector_store %arg4[%949, %c80], %948 {strides = array<i32>} : memref<8x96xf32, #tpu.memory_space<vmem>>, vector<1x1xf32>,
      %c27_i32 = arith.constant 27 : i32
      %951 = arith.addi %5, %c27_i32 : i32
      %952 = arith.index_cast %951 : i32 to index
      %953 = memref.load %arg1[%952] : memref<256xi32, #tpu.memory_space<smem>>
      %c27_i32_300 = arith.constant 27 : i32
      %954 = arith.addi %5, %c27_i32_300 : i32
      %955 = arith.index_cast %954 : i32 to index
      %956 = memref.load %arg2[%955] : memref<256xi32, #tpu.memory_space<smem>>
      %957 = arith.index_cast %953 : i32 to index
      %c0_301 = arith.constant 0 : index
      %958 = vector.load %arg3[%957, %c0_301] : memref<2x384xf32, #tpu.memory_space<vmem>>, vector<1x384xf32>
      %c0_i32_302 = arith.constant 0 : i32
      %959 = arith.addi %956, %c0_i32_302 : i32
      %960 = vector.broadcast %959 : i32 to vector<1x384xi32>
      %961 = arith.cmpi eq, %2, %960 : vector<1x384xi32>
      %cst_303 = arith.constant 0.000000e+00 : f32
      %962 = vector.broadcast %cst_303 : f32 to vector<1x384xf32>
      %963 = arith.select %961, %958, %962 : vector<1x384xi1>, vector<1x384xf32>
      %cst_304 = arith.constant dense<0.000000e+00> : vector<1xf32>
      %964 = vector.multi_reduction <add>, %963, %cst_304 [1] : vector<1x384xf32> to vector<1xf32>
      %965 = vector.shape_cast %964 : vector<1xf32> to vector<1x1xf32>
      %966 = arith.index_cast %arg5 : i32 to index
      %c81 = arith.constant 81 : index
      %967 = vector.load %arg4[%966, %c81] : memref<8x96xf32, #tpu.memory_space<vmem>>, vector<1x1xf32>
      tpu.vector_store %arg4[%966, %c81], %965 {strides = array<i32>} : memref<8x96xf32, #tpu.memory_space<vmem>>, vector<1x1xf32>,
      %c1_i32_305 = arith.constant 1 : i32
      %968 = arith.addi %956, %c1_i32_305 : i32
      %969 = vector.broadcast %968 : i32 to vector<1x384xi32>
      %970 = arith.cmpi eq, %2, %969 : vector<1x384xi32>
      %cst_306 = arith.constant 0.000000e+00 : f32
      %971 = vector.broadcast %cst_306 : f32 to vector<1x384xf32>
      %972 = arith.select %970, %958, %971 : vector<1x384xi1>, vector<1x384xf32>
      %cst_307 = arith.constant dense<0.000000e+00> : vector<1xf32>
      %973 = vector.multi_reduction <add>, %972, %cst_307 [1] : vector<1x384xf32> to vector<1xf32>
      %974 = vector.shape_cast %973 : vector<1xf32> to vector<1x1xf32>
      %975 = arith.index_cast %arg5 : i32 to index
      %c82 = arith.constant 82 : index
      %976 = vector.load %arg4[%975, %c82] : memref<8x96xf32, #tpu.memory_space<vmem>>, vector<1x1xf32>
      tpu.vector_store %arg4[%975, %c82], %974 {strides = array<i32>} : memref<8x96xf32, #tpu.memory_space<vmem>>, vector<1x1xf32>,
      %c2_i32_308 = arith.constant 2 : i32
      %977 = arith.addi %956, %c2_i32_308 : i32
      %978 = vector.broadcast %977 : i32 to vector<1x384xi32>
      %979 = arith.cmpi eq, %2, %978 : vector<1x384xi32>
      %cst_309 = arith.constant 0.000000e+00 : f32
      %980 = vector.broadcast %cst_309 : f32 to vector<1x384xf32>
      %981 = arith.select %979, %958, %980 : vector<1x384xi1>, vector<1x384xf32>
      %cst_310 = arith.constant dense<0.000000e+00> : vector<1xf32>
      %982 = vector.multi_reduction <add>, %981, %cst_310 [1] : vector<1x384xf32> to vector<1xf32>
      %983 = vector.shape_cast %982 : vector<1xf32> to vector<1x1xf32>
      %984 = arith.index_cast %arg5 : i32 to index
      %c83 = arith.constant 83 : index
      %985 = vector.load %arg4[%984, %c83] : memref<8x96xf32, #tpu.memory_space<vmem>>, vector<1x1xf32>
      tpu.vector_store %arg4[%984, %c83], %983 {strides = array<i32>} : memref<8x96xf32, #tpu.memory_space<vmem>>, vector<1x1xf32>,
      %c28_i32 = arith.constant 28 : i32
      %986 = arith.addi %5, %c28_i32 : i32
      %987 = arith.index_cast %986 : i32 to index
      %988 = memref.load %arg1[%987] : memref<256xi32, #tpu.memory_space<smem>>
      %c28_i32_311 = arith.constant 28 : i32
      %989 = arith.addi %5, %c28_i32_311 : i32
      %990 = arith.index_cast %989 : i32 to index
      %991 = memref.load %arg2[%990] : memref<256xi32, #tpu.memory_space<smem>>
      %992 = arith.index_cast %988 : i32 to index
      %c0_312 = arith.constant 0 : index
      %993 = vector.load %arg3[%992, %c0_312] : memref<2x384xf32, #tpu.memory_space<vmem>>, vector<1x384xf32>
      %c0_i32_313 = arith.constant 0 : i32
      %994 = arith.addi %991, %c0_i32_313 : i32
      %995 = vector.broadcast %994 : i32 to vector<1x384xi32>
      %996 = arith.cmpi eq, %2, %995 : vector<1x384xi32>
      %cst_314 = arith.constant 0.000000e+00 : f32
      %997 = vector.broadcast %cst_314 : f32 to vector<1x384xf32>
      %998 = arith.select %996, %993, %997 : vector<1x384xi1>, vector<1x384xf32>
      %cst_315 = arith.constant dense<0.000000e+00> : vector<1xf32>
      %999 = vector.multi_reduction <add>, %998, %cst_315 [1] : vector<1x384xf32> to vector<1xf32>
      %1000 = vector.shape_cast %999 : vector<1xf32> to vector<1x1xf32>
      %1001 = arith.index_cast %arg5 : i32 to index
      %c84 = arith.constant 84 : index
      %1002 = vector.load %arg4[%1001, %c84] : memref<8x96xf32, #tpu.memory_space<vmem>>, vector<1x1xf32>
      tpu.vector_store %arg4[%1001, %c84], %1000 {strides = array<i32>} : memref<8x96xf32, #tpu.memory_space<vmem>>, vector<1x1xf32>,
      %c1_i32_316 = arith.constant 1 : i32
      %1003 = arith.addi %991, %c1_i32_316 : i32
      %1004 = vector.broadcast %1003 : i32 to vector<1x384xi32>
      %1005 = arith.cmpi eq, %2, %1004 : vector<1x384xi32>
      %cst_317 = arith.constant 0.000000e+00 : f32
      %1006 = vector.broadcast %cst_317 : f32 to vector<1x384xf32>
      %1007 = arith.select %1005, %993, %1006 : vector<1x384xi1>, vector<1x384xf32>
      %cst_318 = arith.constant dense<0.000000e+00> : vector<1xf32>
      %1008 = vector.multi_reduction <add>, %1007, %cst_318 [1] : vector<1x384xf32> to vector<1xf32>
      %1009 = vector.shape_cast %1008 : vector<1xf32> to vector<1x1xf32>
      %1010 = arith.index_cast %arg5 : i32 to index
      %c85 = arith.constant 85 : index
      %1011 = vector.load %arg4[%1010, %c85] : memref<8x96xf32, #tpu.memory_space<vmem>>, vector<1x1xf32>
      tpu.vector_store %arg4[%1010, %c85], %1009 {strides = array<i32>} : memref<8x96xf32, #tpu.memory_space<vmem>>, vector<1x1xf32>,
      %c2_i32_319 = arith.constant 2 : i32
      %1012 = arith.addi %991, %c2_i32_319 : i32
      %1013 = vector.broadcast %1012 : i32 to vector<1x384xi32>
      %1014 = arith.cmpi eq, %2, %1013 : vector<1x384xi32>
      %cst_320 = arith.constant 0.000000e+00 : f32
      %1015 = vector.broadcast %cst_320 : f32 to vector<1x384xf32>
      %1016 = arith.select %1014, %993, %1015 : vector<1x384xi1>, vector<1x384xf32>
      %cst_321 = arith.constant dense<0.000000e+00> : vector<1xf32>
      %1017 = vector.multi_reduction <add>, %1016, %cst_321 [1] : vector<1x384xf32> to vector<1xf32>
      %1018 = vector.shape_cast %1017 : vector<1xf32> to vector<1x1xf32>
      %1019 = arith.index_cast %arg5 : i32 to index
      %c86 = arith.constant 86 : index
      %1020 = vector.load %arg4[%1019, %c86] : memref<8x96xf32, #tpu.memory_space<vmem>>, vector<1x1xf32>
      tpu.vector_store %arg4[%1019, %c86], %1018 {strides = array<i32>} : memref<8x96xf32, #tpu.memory_space<vmem>>, vector<1x1xf32>,
      %c29_i32 = arith.constant 29 : i32
      %1021 = arith.addi %5, %c29_i32 : i32
      %1022 = arith.index_cast %1021 : i32 to index
      %1023 = memref.load %arg1[%1022] : memref<256xi32, #tpu.memory_space<smem>>
      %c29_i32_322 = arith.constant 29 : i32
      %1024 = arith.addi %5, %c29_i32_322 : i32
      %1025 = arith.index_cast %1024 : i32 to index
      %1026 = memref.load %arg2[%1025] : memref<256xi32, #tpu.memory_space<smem>>
      %1027 = arith.index_cast %1023 : i32 to index
      %c0_323 = arith.constant 0 : index
      %1028 = vector.load %arg3[%1027, %c0_323] : memref<2x384xf32, #tpu.memory_space<vmem>>, vector<1x384xf32>
      %c0_i32_324 = arith.constant 0 : i32
      %1029 = arith.addi %1026, %c0_i32_324 : i32
      %1030 = vector.broadcast %1029 : i32 to vector<1x384xi32>
      %1031 = arith.cmpi eq, %2, %1030 : vector<1x384xi32>
      %cst_325 = arith.constant 0.000000e+00 : f32
      %1032 = vector.broadcast %cst_325 : f32 to vector<1x384xf32>
      %1033 = arith.select %1031, %1028, %1032 : vector<1x384xi1>, vector<1x384xf32>
      %cst_326 = arith.constant dense<0.000000e+00> : vector<1xf32>
      %1034 = vector.multi_reduction <add>, %1033, %cst_326 [1] : vector<1x384xf32> to vector<1xf32>
      %1035 = vector.shape_cast %1034 : vector<1xf32> to vector<1x1xf32>
      %1036 = arith.index_cast %arg5 : i32 to index
      %c87 = arith.constant 87 : index
      %1037 = vector.load %arg4[%1036, %c87] : memref<8x96xf32, #tpu.memory_space<vmem>>, vector<1x1xf32>
      tpu.vector_store %arg4[%1036, %c87], %1035 {strides = array<i32>} : memref<8x96xf32, #tpu.memory_space<vmem>>, vector<1x1xf32>,
      %c1_i32_327 = arith.constant 1 : i32
      %1038 = arith.addi %1026, %c1_i32_327 : i32
      %1039 = vector.broadcast %1038 : i32 to vector<1x384xi32>
      %1040 = arith.cmpi eq, %2, %1039 : vector<1x384xi32>
      %cst_328 = arith.constant 0.000000e+00 : f32
      %1041 = vector.broadcast %cst_328 : f32 to vector<1x384xf32>
      %1042 = arith.select %1040, %1028, %1041 : vector<1x384xi1>, vector<1x384xf32>
      %cst_329 = arith.constant dense<0.000000e+00> : vector<1xf32>
      %1043 = vector.multi_reduction <add>, %1042, %cst_329 [1] : vector<1x384xf32> to vector<1xf32>
      %1044 = vector.shape_cast %1043 : vector<1xf32> to vector<1x1xf32>
      %1045 = arith.index_cast %arg5 : i32 to index
      %c88 = arith.constant 88 : index
      %1046 = vector.load %arg4[%1045, %c88] : memref<8x96xf32, #tpu.memory_space<vmem>>, vector<1x1xf32>
      tpu.vector_store %arg4[%1045, %c88], %1044 {strides = array<i32>} : memref<8x96xf32, #tpu.memory_space<vmem>>, vector<1x1xf32>,
      %c2_i32_330 = arith.constant 2 : i32
      %1047 = arith.addi %1026, %c2_i32_330 : i32
      %1048 = vector.broadcast %1047 : i32 to vector<1x384xi32>
      %1049 = arith.cmpi eq, %2, %1048 : vector<1x384xi32>
      %cst_331 = arith.constant 0.000000e+00 : f32
      %1050 = vector.broadcast %cst_331 : f32 to vector<1x384xf32>
      %1051 = arith.select %1049, %1028, %1050 : vector<1x384xi1>, vector<1x384xf32>
      %cst_332 = arith.constant dense<0.000000e+00> : vector<1xf32>
      %1052 = vector.multi_reduction <add>, %1051, %cst_332 [1] : vector<1x384xf32> to vector<1xf32>
      %1053 = vector.shape_cast %1052 : vector<1xf32> to vector<1x1xf32>
      %1054 = arith.index_cast %arg5 : i32 to index
      %c89 = arith.constant 89 : index
      %1055 = vector.load %arg4[%1054, %c89] : memref<8x96xf32, #tpu.memory_space<vmem>>, vector<1x1xf32>
      tpu.vector_store %arg4[%1054, %c89], %1053 {strides = array<i32>} : memref<8x96xf32, #tpu.memory_space<vmem>>, vector<1x1xf32>,
      %c30_i32 = arith.constant 30 : i32
      %1056 = arith.addi %5, %c30_i32 : i32
      %1057 = arith.index_cast %1056 : i32 to index
      %1058 = memref.load %arg1[%1057] : memref<256xi32, #tpu.memory_space<smem>>
      %c30_i32_333 = arith.constant 30 : i32
      %1059 = arith.addi %5, %c30_i32_333 : i32
      %1060 = arith.index_cast %1059 : i32 to index
      %1061 = memref.load %arg2[%1060] : memref<256xi32, #tpu.memory_space<smem>>
      %1062 = arith.index_cast %1058 : i32 to index
      %c0_334 = arith.constant 0 : index
      %1063 = vector.load %arg3[%1062, %c0_334] : memref<2x384xf32, #tpu.memory_space<vmem>>, vector<1x384xf32>
      %c0_i32_335 = arith.constant 0 : i32
      %1064 = arith.addi %1061, %c0_i32_335 : i32
      %1065 = vector.broadcast %1064 : i32 to vector<1x384xi32>
      %1066 = arith.cmpi eq, %2, %1065 : vector<1x384xi32>
      %cst_336 = arith.constant 0.000000e+00 : f32
      %1067 = vector.broadcast %cst_336 : f32 to vector<1x384xf32>
      %1068 = arith.select %1066, %1063, %1067 : vector<1x384xi1>, vector<1x384xf32>
      %cst_337 = arith.constant dense<0.000000e+00> : vector<1xf32>
      %1069 = vector.multi_reduction <add>, %1068, %cst_337 [1] : vector<1x384xf32> to vector<1xf32>
      %1070 = vector.shape_cast %1069 : vector<1xf32> to vector<1x1xf32>
      %1071 = arith.index_cast %arg5 : i32 to index
      %c90 = arith.constant 90 : index
      %1072 = vector.load %arg4[%1071, %c90] : memref<8x96xf32, #tpu.memory_space<vmem>>, vector<1x1xf32>
      tpu.vector_store %arg4[%1071, %c90], %1070 {strides = array<i32>} : memref<8x96xf32, #tpu.memory_space<vmem>>, vector<1x1xf32>,
      %c1_i32_338 = arith.constant 1 : i32
      %1073 = arith.addi %1061, %c1_i32_338 : i32
      %1074 = vector.broadcast %1073 : i32 to vector<1x384xi32>
      %1075 = arith.cmpi eq, %2, %1074 : vector<1x384xi32>
      %cst_339 = arith.constant 0.000000e+00 : f32
      %1076 = vector.broadcast %cst_339 : f32 to vector<1x384xf32>
      %1077 = arith.select %1075, %1063, %1076 : vector<1x384xi1>, vector<1x384xf32>
      %cst_340 = arith.constant dense<0.000000e+00> : vector<1xf32>
      %1078 = vector.multi_reduction <add>, %1077, %cst_340 [1] : vector<1x384xf32> to vector<1xf32>
      %1079 = vector.shape_cast %1078 : vector<1xf32> to vector<1x1xf32>
      %1080 = arith.index_cast %arg5 : i32 to index
      %c91 = arith.constant 91 : index
      %1081 = vector.load %arg4[%1080, %c91] : memref<8x96xf32, #tpu.memory_space<vmem>>, vector<1x1xf32>
      tpu.vector_store %arg4[%1080, %c91], %1079 {strides = array<i32>} : memref<8x96xf32, #tpu.memory_space<vmem>>, vector<1x1xf32>,
      %c2_i32_341 = arith.constant 2 : i32
      %1082 = arith.addi %1061, %c2_i32_341 : i32
      %1083 = vector.broadcast %1082 : i32 to vector<1x384xi32>
      %1084 = arith.cmpi eq, %2, %1083 : vector<1x384xi32>
      %cst_342 = arith.constant 0.000000e+00 : f32
      %1085 = vector.broadcast %cst_342 : f32 to vector<1x384xf32>
      %1086 = arith.select %1084, %1063, %1085 : vector<1x384xi1>, vector<1x384xf32>
      %cst_343 = arith.constant dense<0.000000e+00> : vector<1xf32>
      %1087 = vector.multi_reduction <add>, %1086, %cst_343 [1] : vector<1x384xf32> to vector<1xf32>
      %1088 = vector.shape_cast %1087 : vector<1xf32> to vector<1x1xf32>
      %1089 = arith.index_cast %arg5 : i32 to index
      %c92 = arith.constant 92 : index
      %1090 = vector.load %arg4[%1089, %c92] : memref<8x96xf32, #tpu.memory_space<vmem>>, vector<1x1xf32>
      tpu.vector_store %arg4[%1089, %c92], %1088 {strides = array<i32>} : memref<8x96xf32, #tpu.memory_space<vmem>>, vector<1x1xf32>,
      %c31_i32 = arith.constant 31 : i32
      %1091 = arith.addi %5, %c31_i32 : i32
      %1092 = arith.index_cast %1091 : i32 to index
      %1093 = memref.load %arg1[%1092] : memref<256xi32, #tpu.memory_space<smem>>
      %c31_i32_344 = arith.constant 31 : i32
      %1094 = arith.addi %5, %c31_i32_344 : i32
      %1095 = arith.index_cast %1094 : i32 to index
      %1096 = memref.load %arg2[%1095] : memref<256xi32, #tpu.memory_space<smem>>
      %1097 = arith.index_cast %1093 : i32 to index
      %c0_345 = arith.constant 0 : index
      %1098 = vector.load %arg3[%1097, %c0_345] : memref<2x384xf32, #tpu.memory_space<vmem>>, vector<1x384xf32>
      %c0_i32_346 = arith.constant 0 : i32
      %1099 = arith.addi %1096, %c0_i32_346 : i32
      %1100 = vector.broadcast %1099 : i32 to vector<1x384xi32>
      %1101 = arith.cmpi eq, %2, %1100 : vector<1x384xi32>
      %cst_347 = arith.constant 0.000000e+00 : f32
      %1102 = vector.broadcast %cst_347 : f32 to vector<1x384xf32>
      %1103 = arith.select %1101, %1098, %1102 : vector<1x384xi1>, vector<1x384xf32>
      %cst_348 = arith.constant dense<0.000000e+00> : vector<1xf32>
      %1104 = vector.multi_reduction <add>, %1103, %cst_348 [1] : vector<1x384xf32> to vector<1xf32>
      %1105 = vector.shape_cast %1104 : vector<1xf32> to vector<1x1xf32>
      %1106 = arith.index_cast %arg5 : i32 to index
      %c93 = arith.constant 93 : index
      %1107 = vector.load %arg4[%1106, %c93] : memref<8x96xf32, #tpu.memory_space<vmem>>, vector<1x1xf32>
      tpu.vector_store %arg4[%1106, %c93], %1105 {strides = array<i32>} : memref<8x96xf32, #tpu.memory_space<vmem>>, vector<1x1xf32>,
      %c1_i32_349 = arith.constant 1 : i32
      %1108 = arith.addi %1096, %c1_i32_349 : i32
      %1109 = vector.broadcast %1108 : i32 to vector<1x384xi32>
      %1110 = arith.cmpi eq, %2, %1109 : vector<1x384xi32>
      %cst_350 = arith.constant 0.000000e+00 : f32
      %1111 = vector.broadcast %cst_350 : f32 to vector<1x384xf32>
      %1112 = arith.select %1110, %1098, %1111 : vector<1x384xi1>, vector<1x384xf32>
      %cst_351 = arith.constant dense<0.000000e+00> : vector<1xf32>
      %1113 = vector.multi_reduction <add>, %1112, %cst_351 [1] : vector<1x384xf32> to vector<1xf32>
      %1114 = vector.shape_cast %1113 : vector<1xf32> to vector<1x1xf32>
      %1115 = arith.index_cast %arg5 : i32 to index
      %c94 = arith.constant 94 : index
      %1116 = vector.load %arg4[%1115, %c94] : memref<8x96xf32, #tpu.memory_space<vmem>>, vector<1x1xf32>
      tpu.vector_store %arg4[%1115, %c94], %1114 {strides = array<i32>} : memref<8x96xf32, #tpu.memory_space<vmem>>, vector<1x1xf32>,
      %c2_i32_352 = arith.constant 2 : i32
      %1117 = arith.addi %1096, %c2_i32_352 : i32
      %1118 = vector.broadcast %1117 : i32 to vector<1x384xi32>
      %1119 = arith.cmpi eq, %2, %1118 : vector<1x384xi32>
      %cst_353 = arith.constant 0.000000e+00 : f32
      %1120 = vector.broadcast %cst_353 : f32 to vector<1x384xf32>
      %1121 = arith.select %1119, %1098, %1120 : vector<1x384xi1>, vector<1x384xf32>
      %cst_354 = arith.constant dense<0.000000e+00> : vector<1xf32>
      %1122 = vector.multi_reduction <add>, %1121, %cst_354 [1] : vector<1x384xf32> to vector<1xf32>
      %1123 = vector.shape_cast %1122 : vector<1xf32> to vector<1x1xf32>
      %1124 = arith.index_cast %arg5 : i32 to index
      %c95 = arith.constant 95 : index
      %1125 = vector.load %arg4[%1124, %c95] : memref<8x96xf32, #tpu.memory_space<vmem>>, vector<1x1xf32>
      tpu.vector_store %arg4[%1124, %c95], %1123 {strides = array<i32>} : memref<8x96xf32, #tpu.memory_space<vmem>>, vector<1x1xf32>,
    }
    %c8_i32_0 = arith.constant 8 : i32
    return
  }
  func.func @transform_0(%arg0: i32, %arg1: memref<256xi32, #tpu.memory_space<smem>>, %arg2: memref<256xi32, #tpu.memory_space<smem>>) -> (i32, i32) {
    %c0_i32 = arith.constant 0 : i32
    %c0_i32_0 = arith.constant 0 : i32
    %c0_i32_1 = arith.constant 0 : i32
    return %c0_i32, %c0_i32_0 : i32, i32
  }
  func.func @transform_1(%arg0: i32, %arg1: memref<256xi32, #tpu.memory_space<smem>>, %arg2: memref<256xi32, #tpu.memory_space<smem>>) -> (i32, i32) {
    %c0_i32 = arith.constant 0 : i32
    %c0_i32_0 = arith.constant 0 : i32
    return %arg0, %c0_i32 : i32, i32
  }
}

</mosaic_0001>

<bundles_post_ra>
// kernel: tpu_custom_call.1
= control target key start
LH: loop header
LB: loop body
LE: loop exit
PB: predicated region body
PF: predicated region fallthrough
CT: control target
= control target key end

     0   :  { %s2510_s18 = smov [#allocation3]   ;;  %s2511_s19 = smov [#allocation4]   ;;  %s4014_s0 = inlined_call_operand.hbm [shape: s32[256], index: 0, kind: input, shape index: {}]   ;;  %s4015_s2 = inlined_call_operand.hbm [shape: f32[2,384], index: 2, kind: input, shape index: {}]   ;;  %s4016_s3 = inlined_call_operand.hbm [shape: f32[8,96], index: 3, kind: output, shape index: {}]   ;;  %s4017_s1 = inlined_call_operand.hbm [shape: s32[256], index: 1, kind: input, shape index: {}]  }
   0x1   :  { %s9_s14 = sshll.u32 %s4014_s0, 4  ;;  %s14_s17 = sshll.u32 %s4017_s1, 4  ;;  %s10_s14 = int_to_ptr.hbm [resolvable:$true] %s9_s14  ;;  %s15_s17 = int_to_ptr.hbm [resolvable:$true] %s14_s17 }
   0x2   :  { %12 = dma.hbm_to_smem %s10_s14, 32, %s2510_s18, [#allocation2] }
   0x3   :  { %17 = dma.hbm_to_smem %s15_s17, 32, %s2511_s19, [#allocation2] }
   0x4   :  { %2500 = dma.done.wait [#allocation2], 64 }
   0x5   :  { %2501 = vsyncadd [#allocation2], 4294967232 }
   0x6   :  { %20 = sfence }
   0x7   :  { %21 = vsyncpa [#allocation6], 0 }
   0x8   :  { %22 = vsyncpa [#allocation7], 0  ;;  %s28_s22 = sshll.u32 %s4015_s2, 4  ;;  %s2512_s0 = smov [#allocation5]   ;;  %s29_s22 = int_to_ptr.hbm [resolvable:$true] %s28_s22 }
   0x9   :  { %s30_s23 = sshll.u32 %s2512_s0, 4  ;;  %s31_s23 = int_to_ptr.vmem [resolvable:$true] %s30_s23 }
   0xa   :  { %33 = dma.hbm_to_vmem [thread:$0]  %s29_s22, 96, %s31_s23, [#allocation6]  }
   0xb   :  { %2502 = dma.done.wait [#allocation6], 96  }
   0xc   :  { %2503 = vsyncadd [#allocation6], 4294967200  ;;  %v39_v0 = vlaneseq  ;;  %s2551_s1 = smov 0  }
   0xe   :  { %v2543_v1 = vand.u32 127, %v39_v0 }
  0x10   :  { %v2546_v2 = vadd.s32 128, %v2543_v1  ;;  %v2549_v3 = vadd.s32 256, %v2543_v1 }
  0x11 LB: > { %s2557_s2 = sshll.u32 %s2508_s1, 5  ;;  %vm76_vm1 = vcmask 1040384   ;;  %s2508_s1 = sphi %s2551_s1, %s48_s1  }
  0x12   : > { %s51_s24 = sld [smem:[#allocation3 + %s2557_s2]]  ;;  %s121_s25 = sadd.s32 1, %s2557_s2 }
  0x13   : > { %s2562_s26 = sld [smem:[#allocation4 + %s2557_s2]]  ;;  %s190_s27 = sadd.s32 2, %s2557_s2 }
  0x14   : > { %s122_s28 = sld [smem:[#allocation3 + %s121_s25]]  ;;  %s259_s5 = sadd.s32 3, %s2557_s2 }
  0x15   : > { %s2565_s29 = sld [smem:[#allocation4 + %s121_s25]]  ;;  %s328_s25 = sadd.s32 4, %s2557_s2 }
  0x16   : > { %s2567_s30 = sld [smem:[#allocation3 + %s190_s27]] }
  0x17   : > { %s2569_s4 = sld [smem:[#allocation4 + %s190_s27]] }
  0x18   : > { %s53_s6 = sshra.s32 %s51_s24, 1  ;;  %s56_s7 = sand.u32 1, %s51_s24 }
  0x19   : > { %s2380_s8 = smul.u32 6, %s53_s6  ;;  %v62_v4 = vstv %s2562_s26  ;;  %s104_s9 = sadd.s32 2, %s2562_s26 }
  0x1a   : > { %v105_v5 = vstv %s104_s9  ;;  %s124_s10 = sshra.s32 %s122_s28, 1  ;;  %s127_s11 = sand.u32 1, %s122_s28  ;;  %vm63_vm0 = vcmp.eq.s32.totalorder %v2543_v1, %v62_v4  ;;  %vm64_vm2 = vcmp.eq.s32.totalorder %v2546_v2, %v62_v4  ;;  %vm65_vm3 = vcmp.eq.s32.totalorder %v2549_v3, %v62_v4 }
  0x1b   : > { %s59_s12 = sadd.s32 %s2380_s8, %s56_s7  ;;  %s2381_s13 = smul.u32 6, %s124_s10  ;;  %v2576_v6 = vstv %s2565_s29  ;;  %vm106_vm4 = vcmp.eq.s32.totalorder %v2543_v1, %v105_v5  ;;  %vm107_vm5 = vcmp.eq.s32.totalorder %v2546_v2, %v105_v5  ;;  %vm108_vm6 = vcmp.eq.s32.totalorder %v2549_v3, %v105_v5 }
  0x1c   : > { %s156_s14 = sadd.s32 1, %s2565_s29  ;;  %s60_s15 = scalar_lea.vmem [#allocation5], %s59_s12  ;;  %vm134_vm7 = vcmp.eq.s32.totalorder %v2543_v1, %v2576_v6  ;;  %vm135_vm9 = vcmp.eq.s32.totalorder %v2546_v2, %v2576_v6  ;;  %vm136_vm10 = vcmp.eq.s32.totalorder %v2549_v3, %v2576_v6 }
  0x1d   : > { %v61_v7 = vld [vmem:[%s60_s15] ss:$2 sm:$0x7]  ;;  %s130_s16 = sadd.s32 %s2381_s13, %s127_s11  ;;  %v157_v8 = vstv %s156_s14  ;;  %s87_s17 = sadd.s32 1, %s2562_s26  ;;  %v2588_v9 = vstv %s2569_s4 }
  0x1e   : > { %v67_v10 = vperm.slane %v61_v7, 0  ;;  %v68_v11 = vperm.slane %v61_v7, 1  ;;  %v69_v12 = vperm.slane %v61_v7, 2  ;;  %vm158_vm8 = vcmp.eq.s32.totalorder %v2543_v1, %v157_v8  ;;  %s173_s18 = sadd.s32 2, %s2565_s29  ;;  %s131_s19 = scalar_lea.vmem [#allocation5], %s130_s16 }
  0x1f   : > { %v132_v13 = vld [vmem:[%s131_s19] ss:$2 sm:$0x7]  ;;  %vm159_vm11 = vcmp.eq.s32.totalorder %v2546_v2, %v157_v8  ;;  %vm160_vm12 = vcmp.eq.s32.totalorder %v2549_v3, %v157_v8  ;;  %v88_v14 = vstv %s87_s17  ;;  %v2598_v15 = vstv %s173_s18  ;;  %s193_s20 = sshra.s32 %s2567_s30, 1  ;;  %s2616_s22 = sld [smem:[#allocation3 + %s259_s5]] }
  0x20   : > { %v73_v16 = vsel %vm63_vm0, %v67_v10, 0.0  ;;  %v74_v17 = vsel %vm64_vm2, %v68_v11, 0.0  ;;  %v75_v18 = vsel %vm65_vm3, %v69_v12, 0.0  ;;  %v109_v19 = vsel %vm106_vm4, %v67_v10, 0.0  ;;  %s2382_s21 = smul.u32 6, %s193_s20  ;;  %s196_s0 = sand.u32 1, %s2567_s30 }
  0x21   : > { %v77_v20 = vsel %vm76_vm1, %v73_v16, 0.0  ;;  %v78_v21 = vsel %vm76_vm1, %v74_v17, 0.0  ;;  %v80_v22 = vsel %vm76_vm1, %v75_v18, 0.0  ;;  %v110_v23 = vsel %vm107_vm5, %v68_v11, 0.0  ;;  %s2659_s27 = sld [smem:[#allocation3 + %s328_s25]]  ;;  %s225_s30 = sadd.s32 1, %s2569_s4 }
  0x22   : > { %v79_v24 = vadd.f32 %v78_v21, %v77_v20  ;;  %v111_v25 = vsel %vm108_vm6, %v69_v12, 0.0  ;;  %v112_v26 = vsel %vm76_vm1, %v109_v19, 0.0  ;;  %v113_v27 = vsel %vm76_vm1, %v110_v23, 0.0  ;;  %s2631_s23 = sadd.s32 %s2382_s21, %s196_s0  ;;  %s242_s6 = sadd.s32 2, %s2569_s4 }
  0x23   : > { %v114_v28 = vadd.f32 %v113_v27, %v112_v26  ;;  %v115_v29 = vsel %vm76_vm1, %v111_v25, 0.0  ;;  %v138_v30 = vperm.slane %v132_v13, 0  ;;  %v139_v31 = vperm.slane %v132_v13, 1  ;;  %s200_s28 = scalar_lea.vmem [#allocation5], %s2631_s23  ;;  %s2680_s7 = sld [smem:[#allocation4 + %s259_s5]] }
  0x24   : > { %v81_v32 = vadd.f32 %v80_v22, %v79_v24  ;;  %v140_v33 = vperm.slane %v132_v13, 2  ;;  %vm89_vm13 = vcmp.eq.s32.totalorder %v2543_v1, %v88_v14  ;;  %vm90_vm14 = vcmp.eq.s32.totalorder %v2546_v2, %v88_v14  ;;  %v201_v58 = vld [vmem:[%s200_s28] ss:$2 sm:$0x7]  ;;  %s397_s5 = sadd.s32 5, %s2557_s2  ;;  %s2708_s11 = sld [smem:[#allocation4 + %s328_s25]] }
  0x25   : > { %v116_v34 = vadd.f32 %v115_v29, %v114_v28  ;;  %v161_v35 = vsel %vm158_vm8, %v138_v30, 0.0  ;;  %v162_v36 = vsel %vm159_vm11, %v139_v31, 0.0  ;;  %vm91_vm15 = vcmp.eq.s32.totalorder %v2549_v3, %v88_v14  ;;  %s262_s24 = sshra.s32 %s2616_s22, 1  ;;  %s265_s29 = sand.u32 1, %s2616_s22 }
  0x26   : > { %82 = vadd.xlane.f32.xlu0 %v81_v32  ;;  %v163_v37 = vsel %vm160_vm12, %v140_v33, 0.0  ;;  %v164_v38 = vsel %vm76_vm1, %v161_v35, 0.0  ;;  %v165_v39 = vsel %vm76_vm1, %v162_v36, 0.0  ;;  %v92_v40 = vsel %vm89_vm13, %v67_v10, 0.0  ;;  %s2383_s26 = smul.u32 6, %s262_s24  ;;  %s2703_s10 = sld [smem:[#allocation3 + %s397_s5]] }
  0x27   : > { %117 = vadd.xlane.f32.xlu1 %v116_v34  ;;  %v166_v41 = vadd.f32 %v165_v39, %v164_v38  ;;  %v167_v42 = vsel %vm76_vm1, %v163_v37, 0.0  ;;  %v93_v43 = vsel %vm90_vm14, %v68_v11, 0.0  ;;  %v94_v44 = vsel %vm91_vm15, %v69_v12, 0.0  ;;  %s331_s8 = sshra.s32 %s2659_s27, 1  ;;  %s334_s14 = sand.u32 1, %s2659_s27 }
  0x28   : > { %v95_v45 = vsel %vm76_vm1, %v92_v40, 0.0  ;;  %v96_v46 = vsel %vm76_vm1, %v93_v43, 0.0  ;;  %v98_v47 = vsel %vm76_vm1, %v94_v44, 0.0  ;;  %v144_v48 = vsel %vm134_vm7, %v138_v30, 0.0  ;;  %s2682_s4 = sadd.s32 %s2383_s26, %s265_s29  ;;  %s2384_s12 = smul.u32 6, %s331_s8 }
  0x29   : > { %v168_v49 = vadd.f32 %v167_v42, %v166_v41  ;;  %v97_v50 = vadd.f32 %v96_v46, %v95_v45  ;;  %v145_v51 = vsel %vm135_vm9, %v139_v31, 0.0  ;;  %v146_v52 = vsel %vm136_vm10, %v140_v33, 0.0  ;;  %s269_s9 = scalar_lea.vmem [#allocation5], %s2682_s4  ;;  %s294_s13 = sadd.s32 1, %s2680_s7 }
  0x2a   : > { %v147_v53 = vsel %vm76_vm1, %v144_v48, 0.0  ;;  %v148_v54 = vsel %vm76_vm1, %v145_v51, 0.0  ;;  %v150_v55 = vsel %vm76_vm1, %v146_v52, 0.0  ;;  %vm175_vm0 = vcmp.eq.s32.totalorder %v2543_v1, %v2598_v15  ;;  %v270_v26 = vld [vmem:[%s269_s9] ss:$2 sm:$0x7]  ;;  %s2719_s15 = sadd.s32 %s2384_s12, %s334_s14 }
  0x2b   : > { %169 = vadd.xlane.f32.xlu2 %v168_v49  ;;  %v99_v56 = vadd.f32 %v98_v47, %v97_v50  ;;  %v149_v57 = vadd.f32 %v148_v54, %v147_v53  ;;  %vm176_vm2 = vcmp.eq.s32.totalorder %v2546_v2, %v2598_v15  ;;  %vm177_vm3 = vcmp.eq.s32.totalorder %v2549_v3, %v2598_v15  ;;  %s311_s16 = sadd.s32 2, %s2680_s7  ;;  %s466_s17 = sadd.s32 6, %s2557_s2 }
  0x2c   : > { %v178_v59 = vsel %vm175_vm0, %v138_v30, 0.0  ;;  %v179_v60 = vsel %vm176_vm2, %v139_v31, 0.0  ;;  %v180_v61 = vsel %vm177_vm3, %v140_v33, 0.0  ;;  %vm203_vm4 = vcmp.eq.s32.totalorder %v2543_v1, %v2588_v9  ;;  %s2730_s18 = sld [smem:[#allocation4 + %s397_s5]]  ;;  %s400_s19 = sshra.s32 %s2703_s10, 1 }
  0x2d   : > { %v151_v62 = vadd.f32 %v150_v55, %v149_v57  ;;  %v181_v63 = vsel %vm76_vm1, %v178_v59, 0.0  ;;  %v182_v0 = vsel %vm76_vm1, %v179_v60, 0.0  ;;  %v184_v4 = vsel %vm76_vm1, %v180_v61, 0.0  ;;  %s2739_s20 = sld [smem:[#allocation3 + %s466_s17]]  ;;  %s363_s21 = sadd.s32 1, %s2708_s11 }
  0x2e   : > { %100 = vadd.xlane.f32.xlu0 %v99_v56  ;;  %v183_v5 = vadd.f32 %v182_v0, %v181_v63  ;;  %vm204_vm5 = vcmp.eq.s32.totalorder %v2546_v2, %v2588_v9  ;;  %vm205_vm6 = vcmp.eq.s32.totalorder %v2549_v3, %v2588_v9  ;;  %v207_v6 = vperm.slane %v201_v58, 0  ;;  %s338_s22 = scalar_lea.vmem [#allocation5], %s2719_s15  ;;  %s2385_s0 = smul.u32 6, %s400_s19 }
  0x2f   : > { %152 = vadd.xlane.f32.xlu1 %v151_v62  ;;  %v208_v7 = vperm.slane %v201_v58, 1  ;;  %v209_v8 = vperm.slane %v201_v58, 2  ;;  %v226_v10 = vstv %s225_s30  ;;  %v243_v11 = vstv %s242_s6  ;;  %v339_v60 = vld [vmem:[%s338_s22] ss:$2 sm:$0x7]  ;;  %s380_s23 = sadd.s32 2, %s2708_s11 }
  0x30   : > { %v185_v12 = vadd.f32 %v184_v4, %v183_v5  ;;  %v213_v13 = vsel %vm203_vm4, %v207_v6, 0.0  ;;  %vm227_vm7 = vcmp.eq.s32.totalorder %v2543_v1, %v226_v10  ;;  %vm228_vm8 = vcmp.eq.s32.totalorder %v2546_v2, %v226_v10  ;;  %s403_s24 = sand.u32 1, %s2703_s10  ;;  %s535_s26 = sadd.s32 7, %s2557_s2 }
  0x31   : > { %v214_v14 = vsel %vm204_vm5, %v208_v7, 0.0  ;;  %v215_v15 = vsel %vm205_vm6, %v209_v8, 0.0  ;;  %v216_v16 = vsel %vm76_vm1, %v213_v13, 0.0  ;;  %vm229_vm9 = vcmp.eq.s32.totalorder %v2549_v3, %v226_v10  ;;  %s2755_s25 = sadd.s32 %s2385_s0, %s403_s24  ;;  %s2768_s28 = sld [smem:[#allocation3 + %s535_s26]] }
  0x32   : > { %v217_v17 = vsel %vm76_vm1, %v214_v14, 0.0  ;;  %v219_v18 = vsel %vm76_vm1, %v215_v15, 0.0  ;;  %v230_v19 = vsel %vm227_vm7, %v207_v6, 0.0  ;;  %v231_v9 = vsel %vm228_vm8, %v208_v7, 0.0  ;;  %s432_s29 = sadd.s32 1, %s2730_s18  ;;  %s2778_s30 = sld [smem:[#allocation4 + %s466_s17]] }
  0x33   : > { %186 = vadd.xlane.f32.xlu2 %v185_v12  ;;  %v218_v20 = vadd.f32 %v217_v17, %v216_v16  ;;  %v232_v21 = vsel %vm229_vm9, %v209_v8, 0.0  ;;  %v233_v22 = vsel %vm76_vm1, %v230_v19, 0.0  ;;  %v234_v23 = vsel %vm76_vm1, %v231_v9, 0.0  ;;  %s469_s27 = sshra.s32 %s2739_s20, 1  ;;  %s472_s4 = sand.u32 1, %s2739_s20 }
  0x34   : > { %v235_v24 = vadd.f32 %v234_v23, %v233_v22  ;;  %v236_v25 = vsel %vm76_vm1, %v232_v21, 0.0  ;;  %vm244_vm10 = vcmp.eq.s32.totalorder %v2543_v1, %v243_v11  ;;  %vm245_vm11 = vcmp.eq.s32.totalorder %v2546_v2, %v243_v11  ;;  %s2386_s6 = smul.u32 6, %s469_s27  ;;  %s604_s8 = sadd.s32 8, %s2557_s2 }
  0x35   : > { %v220_v27 = vadd.f32 %v219_v18, %v218_v20  ;;  %vm246_vm12 = vcmp.eq.s32.totalorder %v2549_v3, %v243_v11  ;;  %v247_v28 = vsel %vm244_vm10, %v207_v6, 0.0  ;;  %v248_v29 = vsel %vm245_vm11, %v208_v7, 0.0  ;;  %s449_s9 = sadd.s32 2, %s2730_s18  ;;  %s2808_s12 = sld [smem:[#allocation3 + %s604_s8]] }
  0x36   : > { %v237_v30 = vadd.f32 %v236_v25, %v235_v24  ;;  %v249_v31 = vsel %vm246_vm12, %v209_v8, 0.0  ;;  %v250_v32 = vsel %vm76_vm1, %v247_v28, 0.0  ;;  %v251_v33 = vsel %vm76_vm1, %v248_v29, 0.0  ;;  %s2789_s5 = sadd.s32 %s2386_s6, %s472_s4  ;;  %s2825_s17 = sld [smem:[#allocation4 + %s535_s26]] }
  0x37   : > { %221 = vadd.xlane.f32.xlu0 %v220_v27  ;;  %v252_v34 = vadd.f32 %v251_v33, %v250_v32  ;;  %v253_v35 = vsel %vm76_vm1, %v249_v31, 0.0  ;;  %v271_v36 = vstv %s2680_s7  ;;  %v276_v37 = vperm.slane %v270_v26, 0  ;;  %s407_s7 = scalar_lea.vmem [#allocation5], %s2755_s25  ;;  %s538_s10 = sshra.s32 %s2768_s28, 1 }
  0x38   : > { %238 = vadd.xlane.f32.xlu1 %v237_v30  ;;  %vm272_vm13 = vcmp.eq.s32.totalorder %v2543_v1, %v271_v36  ;;  %vm273_vm14 = vcmp.eq.s32.totalorder %v2546_v2, %v271_v36  ;;  %vm274_vm15 = vcmp.eq.s32.totalorder %v2549_v3, %v271_v36  ;;  %v277_v38 = vperm.slane %v270_v26, 1  ;;  %v408_v31 = vld [vmem:[%s407_s7] ss:$2 sm:$0x7]  ;;  %s541_s14 = sand.u32 1, %s2768_s28  ;;  %s501_s15 = sadd.s32 1, %s2778_s30 }
  0x39   : > { %v254_v39 = vadd.f32 %v253_v35, %v252_v34  ;;  %v278_v40 = vperm.slane %v270_v26, 2  ;;  %v282_v41 = vsel %vm272_vm13, %v276_v37, 0.0  ;;  %v295_v42 = vstv %s294_s13  ;;  %s476_s13 = scalar_lea.vmem [#allocation5], %s2789_s5  ;;  %s673_s19 = sadd.s32 9, %s2557_s2 }
  0x3a   : > { %v283_v43 = vsel %vm273_vm14, %v277_v38, 0.0  ;;  %v285_v44 = vsel %vm76_vm1, %v282_v41, 0.0  ;;  %vm296_vm0 = vcmp.eq.s32.totalorder %v2543_v1, %v295_v42  ;;  %vm297_vm2 = vcmp.eq.s32.totalorder %v2546_v2, %v295_v42  ;;  %s2845_s22 = sld [smem:[#allocation3 + %s673_s19]]  ;;  %s742_s28 = sadd.s32 10, %s2557_s2 }
  0x3b   : > { %255 = vadd.xlane.f32.xlu2 %v254_v39  ;;  %v284_v45 = vsel %vm274_vm15, %v278_v40, 0.0  ;;  %v286_v46 = vsel %vm76_vm1, %v283_v43, 0.0  ;;  %vm298_vm3 = vcmp.eq.s32.totalorder %v2549_v3, %v295_v42  ;;  %v299_v47 = vsel %vm296_vm0, %v276_v37, 0.0  ;;  %s607_s20 = sshra.s32 %s2808_s12, 1  ;;  %s2850_s0 = sld [smem:[#allocation4 + %s604_s8]] }
  0x3c   : > { %v287_v48 = vadd.f32 %v286_v46, %v285_v44  ;;  %v288_v49 = vsel %vm76_vm1, %v284_v45, 0.0  ;;  %v300_v50 = vsel %vm297_vm2, %v277_v38, 0.0  ;;  %v301_v51 = vsel %vm298_vm3, %v278_v40, 0.0  ;;  %s570_s24 = sadd.s32 1, %s2825_s17  ;;  %s610_s25 = sand.u32 1, %s2808_s12 }
  0x3d   : > { %v302_v52 = vsel %vm76_vm1, %v299_v47, 0.0  ;;  %v303_v53 = vsel %vm76_vm1, %v300_v50, 0.0  ;;  %v305_v54 = vsel %vm76_vm1, %v301_v51, 0.0  ;;  %v312_v55 = vstv %s311_s16  ;;  %s518_s16 = sadd.s32 2, %s2778_s30  ;;  %s587_s27 = sadd.s32 2, %s2825_s17 }
  0x3e   : > { %v289_v56 = vadd.f32 %v288_v49, %v287_v48  ;;  %v304_v57 = vadd.f32 %v303_v53, %v302_v52  ;;  %vm313_vm4 = vcmp.eq.s32.totalorder %v2543_v1, %v312_v55  ;;  %vm314_vm5 = vcmp.eq.s32.totalorder %v2546_v2, %v312_v55  ;;  %s2881_s6 = sld [smem:[#allocation3 + %s742_s28]] }
  0x3f   : > { %vm315_vm6 = vcmp.eq.s32.totalorder %v2549_v3, %v312_v55  ;;  %v316_v58 = vsel %vm313_vm4, %v276_v37, 0.0  ;;  %v317_v59 = vsel %vm314_vm5, %v277_v38, 0.0  ;;  %v340_v61 = vstv %s2708_s11  ;;  %s2387_s11 = smul.u32 6, %s538_s10 }
  0x40   : > { %290 = vadd.xlane.f32.xlu0 %v289_v56  ;;  %v306_v62 = vadd.f32 %v305_v54, %v304_v57  ;;  %v318_v63 = vsel %vm315_vm6, %v278_v40, 0.0  ;;  %v319_v0 = vsel %vm76_vm1, %v316_v58, 0.0  ;;  %v320_v4 = vsel %vm76_vm1, %v317_v59, 0.0 }
  0x41   : > { %v321_v5 = vadd.f32 %v320_v4, %v319_v0  ;;  %v322_v6 = vsel %vm76_vm1, %v318_v63, 0.0  ;;  %vm341_vm7 = vcmp.eq.s32.totalorder %v2543_v1, %v340_v61  ;;  %vm342_vm8 = vcmp.eq.s32.totalorder %v2546_v2, %v340_v61  ;;  %s639_s7 = sadd.s32 1, %s2850_s0  ;;  %s656_s8 = sadd.s32 2, %s2850_s0 }
  0x42   : > { %307 = vadd.xlane.f32.xlu1 %v306_v62  ;;  %vm343_vm9 = vcmp.eq.s32.totalorder %v2549_v3, %v340_v61  ;;  %v345_v7 = vperm.slane %v339_v60, 0  ;;  %v346_v8 = vperm.slane %v339_v60, 1  ;;  %v347_v10 = vperm.slane %v339_v60, 2  ;;  %v477_v60 = vld [vmem:[%s476_s13] ss:$2 sm:$0x7] }
  0x43   : > { %v323_v11 = vadd.f32 %v322_v6, %v321_v5  ;;  %v364_v12 = vstv %s363_s21  ;;  %v381_v13 = vstv %s380_s23  ;;  %v409_v14 = vstv %s2730_s18  ;;  %s2827_s18 = sadd.s32 %s2387_s11, %s541_s14  ;;  %s2388_s23 = smul.u32 6, %s607_s20 }
  0x44   : > { %v351_v15 = vsel %vm341_vm7, %v345_v7, 0.0  ;;  %v352_v16 = vsel %vm342_vm8, %v346_v8, 0.0  ;;  %v353_v17 = vsel %vm343_vm9, %v347_v10, 0.0  ;;  %vm365_vm10 = vcmp.eq.s32.totalorder %v2543_v1, %v364_v12  ;;  %s545_s21 = scalar_lea.vmem [#allocation5], %s2827_s18  ;;  %s811_s11 = sadd.s32 11, %s2557_s2 }
  0x45   : > { %324 = vadd.xlane.f32.xlu2 %v323_v11  ;;  %v354_v18 = vsel %vm76_vm1, %v351_v15, 0.0  ;;  %v355_v19 = vsel %vm76_vm1, %v352_v16, 0.0  ;;  %v357_v9 = vsel %vm76_vm1, %v353_v17, 0.0  ;;  %vm366_vm11 = vcmp.eq.s32.totalorder %v2546_v2, %v364_v12  ;;  %s2861_s26 = sadd.s32 %s2388_s23, %s610_s25  ;;  %s745_s12 = sshra.s32 %s2881_s6, 1 }
  0x46   : > { %v356_v20 = vadd.f32 %v355_v19, %v354_v18  ;;  %vm367_vm12 = vcmp.eq.s32.totalorder %v2549_v3, %v364_v12  ;;  %v368_v21 = vsel %vm365_vm10, %v345_v7, 0.0  ;;  %v369_v22 = vsel %vm366_vm11, %v346_v8, 0.0  ;;  %s614_s4 = scalar_lea.vmem [#allocation5], %s2861_s26  ;;  %s2910_s13 = sld [smem:[#allocation3 + %s811_s11]] }
  0x47   : > { %v370_v23 = vsel %vm367_vm12, %v347_v10, 0.0  ;;  %v371_v24 = vsel %vm76_vm1, %v368_v21, 0.0  ;;  %v372_v25 = vsel %vm76_vm1, %v369_v22, 0.0  ;;  %vm382_vm13 = vcmp.eq.s32.totalorder %v2543_v1, %v381_v13  ;;  %s2917_s14 = sld [smem:[#allocation4 + %s742_s28]]  ;;  %s748_s18 = sand.u32 1, %s2881_s6 }
  0x48   : > { %v358_v26 = vadd.f32 %v357_v9, %v356_v20  ;;  %v373_v27 = vadd.f32 %v372_v25, %v371_v24  ;;  %v374_v28 = vsel %vm76_vm1, %v370_v23, 0.0  ;;  %vm383_vm14 = vcmp.eq.s32.totalorder %v2546_v2, %v381_v13  ;;  %s880_s20 = sadd.s32 12, %s2557_s2  ;;  %s2965_s28 = sld [smem:[#allocation4 + %s811_s11]] }
  0x49   : > { %vm384_vm15 = vcmp.eq.s32.totalorder %v2549_v3, %v381_v13  ;;  %v385_v29 = vsel %vm382_vm13, %v345_v7, 0.0  ;;  %v386_v30 = vsel %vm383_vm14, %v346_v8, 0.0  ;;  %vm410_vm0 = vcmp.eq.s32.totalorder %v2543_v1, %v409_v14  ;;  %s2950_s23 = sld [smem:[#allocation3 + %s880_s20]] }
  0x4a   : > { %359 = vadd.xlane.f32.xlu0 %v358_v26  ;;  %v375_v32 = vadd.f32 %v374_v28, %v373_v27  ;;  %v387_v33 = vsel %vm384_vm15, %v347_v10, 0.0  ;;  %v388_v34 = vsel %vm76_vm1, %v385_v29, 0.0  ;;  %v389_v35 = vsel %vm76_vm1, %v386_v30, 0.0  ;;  %v546_v28 = vld [vmem:[%s545_s21] ss:$2 sm:$0x7] }
  0x4b   : > { %v390_v36 = vadd.f32 %v389_v35, %v388_v34  ;;  %v391_v37 = vsel %vm76_vm1, %v387_v33, 0.0  ;;  %vm411_vm2 = vcmp.eq.s32.totalorder %v2546_v2, %v409_v14  ;;  %vm412_vm3 = vcmp.eq.s32.totalorder %v2549_v3, %v409_v14 }
  0x4c   : > { %376 = vadd.xlane.f32.xlu1 %v375_v32  ;;  %v414_v38 = vperm.slane %v408_v31, 0  ;;  %v415_v39 = vperm.slane %v408_v31, 1  ;;  %v416_v40 = vperm.slane %v408_v31, 2  ;;  %v433_v41 = vstv %s432_s29  ;;  %s2872_s29 = sld [smem:[#allocation4 + %s673_s19]]  ;;  %s817_s25 = sand.u32 1, %s2910_s13 }
  0x4d   : > { %v392_v42 = vadd.f32 %v391_v37, %v390_v36  ;;  %vm434_vm4 = vcmp.eq.s32.totalorder %v2543_v1, %v433_v41  ;;  %vm435_vm5 = vcmp.eq.s32.totalorder %v2546_v2, %v433_v41  ;;  %vm436_vm6 = vcmp.eq.s32.totalorder %v2549_v3, %v433_v41  ;;  %s777_s26 = sadd.s32 1, %s2917_s14 }
  0x4e   : > { %v420_v43 = vsel %vm410_vm0, %v414_v38, 0.0  ;;  %v421_v44 = vsel %vm411_vm2, %v415_v39, 0.0  ;;  %v422_v45 = vsel %vm412_vm3, %v416_v40, 0.0  ;;  %v437_v46 = vsel %vm434_vm4, %v414_v38, 0.0 }
  0x4f   : > { %393 = vadd.xlane.f32.xlu2 %v392_v42  ;;  %v423_v47 = vsel %vm76_vm1, %v420_v43, 0.0  ;;  %v424_v48 = vsel %vm76_vm1, %v421_v44, 0.0  ;;  %v426_v49 = vsel %vm76_vm1, %v422_v45, 0.0  ;;  %v438_v50 = vsel %vm435_vm5, %v415_v39, 0.0  ;;  %s883_s6 = sshra.s32 %s2950_s23, 1 }
  0x50   : > { %v425_v51 = vadd.f32 %v424_v48, %v423_v47  ;;  %v439_v52 = vsel %vm436_vm6, %v416_v40, 0.0  ;;  %v440_v53 = vsel %vm76_vm1, %v437_v46, 0.0  ;;  %v441_v54 = vsel %vm76_vm1, %v438_v50, 0.0 }
  0x51   : > { %v442_v55 = vadd.f32 %v441_v54, %v440_v53  ;;  %v443_v56 = vsel %vm76_vm1, %v439_v52, 0.0  ;;  %v450_v57 = vstv %s449_s9  ;;  %v478_v58 = vstv %s2778_s30  ;;  %s676_s30 = sshra.s32 %s2845_s22, 1  ;;  %s679_s9 = sand.u32 1, %s2845_s22 }
  0x52   : > { %v427_v59 = vadd.f32 %v426_v49, %v425_v51  ;;  %vm451_vm7 = vcmp.eq.s32.totalorder %v2543_v1, %v450_v57  ;;  %vm452_vm8 = vcmp.eq.s32.totalorder %v2546_v2, %v450_v57  ;;  %vm453_vm9 = vcmp.eq.s32.totalorder %v2549_v3, %v450_v57  ;;  %s2389_s5 = smul.u32 6, %s676_s30  ;;  %s725_s21 = sadd.s32 2, %s2872_s29 }
  0x53   : > { %v444_v61 = vadd.f32 %v443_v56, %v442_v55  ;;  %v454_v62 = vsel %vm451_vm7, %v414_v38, 0.0  ;;  %v455_v63 = vsel %vm452_vm8, %v415_v39, 0.0  ;;  %v456_v0 = vsel %vm453_vm9, %v416_v40, 0.0  ;;  %s814_s22 = sshra.s32 %s2910_s13, 1  ;;  %s949_s30 = sadd.s32 13, %s2557_s2 }
  0x54   : > { %428 = vadd.xlane.f32.xlu0 %v427_v59  ;;  %v457_v4 = vsel %vm76_vm1, %v454_v62, 0.0  ;;  %v458_v5 = vsel %vm76_vm1, %v455_v63, 0.0  ;;  %v460_v6 = vsel %vm76_vm1, %v456_v0, 0.0  ;;  %vm479_vm10 = vcmp.eq.s32.totalorder %v2543_v1, %v478_v58  ;;  %v615_v62 = vld [vmem:[%s614_s4] ss:$2 sm:$0x7]  ;;  %s2897_s10 = sadd.s32 %s2389_s5, %s679_s9 }
  0x55   : > { %445 = vadd.xlane.f32.xlu1 %v444_v61  ;;  %v459_v7 = vadd.f32 %v458_v5, %v457_v4  ;;  %vm480_vm11 = vcmp.eq.s32.totalorder %v2546_v2, %v478_v58  ;;  %vm481_vm12 = vcmp.eq.s32.totalorder %v2549_v3, %v478_v58  ;;  %v483_v8 = vperm.slane %v477_v60, 0  ;;  %s2987_s4 = sld [smem:[#allocation3 + %s949_s30]]  ;;  %s846_s5 = sadd.s32 1, %s2965_s28 }
  0x56   : > { %v484_v10 = vperm.slane %v477_v60, 1  ;;  %v485_v11 = vperm.slane %v477_v60, 2  ;;  %v502_v12 = vstv %s501_s15  ;;  %v519_v13 = vstv %s518_s16  ;;  %s708_s15 = sadd.s32 1, %s2872_s29  ;;  %s2390_s16 = smul.u32 6, %s745_s12 }
  0x57   : > { %v461_v14 = vadd.f32 %v460_v6, %v459_v7  ;;  %v489_v15 = vsel %vm479_vm10, %v483_v8, 0.0  ;;  %vm503_vm13 = vcmp.eq.s32.totalorder %v2543_v1, %v502_v12  ;;  %vm504_vm14 = vcmp.eq.s32.totalorder %v2546_v2, %v502_v12  ;;  %s2995_s9 = sld [smem:[#allocation4 + %s880_s20]]  ;;  %s863_s12 = sadd.s32 2, %s2965_s28 }
  0x58   : > { %v490_v16 = vsel %vm480_vm11, %v484_v10, 0.0  ;;  %v491_v17 = vsel %vm481_vm12, %v485_v11, 0.0  ;;  %v492_v18 = vsel %vm76_vm1, %v489_v15, 0.0  ;;  %vm505_vm15 = vcmp.eq.s32.totalorder %v2549_v3, %v502_v12  ;;  %s2931_s19 = sadd.s32 %s2390_s16, %s748_s18  ;;  %s1018_s13 = sadd.s32 14, %s2557_s2 }
  0x59   : > { %462 = vadd.xlane.f32.xlu2 %v461_v14  ;;  %v493_v19 = vsel %vm76_vm1, %v490_v16, 0.0  ;;  %v495_v9 = vsel %vm76_vm1, %v491_v17, 0.0  ;;  %v506_v20 = vsel %vm503_vm13, %v483_v8, 0.0  ;;  %v507_v21 = vsel %vm504_vm14, %v484_v10, 0.0  ;;  %s3023_s16 = sld [smem:[#allocation3 + %s1018_s13]] }
  0x5a   : > { %v494_v22 = vadd.f32 %v493_v19, %v492_v18  ;;  %v508_v23 = vsel %vm505_vm15, %v485_v11, 0.0  ;;  %v509_v24 = vsel %vm76_vm1, %v506_v20, 0.0  ;;  %v510_v25 = vsel %vm76_vm1, %v507_v21, 0.0 }
  0x5b   : > { %v511_v26 = vadd.f32 %v510_v25, %v509_v24  ;;  %v512_v27 = vsel %vm76_vm1, %v508_v23, 0.0  ;;  %vm520_vm0 = vcmp.eq.s32.totalorder %v2543_v1, %v519_v13  ;;  %vm521_vm2 = vcmp.eq.s32.totalorder %v2546_v2, %v519_v13 }
  0x5c   : > { %v496_v29 = vadd.f32 %v495_v9, %v494_v22  ;;  %vm522_vm3 = vcmp.eq.s32.totalorder %v2549_v3, %v519_v13  ;;  %v523_v30 = vsel %vm520_vm0, %v483_v8, 0.0  ;;  %v524_v31 = vsel %vm521_vm2, %v484_v10, 0.0 }
  0x5d   : > { %v513_v32 = vadd.f32 %v512_v27, %v511_v26  ;;  %v525_v33 = vsel %vm522_vm3, %v485_v11, 0.0  ;;  %v526_v34 = vsel %vm76_vm1, %v523_v30, 0.0  ;;  %v527_v35 = vsel %vm76_vm1, %v524_v31, 0.0  ;;  %s932_s20 = sadd.s32 2, %s2995_s9 }
  0x5e   : > { %497 = vadd.xlane.f32.xlu0 %v496_v29  ;;  %v528_v36 = vadd.f32 %v527_v35, %v526_v34  ;;  %v529_v37 = vsel %vm76_vm1, %v525_v33, 0.0  ;;  %v547_v38 = vstv %s2825_s17  ;;  %v552_v39 = vperm.slane %v546_v28, 0  ;;  %s683_s17 = scalar_lea.vmem [#allocation5], %s2897_s10  ;;  %s886_s10 = sand.u32 1, %s2950_s23 }
  0x5f   : > { %514 = vadd.xlane.f32.xlu1 %v513_v32  ;;  %vm548_vm4 = vcmp.eq.s32.totalorder %v2543_v1, %v547_v38  ;;  %vm549_vm5 = vcmp.eq.s32.totalorder %v2546_v2, %v547_v38  ;;  %vm550_vm6 = vcmp.eq.s32.totalorder %v2549_v3, %v547_v38  ;;  %v553_v40 = vperm.slane %v546_v28, 1  ;;  %v684_v33 = vld [vmem:[%s683_s17] ss:$2 sm:$0x7]  ;;  %s915_s17 = sadd.s32 1, %s2995_s9  ;;  %s1021_s23 = sshra.s32 %s3023_s16, 1 }
  0x60   : > { %v530_v41 = vadd.f32 %v529_v37, %v528_v36  ;;  %v554_v42 = vperm.slane %v546_v28, 2  ;;  %v558_v43 = vsel %vm548_vm4, %v552_v39, 0.0  ;;  %v571_v44 = vstv %s570_s24  ;;  %s752_s24 = scalar_lea.vmem [#allocation5], %s2931_s19 }
  0x61   : > { %v559_v45 = vsel %vm549_vm5, %v553_v40, 0.0  ;;  %v561_v46 = vsel %vm76_vm1, %v558_v43, 0.0  ;;  %vm572_vm7 = vcmp.eq.s32.totalorder %v2543_v1, %v571_v44  ;;  %vm573_vm8 = vcmp.eq.s32.totalorder %v2546_v2, %v571_v44 }
  0x62   : > { %531 = vadd.xlane.f32.xlu2 %v530_v41  ;;  %v560_v47 = vsel %vm550_vm6, %v554_v42, 0.0  ;;  %v562_v48 = vsel %vm76_vm1, %v559_v45, 0.0  ;;  %vm574_vm9 = vcmp.eq.s32.totalorder %v2549_v3, %v571_v44  ;;  %v575_v49 = vsel %vm572_vm7, %v552_v39, 0.0 }
  0x63   : > { %v563_v50 = vadd.f32 %v562_v48, %v561_v46  ;;  %v564_v51 = vsel %vm76_vm1, %v560_v47, 0.0  ;;  %v576_v52 = vsel %vm573_vm8, %v553_v40, 0.0  ;;  %v577_v53 = vsel %vm574_vm9, %v554_v42, 0.0 }
  0x64   : > { %v578_v54 = vsel %vm76_vm1, %v575_v49, 0.0  ;;  %v579_v55 = vsel %vm76_vm1, %v576_v52, 0.0  ;;  %v581_v56 = vsel %vm76_vm1, %v577_v53, 0.0  ;;  %v588_v57 = vstv %s587_s27  ;;  %s794_s27 = sadd.s32 2, %s2917_s14 }
  0x65   : > { %v565_v58 = vadd.f32 %v564_v51, %v563_v50  ;;  %v580_v59 = vadd.f32 %v579_v55, %v578_v54  ;;  %vm589_vm10 = vcmp.eq.s32.totalorder %v2543_v1, %v588_v57  ;;  %vm590_vm11 = vcmp.eq.s32.totalorder %v2546_v2, %v588_v57 }
  0x66   : > { %vm591_vm12 = vcmp.eq.s32.totalorder %v2549_v3, %v588_v57  ;;  %v592_v60 = vsel %vm589_vm10, %v552_v39, 0.0  ;;  %v593_v61 = vsel %vm590_vm11, %v553_v40, 0.0  ;;  %v616_v63 = vstv %s2850_s0  ;;  %s2391_s0 = smul.u32 6, %s814_s22 }
  0x67   : > { %566 = vadd.xlane.f32.xlu0 %v565_v58  ;;  %v582_v0 = vadd.f32 %v581_v56, %v580_v59  ;;  %v594_v4 = vsel %vm591_vm12, %v554_v42, 0.0  ;;  %v595_v5 = vsel %vm76_vm1, %v592_v60, 0.0  ;;  %v596_v6 = vsel %vm76_vm1, %v593_v61, 0.0 }
  0x68   : > { %v597_v7 = vadd.f32 %v596_v6, %v595_v5  ;;  %v598_v8 = vsel %vm76_vm1, %v594_v4, 0.0  ;;  %vm617_vm13 = vcmp.eq.s32.totalorder %v2543_v1, %v616_v63  ;;  %vm618_vm14 = vcmp.eq.s32.totalorder %v2546_v2, %v616_v63 }
  0x69   : > { %583 = vadd.xlane.f32.xlu1 %v582_v0  ;;  %vm619_vm15 = vcmp.eq.s32.totalorder %v2549_v3, %v616_v63  ;;  %v621_v10 = vperm.slane %v615_v62, 0  ;;  %v622_v11 = vperm.slane %v615_v62, 1  ;;  %v623_v12 = vperm.slane %v615_v62, 2  ;;  %v753_v62 = vld [vmem:[%s752_s24] ss:$2 sm:$0x7] }
  0x6a   : > { %v599_v13 = vadd.f32 %v598_v8, %v597_v7  ;;  %v640_v14 = vstv %s639_s7  ;;  %v657_v15 = vstv %s656_s8  ;;  %v685_v16 = vstv %s2872_s29  ;;  %s2969_s29 = sadd.s32 %s2391_s0, %s817_s25  ;;  %s2392_s8 = smul.u32 6, %s883_s6 }
  0x6b   : > { %v627_v17 = vsel %vm617_vm13, %v621_v10, 0.0  ;;  %v628_v18 = vsel %vm618_vm14, %v622_v11, 0.0  ;;  %v629_v19 = vsel %vm619_vm15, %v623_v12, 0.0  ;;  %vm641_vm0 = vcmp.eq.s32.totalorder %v2543_v1, %v640_v14  ;;  %s821_s7 = scalar_lea.vmem [#allocation5], %s2969_s29  ;;  %s1087_s0 = sadd.s32 15, %s2557_s2 }
  0x6c   : > { %600 = vadd.xlane.f32.xlu2 %v599_v13  ;;  %v630_v9 = vsel %vm76_vm1, %v627_v17, 0.0  ;;  %v631_v20 = vsel %vm76_vm1, %v628_v18, 0.0  ;;  %v633_v21 = vsel %vm76_vm1, %v629_v19, 0.0  ;;  %vm642_vm2 = vcmp.eq.s32.totalorder %v2546_v2, %v640_v14  ;;  %s3003_s11 = sadd.s32 %s2392_s8, %s886_s10  ;;  %s3052_s24 = sld [smem:[#allocation4 + %s1018_s13]] }
  0x6d   : > { %v632_v22 = vadd.f32 %v631_v20, %v630_v9  ;;  %vm643_vm3 = vcmp.eq.s32.totalorder %v2549_v3, %v640_v14  ;;  %v644_v23 = vsel %vm641_vm0, %v621_v10, 0.0  ;;  %v645_v24 = vsel %vm642_vm2, %v622_v11, 0.0  ;;  %s890_s18 = scalar_lea.vmem [#allocation5], %s3003_s11  ;;  %s3059_s25 = sld [smem:[#allocation3 + %s1087_s0]] }
  0x6e   : > { %v646_v25 = vsel %vm643_vm3, %v623_v12, 0.0  ;;  %v647_v26 = vsel %vm76_vm1, %v644_v23, 0.0  ;;  %v648_v27 = vsel %vm76_vm1, %v645_v24, 0.0  ;;  %vm658_vm4 = vcmp.eq.s32.totalorder %v2543_v1, %v657_v15  ;;  %s1024_s29 = sand.u32 1, %s3023_s16  ;;  %s3115_s13 = sld [smem:[#allocation4 + %s1087_s0]] }
  0x6f   : > { %v634_v28 = vadd.f32 %v633_v21, %v632_v22  ;;  %v649_v29 = vadd.f32 %v648_v27, %v647_v26  ;;  %v650_v30 = vsel %vm76_vm1, %v646_v25, 0.0  ;;  %vm659_vm5 = vcmp.eq.s32.totalorder %v2546_v2, %v657_v15 }
  0x70   : > { %vm660_vm6 = vcmp.eq.s32.totalorder %v2549_v3, %v657_v15  ;;  %v661_v31 = vsel %vm658_vm4, %v621_v10, 0.0  ;;  %v662_v32 = vsel %vm659_vm5, %v622_v11, 0.0  ;;  %vm686_vm7 = vcmp.eq.s32.totalorder %v2543_v1, %v685_v16 }
  0x71   : > { %635 = vadd.xlane.f32.xlu0 %v634_v28  ;;  %v651_v34 = vadd.f32 %v650_v30, %v649_v29  ;;  %v663_v35 = vsel %vm660_vm6, %v623_v12, 0.0  ;;  %v664_v36 = vsel %vm76_vm1, %v661_v31, 0.0  ;;  %v665_v37 = vsel %vm76_vm1, %v662_v32, 0.0  ;;  %v822_v30 = vld [vmem:[%s821_s7] ss:$2 sm:$0x7] }
  0x72   : > { %v666_v38 = vadd.f32 %v665_v37, %v664_v36  ;;  %v667_v39 = vsel %vm76_vm1, %v663_v35, 0.0  ;;  %vm687_vm8 = vcmp.eq.s32.totalorder %v2546_v2, %v685_v16  ;;  %vm688_vm9 = vcmp.eq.s32.totalorder %v2549_v3, %v685_v16  ;;  %s1156_s7 = sadd.s32 16, %s2557_s2  ;;  %s1070_s11 = sadd.s32 2, %s3052_s24 }
  0x73   : > { %652 = vadd.xlane.f32.xlu1 %v651_v34  ;;  %v690_v40 = vperm.slane %v684_v33, 0  ;;  %v691_v41 = vperm.slane %v684_v33, 1  ;;  %v692_v42 = vperm.slane %v684_v33, 2  ;;  %v709_v43 = vstv %s708_s15  ;;  %s952_s15 = sshra.s32 %s2987_s4, 1  ;;  %s3164_s0 = sld [smem:[#allocation4 + %s1156_s7]] }
  0x74   : > { %v668_v44 = vadd.f32 %v667_v39, %v666_v38  ;;  %vm710_vm10 = vcmp.eq.s32.totalorder %v2543_v1, %v709_v43  ;;  %vm711_vm11 = vcmp.eq.s32.totalorder %v2546_v2, %v709_v43  ;;  %vm712_vm12 = vcmp.eq.s32.totalorder %v2549_v3, %v709_v43  ;;  %s2393_s19 = smul.u32 6, %s952_s15  ;;  %s1225_s15 = sadd.s32 17, %s2557_s2 }
  0x75   : > { %v696_v45 = vsel %vm686_vm7, %v690_v40, 0.0  ;;  %v697_v46 = vsel %vm687_vm8, %v691_v41, 0.0  ;;  %v698_v47 = vsel %vm688_vm9, %v692_v42, 0.0  ;;  %v713_v48 = vsel %vm710_vm10, %v690_v40, 0.0 }
  0x76   : > { %669 = vadd.xlane.f32.xlu2 %v668_v44  ;;  %v699_v49 = vsel %vm76_vm1, %v696_v45, 0.0  ;;  %v700_v50 = vsel %vm76_vm1, %v697_v46, 0.0  ;;  %v702_v51 = vsel %vm76_vm1, %v698_v47, 0.0  ;;  %v714_v52 = vsel %vm711_vm11, %v691_v41, 0.0 }
  0x77   : > { %v701_v53 = vadd.f32 %v700_v50, %v699_v49  ;;  %v715_v54 = vsel %vm712_vm12, %v692_v42, 0.0  ;;  %v716_v55 = vsel %vm76_vm1, %v713_v48, 0.0  ;;  %v717_v56 = vsel %vm76_vm1, %v714_v52, 0.0 }
  0x78   : > { %v718_v57 = vadd.f32 %v717_v56, %v716_v55  ;;  %v719_v58 = vsel %vm76_vm1, %v715_v54, 0.0  ;;  %v726_v59 = vstv %s725_s21  ;;  %v754_v60 = vstv %s2917_s14  ;;  %s3014_s14 = sld [smem:[#allocation4 + %s949_s30]]  ;;  %s955_s21 = sand.u32 1, %s2987_s4 }
  0x79   : > { %v703_v61 = vadd.f32 %v702_v51, %v701_v53  ;;  %vm727_vm13 = vcmp.eq.s32.totalorder %v2543_v1, %v726_v59  ;;  %vm728_vm14 = vcmp.eq.s32.totalorder %v2546_v2, %v726_v59  ;;  %vm729_vm15 = vcmp.eq.s32.totalorder %v2549_v3, %v726_v59  ;;  %s3039_s22 = sadd.s32 %s2393_s19, %s955_s21  ;;  %s1090_s4 = sshra.s32 %s3059_s25, 1 }
  0x7a   : > { %v720_v63 = vadd.f32 %v719_v58, %v718_v57  ;;  %v730_v0 = vsel %vm727_vm13, %v690_v40, 0.0  ;;  %v731_v4 = vsel %vm728_vm14, %v691_v41, 0.0  ;;  %v732_v5 = vsel %vm729_vm15, %v692_v42, 0.0  ;;  %s2395_s10 = smul.u32 6, %s1090_s4 }
  0x7b   : > { %704 = vadd.xlane.f32.xlu0 %v703_v61  ;;  %v733_v6 = vsel %vm76_vm1, %v730_v0, 0.0  ;;  %v734_v7 = vsel %vm76_vm1, %v731_v4, 0.0  ;;  %v736_v8 = vsel %vm76_vm1, %v732_v5, 0.0  ;;  %vm755_vm0 = vcmp.eq.s32.totalorder %v2543_v1, %v754_v60  ;;  %v891_v0 = vld [vmem:[%s890_s18] ss:$2 sm:$0x7] }
  0x7c   : > { %721 = vadd.xlane.f32.xlu1 %v720_v63  ;;  %v735_v10 = vadd.f32 %v734_v7, %v733_v6  ;;  %vm756_vm2 = vcmp.eq.s32.totalorder %v2546_v2, %v754_v60  ;;  %vm757_vm3 = vcmp.eq.s32.totalorder %v2549_v3, %v754_v60  ;;  %v759_v11 = vperm.slane %v753_v62, 0 }
  0x7d   : > { %v760_v12 = vperm.slane %v753_v62, 1  ;;  %v761_v13 = vperm.slane %v753_v62, 2  ;;  %v778_v14 = vstv %s777_s26  ;;  %v795_v15 = vstv %s794_s27  ;;  %s2394_s27 = smul.u32 6, %s1021_s23 }
  0x7e   : > { %v737_v16 = vadd.f32 %v736_v8, %v735_v10  ;;  %v765_v17 = vsel %vm755_vm0, %v759_v11, 0.0  ;;  %vm779_vm4 = vcmp.eq.s32.totalorder %v2543_v1, %v778_v14  ;;  %vm780_vm5 = vcmp.eq.s32.totalorder %v2546_v2, %v778_v14  ;;  %s984_s26 = sadd.s32 1, %s3014_s14  ;;  %s1001_s6 = sadd.s32 2, %s3014_s14 }
  0x7f   : > { %v766_v18 = vsel %vm756_vm2, %v760_v12, 0.0  ;;  %v767_v19 = vsel %vm757_vm3, %v761_v13, 0.0  ;;  %v768_v9 = vsel %vm76_vm1, %v765_v17, 0.0  ;;  %vm781_vm6 = vcmp.eq.s32.totalorder %v2549_v3, %v778_v14  ;;  %s3075_s30 = sadd.s32 %s2394_s27, %s1024_s29 }
  0x80   : > { %738 = vadd.xlane.f32.xlu2 %v737_v16  ;;  %v769_v20 = vsel %vm76_vm1, %v766_v18, 0.0  ;;  %v771_v21 = vsel %vm76_vm1, %v767_v19, 0.0  ;;  %v782_v22 = vsel %vm779_vm4, %v759_v11, 0.0  ;;  %v783_v23 = vsel %vm780_vm5, %v760_v12, 0.0  ;;  %s1028_s8 = scalar_lea.vmem [#allocation5], %s3075_s30  ;;  %s1191_s30 = sadd.s32 1, %s3164_s0 }
  0x81   : > { %v770_v24 = vadd.f32 %v769_v20, %v768_v9  ;;  %v784_v25 = vsel %vm781_vm6, %v761_v13, 0.0  ;;  %v785_v26 = vsel %vm76_vm1, %v782_v22, 0.0  ;;  %v786_v27 = vsel %vm76_vm1, %v783_v23, 0.0 }
  0x82   : > { %v787_v28 = vadd.f32 %v786_v27, %v785_v26  ;;  %v788_v29 = vsel %vm76_vm1, %v784_v25, 0.0  ;;  %vm796_vm7 = vcmp.eq.s32.totalorder %v2543_v1, %v795_v15  ;;  %vm797_vm8 = vcmp.eq.s32.totalorder %v2546_v2, %v795_v15 }
  0x83   : > { %v772_v31 = vadd.f32 %v771_v21, %v770_v24  ;;  %vm798_vm9 = vcmp.eq.s32.totalorder %v2549_v3, %v795_v15  ;;  %v799_v32 = vsel %vm796_vm7, %v759_v11, 0.0  ;;  %v800_v33 = vsel %vm797_vm8, %v760_v12, 0.0 }
  0x84   : > { %v789_v34 = vadd.f32 %v788_v29, %v787_v28  ;;  %v801_v35 = vsel %vm798_vm9, %v761_v13, 0.0  ;;  %v802_v36 = vsel %vm76_vm1, %v799_v32, 0.0  ;;  %v803_v37 = vsel %vm76_vm1, %v800_v33, 0.0 }
  0x85   : > { %773 = vadd.xlane.f32.xlu0 %v772_v31  ;;  %v804_v38 = vadd.f32 %v803_v37, %v802_v36  ;;  %v805_v39 = vsel %vm76_vm1, %v801_v35, 0.0  ;;  %v823_v40 = vstv %s2965_s28  ;;  %v828_v41 = vperm.slane %v822_v30, 0  ;;  %s959_s28 = scalar_lea.vmem [#allocation5], %s3039_s22  ;;  %s3151_s22 = scalar_lea.vmem [#allocation8], %s2508_s1 }
  0x86   : > { %790 = vadd.xlane.f32.xlu1 %v789_v34  ;;  %vm824_vm10 = vcmp.eq.s32.totalorder %v2543_v1, %v823_v40  ;;  %vm825_vm11 = vcmp.eq.s32.totalorder %v2546_v2, %v823_v40  ;;  %vm826_vm12 = vcmp.eq.s32.totalorder %v2549_v3, %v823_v40  ;;  %v829_v42 = vperm.slane %v822_v30, 1  ;;  %v960_v35 = vld [vmem:[%s959_s28] ss:$2 sm:$0x7]  ;;  %s48_s1 = sadd.s32 1, %s2508_s1  }
  0x87   : > { %v806_v43 = vadd.f32 %v805_v39, %v804_v38  ;;  %v830_v44 = vperm.slane %v822_v30, 2  ;;  %v834_v45 = vsel %vm824_vm10, %v828_v41, 0.0  ;;  %v847_v46 = vstv %s846_s5  ;;  %s3098_s5 = sld [smem:[#allocation3 + %s1156_s7]]  ;;  %p45_p0 = scmp.ge.s32.totalorder %s48_s1, 8  }
  0x88   : > { %v835_v47 = vsel %vm825_vm11, %v829_v42, 0.0  ;;  %v837_v48 = vsel %vm76_vm1, %v834_v45, 0.0  ;;  %vm848_vm13 = vcmp.eq.s32.totalorder %v2543_v1, %v847_v46  ;;  %vm849_vm14 = vcmp.eq.s32.totalorder %v2546_v2, %v847_v46  ;;  %s3219_s7 = sld [smem:[#allocation4 + %s1225_s15]] }
  0x89   : > { %807 = vadd.xlane.f32.xlu2 %v806_v43  ;;  %v836_v49 = vsel %vm826_vm12, %v830_v44, 0.0  ;;  %v838_v50 = vsel %vm76_vm1, %v835_v47, 0.0  ;;  %vm850_vm15 = vcmp.eq.s32.totalorder %v2549_v3, %v847_v46  ;;  %v851_v51 = vsel %vm848_vm13, %v828_v41, 0.0 }
  0x8a   : > { %v839_v52 = vadd.f32 %v838_v50, %v837_v48  ;;  %v840_v53 = vsel %vm76_vm1, %v836_v49, 0.0  ;;  %v852_v54 = vsel %vm849_vm14, %v829_v42, 0.0  ;;  %v853_v55 = vsel %vm850_vm15, %v830_v44, 0.0 }
  0x8b   : > { %v854_v56 = vsel %vm76_vm1, %v851_v51, 0.0  ;;  %v855_v57 = vsel %vm76_vm1, %v852_v54, 0.0  ;;  %v857_v58 = vsel %vm76_vm1, %v853_v55, 0.0  ;;  %v864_v59 = vstv %s863_s12  ;;  %s1093_s12 = sand.u32 1, %s3059_s25  ;;  %s1294_s25 = sadd.s32 18, %s2557_s2 }
  0x8c   : > { %v841_v60 = vadd.f32 %v840_v53, %v839_v52  ;;  %v856_v61 = vadd.f32 %v855_v57, %v854_v56  ;;  %vm865_vm0 = vcmp.eq.s32.totalorder %v2543_v1, %v864_v59  ;;  %vm866_vm2 = vcmp.eq.s32.totalorder %v2546_v2, %v864_v59  ;;  %s3194_s28 = sld [smem:[#allocation3 + %s1294_s25]] }
  0x8d   : > { %vm867_vm3 = vcmp.eq.s32.totalorder %v2549_v3, %v864_v59  ;;  %v868_v62 = vsel %vm865_vm0, %v828_v41, 0.0  ;;  %v869_v63 = vsel %vm866_vm2, %v829_v42, 0.0  ;;  %v892_v4 = vstv %s2995_s9  ;;  %s1053_s9 = sadd.s32 1, %s3052_s24  ;;  %s1159_s16 = sshra.s32 %s3098_s5, 1 }
  0x8e   : > { %842 = vadd.xlane.f32.xlu0 %v841_v60  ;;  %v858_v5 = vadd.f32 %v857_v58, %v856_v61  ;;  %v870_v6 = vsel %vm867_vm3, %v830_v44, 0.0  ;;  %v871_v7 = vsel %vm76_vm1, %v868_v62, 0.0  ;;  %v872_v8 = vsel %vm76_vm1, %v869_v63, 0.0  ;;  %s2396_s19 = smul.u32 6, %s1159_s16  ;;  %s1162_s21 = sand.u32 1, %s3098_s5 }
  0x8f   : > { %v873_v10 = vadd.f32 %v872_v8, %v871_v7  ;;  %v874_v11 = vsel %vm76_vm1, %v870_v6, 0.0  ;;  %vm893_vm4 = vcmp.eq.s32.totalorder %v2543_v1, %v892_v4  ;;  %vm894_vm5 = vcmp.eq.s32.totalorder %v2546_v2, %v892_v4  ;;  %v1029_v6 = vld [vmem:[%s1028_s8] ss:$2 sm:$0x7]  ;;  %s1208_s5 = sadd.s32 2, %s3164_s0  ;;  %s1363_s8 = sadd.s32 19, %s2557_s2 }
  0x90   : > { %859 = vadd.xlane.f32.xlu1 %v858_v5  ;;  %vm895_vm6 = vcmp.eq.s32.totalorder %v2549_v3, %v892_v4  ;;  %v897_v12 = vperm.slane %v891_v0, 0  ;;  %v898_v13 = vperm.slane %v891_v0, 1  ;;  %v899_v14 = vperm.slane %v891_v0, 2  ;;  %s3166_s23 = sadd.s32 %s2396_s19, %s1162_s21 }
  0x91   : > { %v875_v15 = vadd.f32 %v874_v11, %v873_v10  ;;  %v916_v16 = vstv %s915_s17  ;;  %v933_v17 = vstv %s932_s20  ;;  %v961_v18 = vstv %s3014_s14  ;;  %s3121_s14 = sadd.s32 %s2395_s10, %s1093_s12  ;;  %s3140_s17 = sld [smem:[#allocation3 + %s1225_s15]] }
  0x92   : > { %v903_v19 = vsel %vm893_vm4, %v897_v12, 0.0  ;;  %v904_v9 = vsel %vm894_vm5, %v898_v13, 0.0  ;;  %v905_v20 = vsel %vm895_vm6, %v899_v14, 0.0  ;;  %vm917_vm7 = vcmp.eq.s32.totalorder %v2543_v1, %v916_v16  ;;  %s1097_s18 = scalar_lea.vmem [#allocation5], %s3121_s14  ;;  %s1122_s20 = sadd.s32 1, %s3115_s13 }
  0x93   : > { %876 = vadd.xlane.f32.xlu2 %v875_v15  ;;  %v906_v21 = vsel %vm76_vm1, %v903_v19, 0.0  ;;  %v907_v22 = vsel %vm76_vm1, %v904_v9, 0.0  ;;  %v909_v23 = vsel %vm76_vm1, %v905_v20, 0.0  ;;  %vm918_vm8 = vcmp.eq.s32.totalorder %v2546_v2, %v916_v16  ;;  %s1166_s27 = scalar_lea.vmem [#allocation5], %s3166_s23  ;;  %s3243_s10 = sld [smem:[#allocation3 + %s1363_s8]] }
  0x94   : > { %v908_v24 = vadd.f32 %v907_v22, %v906_v21  ;;  %vm919_vm9 = vcmp.eq.s32.totalorder %v2549_v3, %v916_v16  ;;  %v920_v25 = vsel %vm917_vm7, %v897_v12, 0.0  ;;  %v921_v26 = vsel %vm918_vm8, %v898_v13, 0.0  ;;  %s1260_s14 = sadd.s32 1, %s3219_s7  ;;  %s3267_s15 = sld [smem:[#allocation4 + %s1294_s25]] }
  0x95   : > { %v922_v27 = vsel %vm919_vm9, %v899_v14, 0.0  ;;  %v923_v28 = vsel %vm76_vm1, %v920_v25, 0.0  ;;  %v924_v29 = vsel %vm76_vm1, %v921_v26, 0.0  ;;  %vm934_vm10 = vcmp.eq.s32.totalorder %v2543_v1, %v933_v17  ;;  %s3319_s25 = sld [smem:[#allocation4 + %s1363_s8]] }
  0x96   : > { %v910_v30 = vadd.f32 %v909_v23, %v908_v24  ;;  %v925_v31 = vadd.f32 %v924_v29, %v923_v28  ;;  %v926_v32 = vsel %vm76_vm1, %v922_v27, 0.0  ;;  %vm935_vm11 = vcmp.eq.s32.totalorder %v2546_v2, %v933_v17 }
  0x97   : > { %vm936_vm12 = vcmp.eq.s32.totalorder %v2549_v3, %v933_v17  ;;  %v937_v33 = vsel %vm934_vm10, %v897_v12, 0.0  ;;  %v938_v34 = vsel %vm935_vm11, %v898_v13, 0.0  ;;  %vm962_vm13 = vcmp.eq.s32.totalorder %v2543_v1, %v961_v18 }
  0x98   : > { %911 = vadd.xlane.f32.xlu0 %v910_v30  ;;  %v927_v36 = vadd.f32 %v926_v32, %v925_v31  ;;  %v939_v37 = vsel %vm936_vm12, %v899_v14, 0.0  ;;  %v940_v38 = vsel %vm76_vm1, %v937_v33, 0.0  ;;  %v941_v39 = vsel %vm76_vm1, %v938_v34, 0.0 }
  0x99   : > { %v942_v40 = vadd.f32 %v941_v39, %v940_v38  ;;  %v943_v41 = vsel %vm76_vm1, %v939_v37, 0.0  ;;  %vm963_vm14 = vcmp.eq.s32.totalorder %v2546_v2, %v961_v18  ;;  %vm964_vm15 = vcmp.eq.s32.totalorder %v2549_v3, %v961_v18  ;;  %v3073_v42 = vpop.xlane.xlu0 %82  ;;  %s1366_s19 = sshra.s32 %s3243_s10, 1 }
  0x9a   : > { %928 = vadd.xlane.f32.xlu1 %v927_v36  ;;  %v966_v43 = vperm.slane %v960_v35, 0  ;;  %v967_v44 = vperm.slane %v960_v35, 1  ;;  %v968_v45 = vperm.slane %v960_v35, 2  ;;  %v985_v46 = vstv %s984_s26  ;;  %v3077_v47 = vpop.xlane.xlu1 %117  ;;  %s1228_s26 = sshra.s32 %s3140_s17, 1  ;;  %s2399_s23 = smul.u32 6, %s1366_s19 }
  0x9b   : > { %v944_v48 = vadd.f32 %v943_v41, %v942_v40  ;;  %vm986_vm0 = vcmp.eq.s32.totalorder %v2543_v1, %v985_v46  ;;  %vm987_vm2 = vcmp.eq.s32.totalorder %v2546_v2, %v985_v46  ;;  %vm988_vm3 = vcmp.eq.s32.totalorder %v2549_v3, %v985_v46  ;;  %v1098_v41 = vld [vmem:[%s1097_s18] ss:$2 sm:$0x7]  ;;  %s2397_s29 = smul.u32 6, %s1228_s26  ;;  %s1432_s18 = sadd.s32 20, %s2557_s2 }
  0x9c   : > { %v972_v49 = vsel %vm962_vm13, %v966_v43, 0.0  ;;  %v973_v50 = vsel %vm963_vm14, %v967_v44, 0.0  ;;  %v974_v51 = vsel %vm964_vm15, %v968_v45, 0.0  ;;  %v989_v52 = vsel %vm986_vm0, %v966_v43, 0.0  ;;  %s3367_s8 = sld [smem:[#allocation4 + %s1432_s18]] }
  0x9d   : > { %945 = vadd.xlane.f32.xlu2 %v944_v48  ;;  %v975_v53 = vsel %vm76_vm1, %v972_v49, 0.0  ;;  %v976_v54 = vsel %vm76_vm1, %v973_v50, 0.0  ;;  %v978_v55 = vsel %vm76_vm1, %v974_v51, 0.0  ;;  %v990_v56 = vsel %vm987_vm2, %v967_v44, 0.0 }
  0x9e   : > { %v977_v57 = vadd.f32 %v976_v54, %v975_v53  ;;  %v991_v58 = vsel %vm988_vm3, %v968_v45, 0.0  ;;  %v992_v59 = vsel %vm76_vm1, %v989_v52, 0.0  ;;  %v993_v60 = vsel %vm76_vm1, %v990_v56, 0.0  ;;  %v3092_v61 = vpop.xlane.xlu2 %169 }
  0x9f   : > { %v994_v62 = vadd.f32 %v993_v60, %v992_v59  ;;  %v995_v63 = vsel %vm76_vm1, %v991_v58, 0.0  ;;  %v1002_v0 = vstv %s1001_s6  ;;  %v1030_v4 = vstv %s3052_s24  ;;  %s1139_s24 = sadd.s32 2, %s3115_s13  ;;  %s1231_s6 = sand.u32 1, %s3140_s17 }
  0xa0   : > { %v979_v5 = vadd.f32 %v978_v55, %v977_v57  ;;  %vm1003_vm4 = vcmp.eq.s32.totalorder %v2543_v1, %v1002_v0  ;;  %vm1004_vm5 = vcmp.eq.s32.totalorder %v2546_v2, %v1002_v0  ;;  %vm1005_vm6 = vcmp.eq.s32.totalorder %v2549_v3, %v1002_v0  ;;  %s3221_s4 = sadd.s32 %s2397_s29, %s1231_s6  ;;  %s1277_s17 = sadd.s32 2, %s3219_s7 }
  0xa1   : > { %v996_v7 = vadd.f32 %v995_v63, %v994_v62  ;;  %v1006_v8 = vsel %vm1003_vm4, %v966_v43, 0.0  ;;  %v1007_v10 = vsel %vm1004_vm5, %v967_v44, 0.0  ;;  %v1008_v11 = vsel %vm1005_vm6, %v968_v45, 0.0  ;;  %v3117_v17 = vpop.xlane.xlu0 %100  ;;  %s1501_s29 = sadd.s32 21, %s2557_s2 }
  0xa2   : > { %980 = vadd.xlane.f32.xlu0 %v979_v5  ;;  %v1009_v12 = vsel %vm76_vm1, %v1006_v8, 0.0  ;;  %v1010_v13 = vsel %vm76_vm1, %v1007_v10, 0.0  ;;  %v1012_v14 = vsel %vm76_vm1, %v1008_v11, 0.0  ;;  %vm1031_vm7 = vcmp.eq.s32.totalorder %v2543_v1, %v1030_v4  ;;  %v3119_v18 = vpop.xlane.xlu1 %152 }
  0xa3   : > { %997 = vadd.xlane.f32.xlu1 %v996_v7  ;;  %v1011_v15 = vadd.f32 %v1010_v13, %v1009_v12  ;;  %vm1032_vm8 = vcmp.eq.s32.totalorder %v2546_v2, %v1030_v4  ;;  %vm1033_vm9 = vcmp.eq.s32.totalorder %v2549_v3, %v1030_v4  ;;  %v1035_v16 = vperm.slane %v1029_v6, 0 }
  0xa4   : > { %v1036_v19 = vperm.slane %v1029_v6, 1  ;;  %v1037_v9 = vperm.slane %v1029_v6, 2  ;;  %v1054_v20 = vstv %s1053_s9  ;;  %v1071_v21 = vstv %s1070_s11  ;;  %s1297_s9 = sshra.s32 %s3194_s28, 1  ;;  %s1235_s11 = scalar_lea.vmem [#allocation5], %s3221_s4 }
  0xa5   : > { %v1013_v22 = vadd.f32 %v1012_v14, %v1011_v15  ;;  %v1041_v23 = vsel %vm1031_vm7, %v1035_v16, 0.0  ;;  %vm1055_vm10 = vcmp.eq.s32.totalorder %v2543_v1, %v1054_v20  ;;  %vm1056_vm11 = vcmp.eq.s32.totalorder %v2546_v2, %v1054_v20  ;;  %v1167_v15 = vld [vmem:[%s1166_s27] ss:$2 sm:$0x7]  ;;  %s2398_s12 = smul.u32 6, %s1297_s9  ;;  %s1346_s27 = sadd.s32 2, %s3267_s15 }
  0xa6   : > { %v1042_v24 = vsel %vm1032_vm8, %v1036_v19, 0.0  ;;  %v1043_v25 = vsel %vm1033_vm9, %v1037_v9, 0.0  ;;  %v1044_v26 = vsel %vm76_vm1, %v1041_v23, 0.0  ;;  %vm1057_vm12 = vcmp.eq.s32.totalorder %v2549_v3, %v1054_v20  ;;  %v3127_v27 = vpop.xlane.xlu2 %186 }
  0xa7   : > { %1014 = vadd.xlane.f32.xlu2 %v1013_v22  ;;  %v1045_v28 = vsel %vm76_vm1, %v1042_v24, 0.0  ;;  %v1047_v29 = vsel %vm76_vm1, %v1043_v25, 0.0  ;;  %v1058_v30 = vsel %vm1055_vm10, %v1035_v16, 0.0  ;;  %v1059_v31 = vsel %vm1056_vm11, %v1036_v19, 0.0 }
  0xa8   : > { %v1046_v32 = vadd.f32 %v1045_v28, %v1044_v26  ;;  %v1060_v33 = vsel %vm1057_vm12, %v1037_v9, 0.0  ;;  %v1061_v34 = vsel %vm76_vm1, %v1058_v30, 0.0  ;;  %v1062_v35 = vsel %vm76_vm1, %v1059_v31, 0.0 }
  0xa9   : > { %v1063_v36 = vadd.f32 %v1062_v35, %v1061_v34  ;;  %v1064_v37 = vsel %vm76_vm1, %v1060_v33, 0.0  ;;  %vm1072_vm13 = vcmp.eq.s32.totalorder %v2543_v1, %v1071_v21  ;;  %vm1073_vm14 = vcmp.eq.s32.totalorder %v2546_v2, %v1071_v21 }
  0xaa   : > { %v1048_v38 = vadd.f32 %v1047_v29, %v1046_v32  ;;  %vm1074_vm15 = vcmp.eq.s32.totalorder %v2549_v3, %v1071_v21  ;;  %v1075_v39 = vsel %vm1072_vm13, %v1035_v16, 0.0  ;;  %v1076_v40 = vsel %vm1073_vm14, %v1036_v19, 0.0  ;;  %v3158_v52 = vpop.xlane.xlu0 %221 }
  0xab   : > { %v1065_v43 = vadd.f32 %v1064_v37, %v1063_v36  ;;  %v1077_v44 = vsel %vm1074_vm15, %v1037_v9, 0.0  ;;  %v1078_v45 = vsel %vm76_vm1, %v1075_v39, 0.0  ;;  %v1079_v46 = vsel %vm76_vm1, %v1076_v40, 0.0  ;;  %v3160_v53 = vpop.xlane.xlu1 %238 }
  0xac   : > { %1049 = vadd.xlane.f32.xlu0 %v1048_v38  ;;  %v1080_v48 = vadd.f32 %v1079_v46, %v1078_v45  ;;  %v1081_v49 = vsel %vm76_vm1, %v1077_v44, 0.0  ;;  %vm85_vm0 = vcmask 0   ;;  %v1099_v50 = vstv %s3115_s13  ;;  %s1300_s13 = sand.u32 1, %s3194_s28 }
  0xad   : > { %1066 = vadd.xlane.f32.xlu1 %v1065_v43  ;;  %86 = vst.msk [vmem:[%s3151_s22] sm:$0x1] %vm85_vm0, %v3073_v42  ;;  %vm1100_vm2 = vcmp.eq.s32.totalorder %v2543_v1, %v1099_v50  ;;  %vm1101_vm3 = vcmp.eq.s32.totalorder %v2546_v2, %v1099_v50  ;;  %vm1102_vm4 = vcmp.eq.s32.totalorder %v2549_v3, %v1099_v50  ;;  %v1104_v51 = vperm.slane %v1098_v41, 0  ;;  %s3272_s16 = sadd.s32 %s2398_s12, %s1300_s13 }
  0xae   : > { %v1082_v54 = vadd.f32 %v1081_v49, %v1080_v48  ;;  %v1105_v55 = vperm.slane %v1098_v41, 1  ;;  %v1106_v56 = vperm.slane %v1098_v41, 2  ;;  %v1123_v57 = vstv %s1122_s20  ;;  %v3171_v58 = vpop.xlane.xlu2 %255  ;;  %v1236_v48 = vld [vmem:[%s1235_s11] ss:$2 sm:$0x7]  ;;  %s3290_s20 = sld [smem:[#allocation3 + %s1432_s18]] }
  0xaf   : > { %v1110_v42 = vsel %vm1100_vm2, %v1104_v51, 0.0  ;;  %vm1124_vm5 = vcmp.eq.s32.totalorder %v2543_v1, %v1123_v57  ;;  %vm1125_vm6 = vcmp.eq.s32.totalorder %v2546_v2, %v1123_v57  ;;  %vm1126_vm7 = vcmp.eq.s32.totalorder %v2549_v3, %v1123_v57  ;;  %s1304_s21 = scalar_lea.vmem [#allocation5], %s3272_s16  ;;  %s1570_s11 = sadd.s32 22, %s2557_s2 }
  0xb0   : > { %1083 = vadd.xlane.f32.xlu2 %v1082_v54  ;;  %v1111_v59 = vsel %vm1101_vm3, %v1105_v55, 0.0  ;;  %v1112_v60 = vsel %vm1102_vm4, %v1106_v56, 0.0  ;;  %v1113_v62 = vsel %vm76_vm1, %v1110_v42, 0.0  ;;  %v1127_v63 = vsel %vm1124_vm5, %v1104_v51, 0.0  ;;  %s3420_s18 = sld [smem:[#allocation4 + %s1501_s29]] }
  0xb1   : > { %v1114_v0 = vsel %vm76_vm1, %v1111_v59, 0.0  ;;  %v1116_v4 = vsel %vm76_vm1, %v1112_v60, 0.0  ;;  %v1128_v5 = vsel %vm1125_vm6, %v1105_v55, 0.0  ;;  %v1129_v6 = vsel %vm1126_vm7, %v1106_v56, 0.0 }
  0xb2   : > { %v1115_v7 = vadd.f32 %v1114_v0, %v1113_v62  ;;  %v1130_v8 = vsel %vm76_vm1, %v1127_v63, 0.0  ;;  %v1131_v10 = vsel %vm76_vm1, %v1128_v5, 0.0  ;;  %v1133_v11 = vsel %vm76_vm1, %v1129_v6, 0.0 }
  0xb3   : > { %v1132_v12 = vadd.f32 %v1131_v10, %v1130_v8  ;;  %v1140_v13 = vstv %s1139_s24  ;;  %vm102_vm8 = vcmask 8200   ;;  %vm119_vm9 = vcmask 16400   ;;  %v3206_v24 = vpop.xlane.xlu0 %290  ;;  %s1369_s24 = sand.u32 1, %s3243_s10  ;;  %s1415_s10 = sadd.s32 2, %s3319_s25 }
  0xb4   : > { %v1117_v14 = vadd.f32 %v1116_v4, %v1115_v7  ;;  %vm1141_vm10 = vcmp.eq.s32.totalorder %v2543_v1, %v1140_v13  ;;  %vm1142_vm11 = vcmp.eq.s32.totalorder %v2546_v2, %v1140_v13  ;;  %vm1143_vm12 = vcmp.eq.s32.totalorder %v2549_v3, %v1140_v13  ;;  %103 = vst.msk [vmem:[%s3151_s22] sm:$0x1] %vm102_vm8, %v3117_v17  ;;  %s3321_s26 = sadd.s32 %s2399_s23, %s1369_s24  ;;  %s1435_s28 = sshra.s32 %s3290_s20, 1 }
  0xb5   : > { %v1134_v16 = vadd.f32 %v1133_v11, %v1132_v12  ;;  %v1144_v19 = vsel %vm1141_vm10, %v1104_v51, 0.0  ;;  %v1145_v9 = vsel %vm1142_vm11, %v1105_v55, 0.0  ;;  %v1146_v20 = vsel %vm1143_vm12, %v1106_v56, 0.0  ;;  %120 = vst.msk [vmem:[%s3151_s22] sm:$0x1] %vm119_vm9, %v3077_v47  ;;  %v3208_v25 = vpop.xlane.xlu1 %307  ;;  %s1373_s6 = scalar_lea.vmem [#allocation5], %s3321_s26 }
  0xb6   : > { %1118 = vadd.xlane.f32.xlu0 %v1117_v14  ;;  %v1147_v21 = vsel %vm76_vm1, %v1144_v19, 0.0  ;;  %v1148_v17 = vsel %vm76_vm1, %v1145_v9, 0.0  ;;  %v1150_v22 = vsel %vm76_vm1, %v1146_v20, 0.0  ;;  %vm154_vm13 = vcmask 24600   ;;  %s1438_s4 = sand.u32 1, %s3290_s20  ;;  %s1484_s20 = sadd.s32 2, %s3367_s8 }
  0xb7   : > { %1135 = vadd.xlane.f32.xlu1 %v1134_v16  ;;  %v1149_v23 = vadd.f32 %v1148_v17, %v1147_v21  ;;  %vm171_vm14 = vcmask 32800   ;;  %155 = vst.msk [vmem:[%s3151_s22] sm:$0x1] %vm154_vm13, %v3119_v18  ;;  %vm188_vm15 = vcmask 41000   ;;  %v1168_v47 = vstv %s3164_s0  ;;  %s1329_s0 = sadd.s32 1, %s3267_s15 }
  0xb8   : > { %172 = vst.msk [vmem:[%s3151_s22] sm:$0x1] %vm171_vm14, %v3092_v61  ;;  %vm1169_vm0 = vcmp.eq.s32.totalorder %v2543_v1, %v1168_v47  ;;  %vm1170_vm2 = vcmp.eq.s32.totalorder %v2546_v2, %v1168_v47  ;;  %vm1171_vm3 = vcmp.eq.s32.totalorder %v2549_v3, %v1168_v47  ;;  %v1173_v26 = vperm.slane %v1167_v15, 0  ;;  %v3223_v61 = vpop.xlane.xlu2 %324 }
  0xb9   : > { %v1151_v28 = vadd.f32 %v1150_v22, %v1149_v23  ;;  %189 = vst.msk [vmem:[%s3151_s22] sm:$0x1] %vm188_vm15, %v3127_v27  ;;  %v1174_v18 = vperm.slane %v1167_v15, 1  ;;  %v1175_v29 = vperm.slane %v1167_v15, 2  ;;  %v1192_v30 = vstv %s1191_s30  ;;  %s3339_s30 = smul.u32 6, %s1435_s28  ;;  %s3465_s28 = sld [smem:[#allocation4 + %s1570_s11]] }
  0xba   : > { %v1179_v31 = vsel %vm1169_vm0, %v1173_v26, 0.0  ;;  %vm1193_vm4 = vcmp.eq.s32.totalorder %v2543_v1, %v1192_v30  ;;  %vm1194_vm5 = vcmp.eq.s32.totalorder %v2546_v2, %v1192_v30  ;;  %vm1195_vm6 = vcmp.eq.s32.totalorder %v2549_v3, %v1192_v30  ;;  %v1305_v22 = vld [vmem:[%s1304_s21] ss:$2 sm:$0x7]  ;;  %s1639_s21 = sadd.s32 23, %s2557_s2 }
  0xbb   : > { %1152 = vadd.xlane.f32.xlu2 %v1151_v28  ;;  %v1180_v27 = vsel %vm1170_vm2, %v1174_v18, 0.0  ;;  %v1181_v32 = vsel %vm1171_vm3, %v1175_v29, 0.0  ;;  %v1182_v33 = vsel %vm76_vm1, %v1179_v31, 0.0  ;;  %v1196_v34 = vsel %vm1193_vm4, %v1173_v26, 0.0  ;;  %s3375_s9 = sadd.s32 %s3339_s30, %s1438_s4  ;;  %s3438_s23 = sld [smem:[#allocation3 + %s1639_s21]] }
  0xbc   : > { %v1183_v35 = vsel %vm76_vm1, %v1180_v27, 0.0  ;;  %v1185_v36 = vsel %vm76_vm1, %v1181_v32, 0.0  ;;  %v1197_v37 = vsel %vm1194_vm5, %v1174_v18, 0.0  ;;  %v1198_v38 = vsel %vm1195_vm6, %v1175_v29, 0.0  ;;  %s1442_s13 = scalar_lea.vmem [#allocation5], %s3375_s9  ;;  %s1553_s30 = sadd.s32 2, %s3420_s18 }
  0xbd   : > { %v1184_v39 = vadd.f32 %v1183_v35, %v1182_v33  ;;  %v1199_v40 = vsel %vm76_vm1, %v1196_v34, 0.0  ;;  %v1200_v41 = vsel %vm76_vm1, %v1197_v37, 0.0  ;;  %v1202_v43 = vsel %vm76_vm1, %v1198_v38, 0.0  ;;  %v3258_v57 = vpop.xlane.xlu0 %359 }
  0xbe   : > { %v1201_v44 = vadd.f32 %v1200_v41, %v1199_v40  ;;  %v1209_v45 = vstv %s1208_s5  ;;  %vm223_vm7 = vcmask 49200   ;;  %vm240_vm8 = vcmask 57400   ;;  %s1398_s5 = sadd.s32 1, %s3319_s25 }
  0xbf   : > { %v1186_v46 = vadd.f32 %v1185_v36, %v1184_v39  ;;  %vm1210_vm9 = vcmp.eq.s32.totalorder %v2543_v1, %v1209_v45  ;;  %vm1211_vm10 = vcmp.eq.s32.totalorder %v2546_v2, %v1209_v45  ;;  %vm1212_vm11 = vcmp.eq.s32.totalorder %v2549_v3, %v1209_v45  ;;  %224 = vst.msk [vmem:[%s3151_s22] sm:$0x1] %vm223_vm7, %v3158_v52  ;;  %v3260_v42 = vpop.xlane.xlu1 %376 }
  0xc0   : > { %v1203_v49 = vadd.f32 %v1202_v43, %v1201_v44  ;;  %v1213_v50 = vsel %vm1210_vm9, %v1173_v26, 0.0  ;;  %v1214_v51 = vsel %vm1211_vm10, %v1174_v18, 0.0  ;;  %v1215_v54 = vsel %vm1212_vm11, %v1175_v29, 0.0  ;;  %241 = vst.msk [vmem:[%s3151_s22] sm:$0x1] %vm240_vm8, %v3160_v53 }
  0xc1   : > { %1187 = vadd.xlane.f32.xlu0 %v1186_v46  ;;  %v1216_v55 = vsel %vm76_vm1, %v1213_v50, 0.0  ;;  %v1217_v56 = vsel %vm76_vm1, %v1214_v51, 0.0  ;;  %v1219_v52 = vsel %vm76_vm1, %v1215_v54, 0.0  ;;  %vm257_vm12 = vcmask 65600  }
  0xc2   : > { %1204 = vadd.xlane.f32.xlu1 %v1203_v49  ;;  %v1218_v59 = vadd.f32 %v1217_v56, %v1216_v55  ;;  %258 = vst.msk [vmem:[%s3151_s22] sm:$0x1] %vm257_vm12, %v3171_v58  ;;  %v1237_v53 = vstv %s3219_s7  ;;  %v1242_v60 = vperm.slane %v1236_v48, 0  ;;  %v1243_v62 = vperm.slane %v1236_v48, 1  ;;  %v3274_v0 = vpop.xlane.xlu2 %393  ;;  %s3349_s7 = sld [smem:[#allocation3 + %s1501_s29]] }
  0xc3   : > { %vm1238_vm13 = vcmp.eq.s32.totalorder %v2543_v1, %v1237_v53  ;;  %vm1239_vm14 = vcmp.eq.s32.totalorder %v2546_v2, %v1237_v53  ;;  %vm1240_vm15 = vcmp.eq.s32.totalorder %v2549_v3, %v1237_v53  ;;  %v1244_v63 = vperm.slane %v1236_v48, 2 }
  0xc4   : > { %v1220_v4 = vadd.f32 %v1219_v52, %v1218_v59  ;;  %v1248_v58 = vsel %vm1238_vm13, %v1242_v60, 0.0  ;;  %v1249_v5 = vsel %vm1239_vm14, %v1243_v62, 0.0  ;;  %v1261_v6 = vstv %s1260_s14  ;;  %v1374_v52 = vld [vmem:[%s1373_s6] ss:$2 sm:$0x7]  ;;  %s3395_s14 = sld [smem:[#allocation3 + %s1570_s11]] }
  0xc5   : > { %v1250_v7 = vsel %vm1240_vm15, %v1244_v63, 0.0  ;;  %v1251_v8 = vsel %vm76_vm1, %v1248_v58, 0.0  ;;  %v1252_v10 = vsel %vm76_vm1, %v1249_v5, 0.0  ;;  %vm1262_vm0 = vcmp.eq.s32.totalorder %v2543_v1, %v1261_v6  ;;  %s1708_s6 = sadd.s32 24, %s2557_s2  ;;  %s3515_s11 = sld [smem:[#allocation4 + %s1639_s21]] }
  0xc6   : > { %1221 = vadd.xlane.f32.xlu2 %v1220_v4  ;;  %v1253_v11 = vadd.f32 %v1252_v10, %v1251_v8  ;;  %v1254_v12 = vsel %vm76_vm1, %v1250_v7, 0.0  ;;  %vm1263_vm2 = vcmp.eq.s32.totalorder %v2546_v2, %v1261_v6  ;;  %vm1264_vm3 = vcmp.eq.s32.totalorder %v2549_v3, %v1261_v6  ;;  %s3560_s21 = sld [smem:[#allocation4 + %s1708_s6]] }
  0xc7   : > { %v1265_v13 = vsel %vm1262_vm0, %v1242_v60, 0.0  ;;  %v1266_v14 = vsel %vm1263_vm2, %v1243_v62, 0.0  ;;  %v1267_v15 = vsel %vm1264_vm3, %v1244_v63, 0.0  ;;  %v1278_v16 = vstv %s1277_s17  ;;  %v3303_v31 = vpop.xlane.xlu0 %428 }
  0xc8   : > { %v1255_v19 = vadd.f32 %v1254_v12, %v1253_v11  ;;  %v1268_v9 = vsel %vm76_vm1, %v1265_v13, 0.0  ;;  %v1269_v20 = vsel %vm76_vm1, %v1266_v14, 0.0  ;;  %v1271_v21 = vsel %vm76_vm1, %v1267_v15, 0.0  ;;  %v3305_v27 = vpop.xlane.xlu1 %445  ;;  %s1504_s12 = sshra.s32 %s3349_s7, 1  ;;  %s1507_s17 = sand.u32 1, %s3349_s7 }
  0xc9   : > { %v1270_v17 = vadd.f32 %v1269_v20, %v1268_v9  ;;  %vm1279_vm4 = vcmp.eq.s32.totalorder %v2543_v1, %v1278_v16  ;;  %vm1280_vm5 = vcmp.eq.s32.totalorder %v2546_v2, %v1278_v16  ;;  %vm1281_vm6 = vcmp.eq.s32.totalorder %v2549_v3, %v1278_v16  ;;  %s2401_s16 = smul.u32 6, %s1504_s12  ;;  %s1642_s7 = sshra.s32 %s3438_s23, 1 }
  0xca   : > { %1256 = vadd.xlane.f32.xlu0 %v1255_v19  ;;  %v1282_v23 = vsel %vm1279_vm4, %v1242_v60, 0.0  ;;  %v1283_v47 = vsel %vm1280_vm5, %v1243_v62, 0.0  ;;  %v1284_v26 = vsel %vm1281_vm6, %v1244_v63, 0.0  ;;  %vm292_vm7 = vcmask 73800   ;;  %s1576_s26 = sand.u32 1, %s3395_s14  ;;  %s2403_s9 = smul.u32 6, %s1642_s7 }
  0xcb   : > { %v1272_v28 = vadd.f32 %v1271_v21, %v1270_v17  ;;  %v1285_v18 = vsel %vm76_vm1, %v1282_v23, 0.0  ;;  %v1286_v29 = vsel %vm76_vm1, %v1283_v47, 0.0  ;;  %v1288_v30 = vsel %vm76_vm1, %v1284_v26, 0.0  ;;  %293 = vst.msk [vmem:[%s3151_s22] sm:$0x1] %vm292_vm7, %v3206_v24  ;;  %s3422_s19 = sadd.s32 %s2401_s16, %s1507_s17 }
  0xcc   : > { %v1287_v32 = vadd.f32 %v1286_v29, %v1285_v18  ;;  %vm309_vm8 = vcmask 82000   ;;  %vm326_vm9 = vcmask 90200   ;;  %v1306_v33 = vstv %s3267_s15  ;;  %v3313_v34 = vpop.xlane.xlu2 %462  ;;  %s1467_s15 = sadd.s32 1, %s3367_s8  ;;  %s1511_s24 = scalar_lea.vmem [#allocation5], %s3422_s19 }
  0xcd   : > { %1273 = vadd.xlane.f32.xlu1 %v1272_v28  ;;  %310 = vst.msk [vmem:[%s3151_s22] sm:$0x1] %vm309_vm8, %v3208_v25  ;;  %vm1307_vm10 = vcmp.eq.s32.totalorder %v2543_v1, %v1306_v33  ;;  %vm1308_vm11 = vcmp.eq.s32.totalorder %v2546_v2, %v1306_v33  ;;  %vm1309_vm12 = vcmp.eq.s32.totalorder %v2549_v3, %v1306_v33  ;;  %v1311_v24 = vperm.slane %v1305_v22, 0 }
  0xce   : > { %v1289_v35 = vadd.f32 %v1288_v30, %v1287_v32  ;;  %327 = vst.msk [vmem:[%s3151_s22] sm:$0x1] %vm326_vm9, %v3223_v61  ;;  %v1312_v36 = vperm.slane %v1305_v22, 1  ;;  %v1313_v37 = vperm.slane %v1305_v22, 2  ;;  %v1330_v38 = vstv %s1329_s0  ;;  %s1573_s0 = sshra.s32 %s3395_s14, 1  ;;  %s1777_s14 = sadd.s32 25, %s2557_s2 }
  0xcf   : > { %v1317_v25 = vsel %vm1307_vm10, %v1311_v24, 0.0  ;;  %vm1331_vm13 = vcmp.eq.s32.totalorder %v2543_v1, %v1330_v38  ;;  %vm1332_vm14 = vcmp.eq.s32.totalorder %v2546_v2, %v1330_v38  ;;  %vm1333_vm15 = vcmp.eq.s32.totalorder %v2549_v3, %v1330_v38  ;;  %v1443_v30 = vld [vmem:[%s1442_s13] ss:$2 sm:$0x7]  ;;  %s1622_s13 = sadd.s32 2, %s3465_s28  ;;  %s3537_s16 = sld [smem:[#allocation3 + %s1777_s14]] }
  0xd0   : > { %1290 = vadd.xlane.f32.xlu2 %v1289_v35  ;;  %v1318_v61 = vsel %vm1308_vm11, %v1312_v36, 0.0  ;;  %v1319_v39 = vsel %vm1309_vm12, %v1313_v37, 0.0  ;;  %v1320_v40 = vsel %vm76_vm1, %v1317_v25, 0.0  ;;  %v1334_v41 = vsel %vm1331_vm13, %v1311_v24, 0.0 }
  0xd1   : > { %v1321_v43 = vsel %vm76_vm1, %v1318_v61, 0.0  ;;  %v1323_v44 = vsel %vm76_vm1, %v1319_v39, 0.0  ;;  %v1335_v45 = vsel %vm1332_vm14, %v1312_v36, 0.0  ;;  %v1336_v46 = vsel %vm1333_vm15, %v1313_v37, 0.0  ;;  %v3354_v63 = vpop.xlane.xlu0 %497 }
  0xd2   : > { %v1322_v48 = vadd.f32 %v1321_v43, %v1320_v40  ;;  %v1337_v49 = vsel %vm76_vm1, %v1334_v41, 0.0  ;;  %v1338_v50 = vsel %vm76_vm1, %v1335_v45, 0.0  ;;  %v1340_v51 = vsel %vm76_vm1, %v1336_v46, 0.0  ;;  %v3356_v4 = vpop.xlane.xlu1 %514 }
  0xd3   : > { %v1339_v54 = vadd.f32 %v1338_v50, %v1337_v49  ;;  %v1347_v55 = vstv %s1346_s27  ;;  %vm361_vm0 = vcmask 98400   ;;  %vm378_vm2 = vcmask 106600   ;;  %s1536_s27 = sadd.s32 1, %s3420_s18 }
  0xd4   : > { %v1324_v56 = vadd.f32 %v1323_v44, %v1322_v48  ;;  %vm1348_vm3 = vcmp.eq.s32.totalorder %v2543_v1, %v1347_v55  ;;  %vm1349_vm4 = vcmp.eq.s32.totalorder %v2546_v2, %v1347_v55  ;;  %vm1350_vm5 = vcmp.eq.s32.totalorder %v2549_v3, %v1347_v55  ;;  %362 = vst.msk [vmem:[%s3151_s22] sm:$0x1] %vm361_vm0, %v3258_v57 }
  0xd5   : > { %v1341_v59 = vadd.f32 %v1340_v51, %v1339_v54  ;;  %v1351_v53 = vsel %vm1348_vm3, %v1311_v24, 0.0  ;;  %v1352_v60 = vsel %vm1349_vm4, %v1312_v36, 0.0  ;;  %v1353_v62 = vsel %vm1350_vm5, %v1313_v37, 0.0  ;;  %379 = vst.msk [vmem:[%s3151_s22] sm:$0x1] %vm378_vm2, %v3260_v42  ;;  %v3369_v10 = vpop.xlane.xlu2 %531 }
  0xd6   : > { %1325 = vadd.xlane.f32.xlu0 %v1324_v56  ;;  %v1354_v57 = vsel %vm76_vm1, %v1351_v53, 0.0  ;;  %v1355_v58 = vsel %vm76_vm1, %v1352_v60, 0.0  ;;  %v1357_v5 = vsel %vm76_vm1, %v1353_v62, 0.0  ;;  %vm395_vm6 = vcmask 114800  }
  0xd7   : > { %1342 = vadd.xlane.f32.xlu1 %v1341_v59  ;;  %v1356_v6 = vadd.f32 %v1355_v58, %v1354_v57  ;;  %396 = vst.msk [vmem:[%s3151_s22] sm:$0x1] %vm395_vm6, %v3274_v0  ;;  %v1375_v42 = vstv %s3319_s25  ;;  %v1380_v7 = vperm.slane %v1374_v52, 0  ;;  %v1381_v8 = vperm.slane %v1374_v52, 1  ;;  %s2402_s25 = smul.u32 6, %s1573_s0 }
  0xd8   : > { %vm1376_vm7 = vcmp.eq.s32.totalorder %v2543_v1, %v1375_v42  ;;  %vm1377_vm8 = vcmp.eq.s32.totalorder %v2546_v2, %v1375_v42  ;;  %vm1378_vm9 = vcmp.eq.s32.totalorder %v2549_v3, %v1375_v42  ;;  %v1382_v11 = vperm.slane %v1374_v52, 2 }
  0xd9   : > { %v1358_v12 = vadd.f32 %v1357_v5, %v1356_v6  ;;  %v1386_v0 = vsel %vm1376_vm7, %v1380_v7, 0.0  ;;  %v1387_v13 = vsel %vm1377_vm8, %v1381_v8, 0.0  ;;  %v1399_v14 = vstv %s1398_s5  ;;  %v1512_v5 = vld [vmem:[%s1511_s24] ss:$2 sm:$0x7]  ;;  %s3470_s29 = sadd.s32 %s2402_s25, %s1576_s26  ;;  %s3494_s5 = sld [smem:[#allocation3 + %s1708_s6]] }
  0xda   : > { %v1388_v15 = vsel %vm1378_vm9, %v1382_v11, 0.0  ;;  %v1389_v16 = vsel %vm76_vm1, %v1386_v0, 0.0  ;;  %v1390_v19 = vsel %vm76_vm1, %v1387_v13, 0.0  ;;  %vm1400_vm10 = vcmp.eq.s32.totalorder %v2543_v1, %v1399_v14  ;;  %v3398_v35 = vpop.xlane.xlu0 %566  ;;  %s1580_s4 = scalar_lea.vmem [#allocation5], %s3470_s29  ;;  %s1846_s24 = sadd.s32 26, %s2557_s2 }
  0xdb   : > { %1359 = vadd.xlane.f32.xlu2 %v1358_v12  ;;  %v1391_v9 = vadd.f32 %v1390_v19, %v1389_v16  ;;  %v1392_v20 = vsel %vm76_vm1, %v1388_v15, 0.0  ;;  %vm1401_vm11 = vcmp.eq.s32.totalorder %v2546_v2, %v1399_v14  ;;  %vm1402_vm12 = vcmp.eq.s32.totalorder %v2549_v3, %v1399_v14  ;;  %s1780_s25 = sshra.s32 %s3537_s16, 1  ;;  %s3585_s26 = sld [smem:[#allocation3 + %s1846_s24]] }
  0xdc   : > { %v1403_v21 = vsel %vm1400_vm10, %v1380_v7, 0.0  ;;  %v1404_v17 = vsel %vm1401_vm11, %v1381_v8, 0.0  ;;  %v1405_v22 = vsel %vm1402_vm12, %v1382_v11, 0.0  ;;  %v1416_v23 = vstv %s1415_s10  ;;  %v3400_v36 = vpop.xlane.xlu1 %583  ;;  %s1645_s10 = sand.u32 1, %s3438_s23  ;;  %s1691_s23 = sadd.s32 2, %s3515_s11 }
  0xdd   : > { %v1393_v47 = vadd.f32 %v1392_v20, %v1391_v9  ;;  %v1406_v26 = vsel %vm76_vm1, %v1403_v21, 0.0  ;;  %v1407_v28 = vsel %vm76_vm1, %v1404_v17, 0.0  ;;  %v1409_v18 = vsel %vm76_vm1, %v1405_v22, 0.0  ;;  %s3517_s12 = sadd.s32 %s2403_s9, %s1645_s10  ;;  %s2405_s29 = smul.u32 6, %s1780_s25 }
  0xde   : > { %v1408_v29 = vadd.f32 %v1407_v28, %v1406_v26  ;;  %vm1417_vm13 = vcmp.eq.s32.totalorder %v2543_v1, %v1416_v23  ;;  %vm1418_vm14 = vcmp.eq.s32.totalorder %v2546_v2, %v1416_v23  ;;  %vm1419_vm15 = vcmp.eq.s32.totalorder %v2549_v3, %v1416_v23  ;;  %s1649_s17 = scalar_lea.vmem [#allocation5], %s3517_s12  ;;  %s3610_s6 = sld [smem:[#allocation4 + %s1777_s14]] }
  0xdf   : > { %1394 = vadd.xlane.f32.xlu0 %v1393_v47  ;;  %v1420_v32 = vsel %vm1417_vm13, %v1380_v7, 0.0  ;;  %v1421_v33 = vsel %vm1418_vm14, %v1381_v8, 0.0  ;;  %v1422_v24 = vsel %vm1419_vm15, %v1382_v11, 0.0  ;;  %vm430_vm0 = vcmask 123000   ;;  %v3409_v41 = vpop.xlane.xlu2 %600  ;;  %s1714_s19 = sand.u32 1, %s3494_s5  ;;  %s3656_s14 = sld [smem:[#allocation4 + %s1846_s24]] }
  0xe0   : > { %v1410_v37 = vadd.f32 %v1409_v18, %v1408_v29  ;;  %v1423_v38 = vsel %vm76_vm1, %v1420_v32, 0.0  ;;  %v1424_v25 = vsel %vm76_vm1, %v1421_v33, 0.0  ;;  %v1426_v61 = vsel %vm76_vm1, %v1422_v24, 0.0  ;;  %431 = vst.msk [vmem:[%s3151_s22] sm:$0x1] %vm430_vm0, %v3303_v31 }
  0xe1   : > { %v1425_v39 = vadd.f32 %v1424_v25, %v1423_v38  ;;  %vm447_vm2 = vcmask 131200   ;;  %vm464_vm3 = vcmask 139400   ;;  %v1444_v40 = vstv %s3367_s8  ;;  %s1605_s8 = sadd.s32 1, %s3465_s28  ;;  %s1852_s12 = sand.u32 1, %s3585_s26 }
  0xe2   : > { %1411 = vadd.xlane.f32.xlu1 %v1410_v37  ;;  %448 = vst.msk [vmem:[%s3151_s22] sm:$0x1] %vm447_vm2, %v3305_v27  ;;  %vm1445_vm4 = vcmp.eq.s32.totalorder %v2543_v1, %v1444_v40  ;;  %vm1446_vm5 = vcmp.eq.s32.totalorder %v2546_v2, %v1444_v40  ;;  %vm1447_vm6 = vcmp.eq.s32.totalorder %v2549_v3, %v1444_v40  ;;  %v1449_v43 = vperm.slane %v1443_v30, 0 }
  0xe3   : > { %v1427_v44 = vadd.f32 %v1426_v61, %v1425_v39  ;;  %465 = vst.msk [vmem:[%s3151_s22] sm:$0x1] %vm464_vm3, %v3313_v34  ;;  %v1450_v31 = vperm.slane %v1443_v30, 1  ;;  %v1451_v45 = vperm.slane %v1443_v30, 2  ;;  %v1468_v46 = vstv %s1467_s15  ;;  %s1711_s15 = sshra.s32 %s3494_s5, 1  ;;  %s1849_s5 = sshra.s32 %s3585_s26, 1 }
  0xe4   : > { %v1455_v27 = vsel %vm1445_vm4, %v1449_v43, 0.0  ;;  %vm1469_vm7 = vcmp.eq.s32.totalorder %v2543_v1, %v1468_v46  ;;  %vm1470_vm8 = vcmp.eq.s32.totalorder %v2546_v2, %v1468_v46  ;;  %vm1471_vm9 = vcmp.eq.s32.totalorder %v2549_v3, %v1468_v46  ;;  %v3446_v6 = vpop.xlane.xlu0 %635  ;;  %v1581_v61 = vld [vmem:[%s1580_s4] ss:$2 sm:$0x7]  ;;  %s1760_s4 = sadd.s32 2, %s3560_s21  ;;  %s3630_s9 = smul.u32 6, %s1849_s5 }
  0xe5   : > { %1428 = vadd.xlane.f32.xlu2 %v1427_v44  ;;  %v1456_v48 = vsel %vm1446_vm5, %v1450_v31, 0.0  ;;  %v1457_v34 = vsel %vm1447_vm6, %v1451_v45, 0.0  ;;  %v1458_v49 = vsel %vm76_vm1, %v1455_v27, 0.0  ;;  %v1472_v50 = vsel %vm1469_vm7, %v1449_v43, 0.0  ;;  %s1898_s26 = sadd.s32 2, %s3656_s14 }
  0xe6   : > { %v1459_v51 = vsel %vm76_vm1, %v1456_v48, 0.0  ;;  %v1461_v54 = vsel %vm76_vm1, %v1457_v34, 0.0  ;;  %v1473_v55 = vsel %vm1470_vm8, %v1450_v31, 0.0  ;;  %v1474_v56 = vsel %vm1471_vm9, %v1451_v45, 0.0  ;;  %v3448_v42 = vpop.xlane.xlu1 %652 }
  0xe7   : > { %v1460_v52 = vadd.f32 %v1459_v51, %v1458_v49  ;;  %v1475_v59 = vsel %vm76_vm1, %v1472_v50, 0.0  ;;  %v1476_v53 = vsel %vm76_vm1, %v1473_v55, 0.0  ;;  %v1478_v60 = vsel %vm76_vm1, %v1474_v56, 0.0 }
  0xe8   : > { %v1477_v62 = vadd.f32 %v1476_v53, %v1475_v59  ;;  %v1485_v57 = vstv %s1484_s20  ;;  %vm499_vm10 = vcmask 147600   ;;  %vm516_vm11 = vcmask 155800   ;;  %s1674_s20 = sadd.s32 1, %s3515_s11 }
  0xe9   : > { %v1462_v58 = vadd.f32 %v1461_v54, %v1460_v52  ;;  %vm1486_vm12 = vcmp.eq.s32.totalorder %v2543_v1, %v1485_v57  ;;  %vm1487_vm13 = vcmp.eq.s32.totalorder %v2546_v2, %v1485_v57  ;;  %vm1488_vm14 = vcmp.eq.s32.totalorder %v2549_v3, %v1485_v57  ;;  %500 = vst.msk [vmem:[%s3151_s22] sm:$0x1] %vm499_vm10, %v3354_v63  ;;  %v3458_v14 = vpop.xlane.xlu2 %669 }
  0xea   : > { %v1479_v7 = vadd.f32 %v1478_v60, %v1477_v62  ;;  %v1489_v8 = vsel %vm1486_vm12, %v1449_v43, 0.0  ;;  %v1490_v11 = vsel %vm1487_vm13, %v1450_v31, 0.0  ;;  %v1491_v12 = vsel %vm1488_vm14, %v1451_v45, 0.0  ;;  %517 = vst.msk [vmem:[%s3151_s22] sm:$0x1] %vm516_vm11, %v3356_v4 }
  0xeb   : > { %1463 = vadd.xlane.f32.xlu0 %v1462_v58  ;;  %v1492_v63 = vsel %vm76_vm1, %v1489_v8, 0.0  ;;  %v1493_v0 = vsel %vm76_vm1, %v1490_v11, 0.0  ;;  %v1495_v13 = vsel %vm76_vm1, %v1491_v12, 0.0  ;;  %vm533_vm15 = vcmask 164000  }
  0xec   : > { %1480 = vadd.xlane.f32.xlu1 %v1479_v7  ;;  %v1494_v15 = vadd.f32 %v1493_v0, %v1492_v63  ;;  %534 = vst.msk [vmem:[%s3151_s22] sm:$0x1] %vm533_vm15, %v3369_v10  ;;  %v1513_v16 = vstv %s3420_s18  ;;  %v1518_v19 = vperm.slane %v1512_v5, 0  ;;  %v1519_v4 = vperm.slane %v1512_v5, 1  ;;  %s2404_s18 = smul.u32 6, %s1711_s15  ;;  %s3662_s15 = sadd.s32 %s3630_s9, %s1852_s12 }
  0xed   : > { %vm1514_vm0 = vcmp.eq.s32.totalorder %v2543_v1, %v1513_v16  ;;  %vm1515_vm2 = vcmp.eq.s32.totalorder %v2546_v2, %v1513_v16  ;;  %vm1516_vm3 = vcmp.eq.s32.totalorder %v2549_v3, %v1513_v16  ;;  %v1520_v9 = vperm.slane %v1512_v5, 2  ;;  %v1650_v16 = vld [vmem:[%s1649_s17] ss:$2 sm:$0x7]  ;;  %s1984_s17 = sadd.s32 28, %s2557_s2 }
  0xee   : > { %v1496_v20 = vadd.f32 %v1495_v13, %v1494_v15  ;;  %v1524_v21 = vsel %vm1514_vm0, %v1518_v19, 0.0  ;;  %v1525_v17 = vsel %vm1515_vm2, %v1519_v4, 0.0  ;;  %v1537_v10 = vstv %s1536_s27  ;;  %v3488_v39 = vpop.xlane.xlu0 %704  ;;  %s3565_s0 = sadd.s32 %s2404_s18, %s1714_s19  ;;  %s3682_s19 = sld [smem:[#allocation3 + %s1984_s17]] }
  0xef   : > { %v1526_v22 = vsel %vm1516_vm3, %v1520_v9, 0.0  ;;  %v1527_v23 = vsel %vm76_vm1, %v1524_v21, 0.0  ;;  %v1528_v47 = vsel %vm76_vm1, %v1525_v17, 0.0  ;;  %vm1538_vm4 = vcmp.eq.s32.totalorder %v2543_v1, %v1537_v10  ;;  %v3490_v40 = vpop.xlane.xlu1 %721  ;;  %s1718_s27 = scalar_lea.vmem [#allocation5], %s3565_s0  ;;  %s3753_s5 = sld [smem:[#allocation4 + %s1984_s17]] }
  0xf0   : > { %1497 = vadd.xlane.f32.xlu2 %v1496_v20  ;;  %v1529_v26 = vadd.f32 %v1528_v47, %v1527_v23  ;;  %v1530_v28 = vsel %vm76_vm1, %v1526_v22, 0.0  ;;  %vm1539_vm5 = vcmp.eq.s32.totalorder %v2546_v2, %v1537_v10  ;;  %vm1540_vm6 = vcmp.eq.s32.totalorder %v2549_v3, %v1537_v10 }
  0xf1   : > { %v1541_v18 = vsel %vm1538_vm4, %v1518_v19, 0.0  ;;  %v1542_v29 = vsel %vm1539_vm5, %v1519_v4, 0.0  ;;  %v1543_v30 = vsel %vm1540_vm6, %v1520_v9, 0.0  ;;  %v1554_v32 = vstv %s1553_s30  ;;  %s1783_s30 = sand.u32 1, %s3537_s16  ;;  %s1829_s16 = sadd.s32 2, %s3610_s6 }
  0xf2   : > { %v1531_v33 = vadd.f32 %v1530_v28, %v1529_v26  ;;  %v1544_v24 = vsel %vm76_vm1, %v1541_v18, 0.0  ;;  %v1545_v37 = vsel %vm76_vm1, %v1542_v29, 0.0  ;;  %v1547_v38 = vsel %vm76_vm1, %v1543_v30, 0.0  ;;  %s3612_s7 = sadd.s32 %s2405_s29, %s1783_s30 }
  0xf3   : > { %v1546_v25 = vadd.f32 %v1545_v37, %v1544_v24  ;;  %vm1555_vm7 = vcmp.eq.s32.totalorder %v2543_v1, %v1554_v32  ;;  %vm1556_vm8 = vcmp.eq.s32.totalorder %v2546_v2, %v1554_v32  ;;  %vm1557_vm9 = vcmp.eq.s32.totalorder %v2549_v3, %v1554_v32  ;;  %v3503_v34 = vpop.xlane.xlu2 %738  ;;  %s1787_s10 = scalar_lea.vmem [#allocation5], %s3612_s7 }
  0xf4   : > { %1532 = vadd.xlane.f32.xlu0 %v1531_v33  ;;  %v1558_v43 = vsel %vm1555_vm7, %v1518_v19, 0.0  ;;  %v1559_v44 = vsel %vm1556_vm8, %v1519_v4, 0.0  ;;  %v1560_v31 = vsel %vm1557_vm9, %v1520_v9, 0.0  ;;  %vm568_vm10 = vcmask 172200   ;;  %s1990_s7 = sand.u32 1, %s3682_s19 }
  0xf5   : > { %v1548_v45 = vadd.f32 %v1547_v38, %v1546_v25  ;;  %v1561_v46 = vsel %vm76_vm1, %v1558_v43, 0.0  ;;  %v1562_v27 = vsel %vm76_vm1, %v1559_v44, 0.0  ;;  %v1564_v48 = vsel %vm76_vm1, %v1560_v31, 0.0  ;;  %569 = vst.msk [vmem:[%s3151_s22] sm:$0x1] %vm568_vm10, %v3398_v35 }
  0xf6   : > { %v1563_v49 = vadd.f32 %v1562_v27, %v1561_v46  ;;  %vm585_vm11 = vcmask 180400   ;;  %vm602_vm12 = vcmask 188600   ;;  %v1582_v50 = vstv %s3465_s28  ;;  %s1743_s28 = sadd.s32 1, %s3560_s21 }
  0xf7   : > { %1549 = vadd.xlane.f32.xlu1 %v1548_v45  ;;  %586 = vst.msk [vmem:[%s3151_s22] sm:$0x1] %vm585_vm11, %v3400_v36  ;;  %vm1583_vm13 = vcmp.eq.s32.totalorder %v2543_v1, %v1582_v50  ;;  %vm1584_vm14 = vcmp.eq.s32.totalorder %v2546_v2, %v1582_v50  ;;  %vm1585_vm15 = vcmp.eq.s32.totalorder %v2549_v3, %v1582_v50  ;;  %v1587_v51 = vperm.slane %v1581_v61, 0  ;;  %v1719_v50 = vld [vmem:[%s1718_s27] ss:$2 sm:$0x7] }
  0xf8   : > { %v1565_v54 = vadd.f32 %v1564_v48, %v1563_v49  ;;  %603 = vst.msk [vmem:[%s3151_s22] sm:$0x1] %vm602_vm12, %v3409_v41  ;;  %v1588_v35 = vperm.slane %v1581_v61, 1  ;;  %v1589_v55 = vperm.slane %v1581_v61, 2  ;;  %v1606_v56 = vstv %s1605_s8  ;;  %v3531_v0 = vpop.xlane.xlu0 %773  ;;  %s1915_s8 = sadd.s32 27, %s2557_s2  ;;  %s1987_s27 = sshra.s32 %s3682_s19, 1 }
  0xf9   : > { %v1593_v36 = vsel %vm1583_vm13, %v1587_v51, 0.0  ;;  %vm1607_vm0 = vcmp.eq.s32.totalorder %v2543_v1, %v1606_v56  ;;  %vm1608_vm2 = vcmp.eq.s32.totalorder %v2546_v2, %v1606_v56  ;;  %vm1609_vm3 = vcmp.eq.s32.totalorder %v2549_v3, %v1606_v56  ;;  %v3533_v13 = vpop.xlane.xlu1 %790  ;;  %s3707_s24 = sld [smem:[#allocation4 + %s1915_s8]]  ;;  %s3727_s29 = smul.u32 6, %s1987_s27 }
  0xfa   : > { %1566 = vadd.xlane.f32.xlu2 %v1565_v54  ;;  %v1594_v52 = vsel %vm1584_vm14, %v1588_v35, 0.0  ;;  %v1595_v41 = vsel %vm1585_vm15, %v1589_v55, 0.0  ;;  %v1596_v59 = vsel %vm76_vm1, %v1593_v36, 0.0  ;;  %v1610_v53 = vsel %vm1607_vm0, %v1587_v51, 0.0  ;;  %s2036_s19 = sadd.s32 2, %s3753_s5 }
  0xfb   : > { %v1597_v60 = vsel %vm76_vm1, %v1594_v52, 0.0  ;;  %v1599_v62 = vsel %vm76_vm1, %v1595_v41, 0.0  ;;  %v1611_v57 = vsel %vm1608_vm2, %v1588_v35, 0.0  ;;  %v1612_v58 = vsel %vm1609_vm3, %v1589_v55, 0.0 }
  0xfc   : > { %v1598_v5 = vadd.f32 %v1597_v60, %v1596_v59  ;;  %v1613_v7 = vsel %vm76_vm1, %v1610_v53, 0.0  ;;  %v1614_v8 = vsel %vm76_vm1, %v1611_v57, 0.0  ;;  %v1616_v11 = vsel %vm76_vm1, %v1612_v58, 0.0  ;;  %v3549_v21 = vpop.xlane.xlu2 %807 }
  0xfd   : > { %v1615_v12 = vadd.f32 %v1614_v8, %v1613_v7  ;;  %v1623_v63 = vstv %s1622_s13  ;;  %vm637_vm4 = vcmask 196800   ;;  %vm654_vm5 = vcmask 205000   ;;  %s1812_s13 = sadd.s32 1, %s3610_s6 }
  0xfe   : > { %v1600_v15 = vadd.f32 %v1599_v62, %v1598_v5  ;;  %vm1624_vm6 = vcmp.eq.s32.totalorder %v2543_v1, %v1623_v63  ;;  %vm1625_vm7 = vcmp.eq.s32.totalorder %v2546_v2, %v1623_v63  ;;  %vm1626_vm8 = vcmp.eq.s32.totalorder %v2549_v3, %v1623_v63  ;;  %638 = vst.msk [vmem:[%s3151_s22] sm:$0x1] %vm637_vm4, %v3446_v6 }
  0xff   : > { %v1617_v19 = vadd.f32 %v1616_v11, %v1615_v12  ;;  %v1627_v4 = vsel %vm1624_vm6, %v1587_v51, 0.0  ;;  %v1628_v9 = vsel %vm1625_vm7, %v1588_v35, 0.0  ;;  %v1629_v20 = vsel %vm1626_vm8, %v1589_v55, 0.0  ;;  %655 = vst.msk [vmem:[%s3151_s22] sm:$0x1] %vm654_vm5, %v3448_v42  ;;  %s1967_s9 = sadd.s32 2, %s3707_s24 }
 0x100   : > { %1601 = vadd.xlane.f32.xlu0 %v1600_v15  ;;  %v1630_v6 = vsel %vm76_vm1, %v1627_v4, 0.0  ;;  %v1631_v17 = vsel %vm76_vm1, %v1628_v9, 0.0  ;;  %v1633_v10 = vsel %vm76_vm1, %v1629_v20, 0.0  ;;  %vm671_vm9 = vcmask 213200  }
 0x101   : > { %1618 = vadd.xlane.f32.xlu1 %v1617_v19  ;;  %v1632_v22 = vadd.f32 %v1631_v17, %v1630_v6  ;;  %672 = vst.msk [vmem:[%s3151_s22] sm:$0x1] %vm671_vm9, %v3458_v14  ;;  %v1651_v23 = vstv %s3515_s11  ;;  %v1656_v47 = vperm.slane %v1650_v16, 0  ;;  %v1657_v42 = vperm.slane %v1650_v16, 1  ;;  %v3579_v27 = vpop.xlane.xlu0 %842  ;;  %s3642_s11 = sld [smem:[#allocation3 + %s1915_s8]]  ;;  %s3759_s8 = sadd.s32 %s3727_s29, %s1990_s7 }
 0x102   : > { %vm1652_vm10 = vcmp.eq.s32.totalorder %v2543_v1, %v1651_v23  ;;  %vm1653_vm11 = vcmp.eq.s32.totalorder %v2546_v2, %v1651_v23  ;;  %vm1654_vm12 = vcmp.eq.s32.totalorder %v2549_v3, %v1651_v23  ;;  %v1658_v26 = vperm.slane %v1650_v16, 2  ;;  %v1788_v23 = vld [vmem:[%s1787_s10] ss:$2 sm:$0x7]  ;;  %s2122_s10 = sadd.s32 30, %s2557_s2 }
 0x103   : > { %v1634_v28 = vadd.f32 %v1633_v10, %v1632_v22  ;;  %v1662_v18 = vsel %vm1652_vm10, %v1656_v47, 0.0  ;;  %v1663_v29 = vsel %vm1653_vm11, %v1657_v42, 0.0  ;;  %v1675_v14 = vstv %s1674_s20  ;;  %v3581_v48 = vpop.xlane.xlu1 %859  ;;  %s1856_s20 = scalar_lea.vmem [#allocation5], %s3662_s15  ;;  %s3781_s12 = sld [smem:[#allocation3 + %s2122_s10]] }
 0x104   : > { %v1664_v30 = vsel %vm1654_vm12, %v1658_v26, 0.0  ;;  %v1665_v32 = vsel %vm76_vm1, %v1662_v18, 0.0  ;;  %v1666_v33 = vsel %vm76_vm1, %v1663_v29, 0.0  ;;  %vm1676_vm13 = vcmp.eq.s32.totalorder %v2543_v1, %v1675_v14  ;;  %s3850_s27 = sld [smem:[#allocation4 + %s2122_s10]] }
 0x105   : > { %1635 = vadd.xlane.f32.xlu2 %v1634_v28  ;;  %v1667_v24 = vadd.f32 %v1666_v33, %v1665_v32  ;;  %v1668_v37 = vsel %vm76_vm1, %v1664_v30, 0.0  ;;  %vm1677_vm14 = vcmp.eq.s32.totalorder %v2546_v2, %v1675_v14  ;;  %vm1678_vm15 = vcmp.eq.s32.totalorder %v2549_v3, %v1675_v14 }
 0x106   : > { %v1679_v38 = vsel %vm1676_vm13, %v1656_v47, 0.0  ;;  %v1680_v25 = vsel %vm1677_vm14, %v1657_v42, 0.0  ;;  %v1681_v61 = vsel %vm1678_vm15, %v1658_v26, 0.0  ;;  %v1692_v43 = vstv %s1691_s23  ;;  %v3592_v55 = vpop.xlane.xlu2 %876 }
 0x107   : > { %v1669_v44 = vadd.f32 %v1668_v37, %v1667_v24  ;;  %v1682_v31 = vsel %vm76_vm1, %v1679_v38, 0.0  ;;  %v1683_v45 = vsel %vm76_vm1, %v1680_v25, 0.0  ;;  %v1685_v46 = vsel %vm76_vm1, %v1681_v61, 0.0  ;;  %s1918_s18 = sshra.s32 %s3642_s11, 1  ;;  %s1921_s23 = sand.u32 1, %s3642_s11 }
 0x108   : > { %v1684_v49 = vadd.f32 %v1683_v45, %v1682_v31  ;;  %vm1693_vm0 = vcmp.eq.s32.totalorder %v2543_v1, %v1692_v43  ;;  %vm1694_vm2 = vcmp.eq.s32.totalorder %v2546_v2, %v1692_v43  ;;  %vm1695_vm3 = vcmp.eq.s32.totalorder %v2549_v3, %v1692_v43  ;;  %s2407_s0 = smul.u32 6, %s1918_s18 }
 0x109   : > { %1670 = vadd.xlane.f32.xlu0 %v1669_v44  ;;  %v1696_v51 = vsel %vm1693_vm0, %v1656_v47, 0.0  ;;  %v1697_v54 = vsel %vm1694_vm2, %v1657_v42, 0.0  ;;  %v1698_v35 = vsel %vm1695_vm3, %v1658_v26, 0.0  ;;  %vm706_vm4 = vcmask 221400  }
 0x10a   : > { %v1686_v56 = vadd.f32 %v1685_v46, %v1684_v49  ;;  %v1699_v36 = vsel %vm76_vm1, %v1696_v51, 0.0  ;;  %v1700_v52 = vsel %vm76_vm1, %v1697_v54, 0.0  ;;  %v1702_v41 = vsel %vm76_vm1, %v1698_v35, 0.0  ;;  %707 = vst.msk [vmem:[%s3151_s22] sm:$0x1] %vm706_vm4, %v3488_v39  ;;  %s3709_s25 = sadd.s32 %s2407_s0, %s1921_s23  ;;  %s2157_s7 = sadd.s32 1, %s3850_s27 }
 0x10b   : > { %v1701_v59 = vadd.f32 %v1700_v52, %v1699_v36  ;;  %vm723_vm5 = vcmask 229600   ;;  %vm740_vm6 = vcmask 237800   ;;  %v1720_v53 = vstv %s3560_s21  ;;  %v3626_v20 = vpop.xlane.xlu0 %911  ;;  %s1881_s21 = sadd.s32 1, %s3656_s14  ;;  %s1925_s30 = scalar_lea.vmem [#allocation5], %s3709_s25 }
 0x10c   : > { %1687 = vadd.xlane.f32.xlu1 %v1686_v56  ;;  %724 = vst.msk [vmem:[%s3151_s22] sm:$0x1] %vm723_vm5, %v3490_v40  ;;  %vm1721_vm7 = vcmp.eq.s32.totalorder %v2543_v1, %v1720_v53  ;;  %vm1722_vm8 = vcmp.eq.s32.totalorder %v2546_v2, %v1720_v53  ;;  %vm1723_vm9 = vcmp.eq.s32.totalorder %v2549_v3, %v1720_v53  ;;  %v1725_v60 = vperm.slane %v1719_v50, 0  ;;  %v1857_v53 = vld [vmem:[%s1856_s20] ss:$2 sm:$0x7] }
 0x10d   : > { %v1703_v62 = vadd.f32 %v1702_v41, %v1701_v59  ;;  %741 = vst.msk [vmem:[%s3151_s22] sm:$0x1] %vm740_vm6, %v3503_v34  ;;  %v1726_v39 = vperm.slane %v1719_v50, 1  ;;  %v1727_v57 = vperm.slane %v1719_v50, 2  ;;  %v1744_v58 = vstv %s1743_s28  ;;  %v3628_v6 = vpop.xlane.xlu1 %928  ;;  %s2053_s28 = sadd.s32 29, %s2557_s2  ;;  %s2125_s20 = sshra.s32 %s3781_s12, 1 }
 0x10e   : > { %v1731_v40 = vsel %vm1721_vm7, %v1725_v60, 0.0  ;;  %vm1745_vm10 = vcmp.eq.s32.totalorder %v2543_v1, %v1744_v58  ;;  %vm1746_vm11 = vcmp.eq.s32.totalorder %v2546_v2, %v1744_v58  ;;  %vm1747_vm12 = vcmp.eq.s32.totalorder %v2549_v3, %v1744_v58  ;;  %s3804_s17 = sld [smem:[#allocation4 + %s2053_s28]]  ;;  %s3826_s0 = smul.u32 6, %s2125_s20 }
 0x10f   : > { %1704 = vadd.xlane.f32.xlu2 %v1703_v62  ;;  %v1732_v5 = vsel %vm1722_vm8, %v1726_v39, 0.0  ;;  %v1733_v34 = vsel %vm1723_vm9, %v1727_v57, 0.0  ;;  %v1734_v7 = vsel %vm76_vm1, %v1731_v40, 0.0  ;;  %v1748_v8 = vsel %vm1745_vm10, %v1725_v60, 0.0  ;;  %s2128_s25 = sand.u32 1, %s3781_s12 }
 0x110   : > { %v1735_v11 = vsel %vm76_vm1, %v1732_v5, 0.0  ;;  %v1737_v12 = vsel %vm76_vm1, %v1733_v34, 0.0  ;;  %v1749_v63 = vsel %vm1746_vm11, %v1726_v39, 0.0  ;;  %v1750_v15 = vsel %vm1747_vm12, %v1727_v57, 0.0  ;;  %v3638_v47 = vpop.xlane.xlu2 %945 }
 0x111   : > { %v1736_v16 = vadd.f32 %v1735_v11, %v1734_v7  ;;  %v1751_v19 = vsel %vm76_vm1, %v1748_v8, 0.0  ;;  %v1752_v4 = vsel %vm76_vm1, %v1749_v63, 0.0  ;;  %v1754_v9 = vsel %vm76_vm1, %v1750_v15, 0.0 }
 0x112   : > { %v1753_v17 = vadd.f32 %v1752_v4, %v1751_v19  ;;  %v1761_v10 = vstv %s1760_s4  ;;  %vm775_vm13 = vcmask 246000   ;;  %vm792_vm14 = vcmask 254200   ;;  %s1950_s4 = sadd.s32 1, %s3707_s24 }
 0x113   : > { %v1738_v22 = vadd.f32 %v1737_v12, %v1736_v16  ;;  %vm1762_vm15 = vcmp.eq.s32.totalorder %v2543_v1, %v1761_v10  ;;  %vm1763_vm0 = vcmp.eq.s32.totalorder %v2546_v2, %v1761_v10  ;;  %vm1764_vm2 = vcmp.eq.s32.totalorder %v2549_v3, %v1761_v10  ;;  %776 = vst.msk [vmem:[%s3151_s22] sm:$0x1] %vm775_vm13, %v3531_v0 }
 0x114   : > { %v1755_v42 = vadd.f32 %v1754_v9, %v1753_v17  ;;  %v1765_v26 = vsel %vm1762_vm15, %v1725_v60, 0.0  ;;  %v1766_v28 = vsel %vm1763_vm0, %v1726_v39, 0.0  ;;  %v1767_v18 = vsel %vm1764_vm2, %v1727_v57, 0.0  ;;  %793 = vst.msk [vmem:[%s3151_s22] sm:$0x1] %vm792_vm14, %v3533_v13  ;;  %s2105_s29 = sadd.s32 2, %s3804_s17 }
 0x115   : > { %1739 = vadd.xlane.f32.xlu0 %v1738_v22  ;;  %v1768_v0 = vsel %vm76_vm1, %v1765_v26, 0.0  ;;  %v1769_v29 = vsel %vm76_vm1, %v1766_v28, 0.0  ;;  %v1771_v14 = vsel %vm76_vm1, %v1767_v18, 0.0  ;;  %vm809_vm3 = vcmask 262400   ;;  %v3673_v54 = vpop.xlane.xlu0 %980 }
 0x116   : > { %1756 = vadd.xlane.f32.xlu1 %v1755_v42  ;;  %v1770_v30 = vadd.f32 %v1769_v29, %v1768_v0  ;;  %810 = vst.msk [vmem:[%s3151_s22] sm:$0x1] %vm809_vm3, %v3549_v21  ;;  %v1789_v32 = vstv %s3610_s6  ;;  %v1794_v33 = vperm.slane %v1788_v23, 0  ;;  %v1795_v24 = vperm.slane %v1788_v23, 1  ;;  %v3675_v35 = vpop.xlane.xlu1 %997  ;;  %s3739_s6 = sld [smem:[#allocation3 + %s2053_s28]]  ;;  %s3856_s28 = sadd.s32 %s3826_s0, %s2128_s25 }
 0x117   : > { %vm1790_vm4 = vcmp.eq.s32.totalorder %v2543_v1, %v1789_v32  ;;  %vm1791_vm5 = vcmp.eq.s32.totalorder %v2546_v2, %v1789_v32  ;;  %vm1792_vm6 = vcmp.eq.s32.totalorder %v2549_v3, %v1789_v32  ;;  %v1796_v13 = vperm.slane %v1788_v23, 2 }
 0x118   : > { %v1772_v37 = vadd.f32 %v1771_v14, %v1770_v30  ;;  %v1800_v38 = vsel %vm1790_vm4, %v1794_v33, 0.0  ;;  %v1801_v25 = vsel %vm1791_vm5, %v1795_v24, 0.0  ;;  %v1813_v21 = vstv %s1812_s13  ;;  %s1994_s13 = scalar_lea.vmem [#allocation5], %s3759_s8 }
 0x119   : > { %v1802_v61 = vsel %vm1792_vm6, %v1796_v13, 0.0  ;;  %v1803_v43 = vsel %vm76_vm1, %v1800_v38, 0.0  ;;  %v1804_v44 = vsel %vm76_vm1, %v1801_v25, 0.0  ;;  %vm1814_vm7 = vcmp.eq.s32.totalorder %v2543_v1, %v1813_v21 }
 0x11a   : > { %1773 = vadd.xlane.f32.xlu2 %v1772_v37  ;;  %v1805_v31 = vadd.f32 %v1804_v44, %v1803_v43  ;;  %v1806_v45 = vsel %vm76_vm1, %v1802_v61, 0.0  ;;  %vm1815_vm8 = vcmp.eq.s32.totalorder %v2546_v2, %v1813_v21  ;;  %vm1816_vm9 = vcmp.eq.s32.totalorder %v2549_v3, %v1813_v21  ;;  %v3688_v60 = vpop.xlane.xlu2 %1014 }
 0x11b   : > { %v1817_v46 = vsel %vm1814_vm7, %v1794_v33, 0.0  ;;  %v1818_v49 = vsel %vm1815_vm8, %v1795_v24, 0.0  ;;  %v1819_v50 = vsel %vm1816_vm9, %v1796_v13, 0.0  ;;  %v1830_v51 = vstv %s1829_s16 }
 0x11c   : > { %v1807_v56 = vadd.f32 %v1806_v45, %v1805_v31  ;;  %v1820_v36 = vsel %vm76_vm1, %v1817_v46, 0.0  ;;  %v1821_v52 = vsel %vm76_vm1, %v1818_v49, 0.0  ;;  %v1823_v41 = vsel %vm76_vm1, %v1819_v50, 0.0  ;;  %s2056_s11 = sshra.s32 %s3739_s6, 1  ;;  %s2059_s16 = sand.u32 1, %s3739_s6 }
 0x11d   : > { %v1822_v59 = vadd.f32 %v1821_v52, %v1820_v36  ;;  %vm1831_vm10 = vcmp.eq.s32.totalorder %v2543_v1, %v1830_v51  ;;  %vm1832_vm11 = vcmp.eq.s32.totalorder %v2546_v2, %v1830_v51  ;;  %vm1833_vm12 = vcmp.eq.s32.totalorder %v2549_v3, %v1830_v51  ;;  %s2409_s15 = smul.u32 6, %s2056_s11  ;;  %s2132_s6 = scalar_lea.vmem [#allocation5], %s3856_s28 }
 0x11e   : > { %1808 = vadd.xlane.f32.xlu0 %v1807_v56  ;;  %v1834_v62 = vsel %vm1831_vm10, %v1794_v33, 0.0  ;;  %v1835_v39 = vsel %vm1832_vm11, %v1795_v24, 0.0  ;;  %v1836_v57 = vsel %vm1833_vm12, %v1796_v13, 0.0  ;;  %vm844_vm13 = vcmask 270600  }
 0x11f   : > { %v1824_v58 = vadd.f32 %v1823_v41, %v1822_v59  ;;  %v1837_v40 = vsel %vm76_vm1, %v1834_v62, 0.0  ;;  %v1838_v5 = vsel %vm76_vm1, %v1835_v39, 0.0  ;;  %v1840_v34 = vsel %vm76_vm1, %v1836_v57, 0.0  ;;  %845 = vst.msk [vmem:[%s3151_s22] sm:$0x1] %vm844_vm13, %v3579_v27  ;;  %v3719_v23 = vpop.xlane.xlu0 %1049  ;;  %s3806_s18 = sadd.s32 %s2409_s15, %s2059_s16  ;;  %s2267_s15 = sshll.u32 (%p45_p0), %s4016_s3, 4  ;;  %s2268_s15 = int_to_ptr.hbm [resolvable:$true] %s2267_s15 }
 0x120   : > { %v1839_v7 = vadd.f32 %v1838_v5, %v1837_v40  ;;  %vm861_vm14 = vcmask 278800   ;;  %vm878_vm15 = vcmask 287000   ;;  %v1858_v8 = vstv %s3656_s14  ;;  %v3721_v42 = vpop.xlane.xlu1 %1066  ;;  %v1926_v33 = vld [vmem:[%s1925_s30] ss:$2 sm:$0x7]  ;;  %s2019_s14 = sadd.s32 1, %s3753_s5 }
 0x121   : > { %1825 = vadd.xlane.f32.xlu1 %v1824_v58  ;;  %862 = vst.msk [vmem:[%s3151_s22] sm:$0x1] %vm861_vm14, %v3581_v48  ;;  %vm1859_vm0 = vcmp.eq.s32.totalorder %v2543_v1, %v1858_v8  ;;  %vm1860_vm2 = vcmp.eq.s32.totalorder %v2546_v2, %v1858_v8  ;;  %vm1861_vm3 = vcmp.eq.s32.totalorder %v2549_v3, %v1858_v8  ;;  %v1863_v11 = vperm.slane %v1857_v53, 0  ;;  %s2063_s23 = scalar_lea.vmem [#allocation5], %s3806_s18  ;;  %s2513_s16 = smov (%p45_p0), [#allocation8]  }
 0x122   : > { %v1841_v12 = vadd.f32 %v1840_v34, %v1839_v7  ;;  %879 = vst.msk [vmem:[%s3151_s22] sm:$0x1] %vm878_vm15, %v3592_v55  ;;  %v1864_v27 = vperm.slane %v1857_v53, 1  ;;  %v1865_v63 = vperm.slane %v1857_v53, 2  ;;  %v1882_v15 = vstv %s1881_s21  ;;  %s2191_s21 = sadd.s32 31, %s2557_s2  ;;  %s2174_s2 = sadd.s32 2, %s3850_s27 }
 0x123   : > { %v1869_v48 = vsel %vm1859_vm0, %v1863_v11, 0.0  ;;  %vm1883_vm4 = vcmp.eq.s32.totalorder %v2543_v1, %v1882_v15  ;;  %vm1884_vm5 = vcmp.eq.s32.totalorder %v2546_v2, %v1882_v15  ;;  %vm1885_vm6 = vcmp.eq.s32.totalorder %v2549_v3, %v1882_v15  ;;  %v3729_v30 = vpop.xlane.xlu2 %1083  ;;  %s3898_s8 = sld [smem:[#allocation4 + %s2191_s21]] }
 0x124   : > { %1842 = vadd.xlane.f32.xlu2 %v1841_v12  ;;  %v1870_v16 = vsel %vm1860_vm2, %v1864_v27, 0.0  ;;  %v1871_v55 = vsel %vm1861_vm3, %v1865_v63, 0.0  ;;  %v1872_v19 = vsel %vm76_vm1, %v1869_v48, 0.0  ;;  %v1886_v4 = vsel %vm1883_vm4, %v1863_v11, 0.0 }
 0x125   : > { %v1873_v9 = vsel %vm76_vm1, %v1870_v16, 0.0  ;;  %v1875_v17 = vsel %vm76_vm1, %v1871_v55, 0.0  ;;  %v1887_v10 = vsel %vm1884_vm5, %v1864_v27, 0.0  ;;  %v1888_v22 = vsel %vm1885_vm6, %v1865_v63, 0.0 }
 0x126   : > { %v1874_v26 = vadd.f32 %v1873_v9, %v1872_v19  ;;  %v1889_v28 = vsel %vm76_vm1, %v1886_v4, 0.0  ;;  %v1890_v18 = vsel %vm76_vm1, %v1887_v10, 0.0  ;;  %v1892_v0 = vsel %vm76_vm1, %v1888_v22, 0.0 }
 0x127   : > { %v1891_v29 = vadd.f32 %v1890_v18, %v1889_v28  ;;  %v1899_v14 = vstv %s1898_s26  ;;  %vm913_vm7 = vcmask 295200   ;;  %vm930_vm8 = vcmask 303400   ;;  %s2088_s26 = sadd.s32 1, %s3804_s17 }
 0x128   : > { %v1876_v32 = vadd.f32 %v1875_v17, %v1874_v26  ;;  %vm1900_vm9 = vcmp.eq.s32.totalorder %v2543_v1, %v1899_v14  ;;  %vm1901_vm10 = vcmp.eq.s32.totalorder %v2546_v2, %v1899_v14  ;;  %vm1902_vm11 = vcmp.eq.s32.totalorder %v2549_v3, %v1899_v14  ;;  %914 = vst.msk [vmem:[%s3151_s22] sm:$0x1] %vm913_vm7, %v3626_v20 }
 0x129   : > { %v1893_v24 = vadd.f32 %v1892_v0, %v1891_v29  ;;  %v1903_v13 = vsel %vm1900_vm9, %v1863_v11, 0.0  ;;  %v1904_v37 = vsel %vm1901_vm10, %v1864_v27, 0.0  ;;  %v1905_v38 = vsel %vm1902_vm11, %v1865_v63, 0.0  ;;  %931 = vst.msk [vmem:[%s3151_s22] sm:$0x1] %vm930_vm8, %v3628_v6  ;;  %v3769_v41 = vpop.xlane.xlu0 %1118  ;;  %s2226_s11 = sadd.s32 1, %s3898_s8 }
 0x12a   : > { %1877 = vadd.xlane.f32.xlu0 %v1876_v32  ;;  %v1906_v25 = vsel %vm76_vm1, %v1903_v13, 0.0  ;;  %v1907_v20 = vsel %vm76_vm1, %v1904_v37, 0.0  ;;  %v1909_v21 = vsel %vm76_vm1, %v1905_v38, 0.0  ;;  %vm947_vm12 = vcmask 311600   ;;  %v3771_v59 = vpop.xlane.xlu1 %1135  ;;  %s2243_s12 = sadd.s32 2, %s3898_s8 }
 0x12b   : > { %1894 = vadd.xlane.f32.xlu1 %v1893_v24  ;;  %v1908_v61 = vadd.f32 %v1907_v20, %v1906_v25  ;;  %948 = vst.msk [vmem:[%s3151_s22] sm:$0x1] %vm947_vm12, %v3638_v47  ;;  %v1927_v43 = vstv %s3707_s24  ;;  %v1932_v44 = vperm.slane %v1926_v33, 0  ;;  %v1933_v31 = vperm.slane %v1926_v33, 1  ;;  %s3836_s24 = sld [smem:[#allocation3 + %s2191_s21]] }
 0x12c   : > { %vm1928_vm13 = vcmp.eq.s32.totalorder %v2543_v1, %v1927_v43  ;;  %vm1929_vm14 = vcmp.eq.s32.totalorder %v2546_v2, %v1927_v43  ;;  %vm1930_vm15 = vcmp.eq.s32.totalorder %v2549_v3, %v1927_v43  ;;  %v1934_v6 = vperm.slane %v1926_v33, 2  ;;  %v1995_v11 = vld [vmem:[%s1994_s13] ss:$2 sm:$0x7] }
 0x12d   : > { %v1910_v45 = vadd.f32 %v1909_v21, %v1908_v61  ;;  %v1938_v46 = vsel %vm1928_vm13, %v1932_v44, 0.0  ;;  %v1939_v49 = vsel %vm1929_vm14, %v1933_v31, 0.0  ;;  %v1951_v47 = vstv %s1950_s4 }
 0x12e   : > { %v1940_v50 = vsel %vm1930_vm15, %v1934_v6, 0.0  ;;  %v1941_v51 = vsel %vm76_vm1, %v1938_v46, 0.0  ;;  %v1942_v56 = vsel %vm76_vm1, %v1939_v49, 0.0  ;;  %vm1952_vm0 = vcmp.eq.s32.totalorder %v2543_v1, %v1951_v47  ;;  %v3777_v7 = vpop.xlane.xlu2 %1152 }
 0x12f   : > { %1911 = vadd.xlane.f32.xlu2 %v1910_v45  ;;  %v1943_v36 = vadd.f32 %v1942_v56, %v1941_v51  ;;  %v1944_v52 = vsel %vm76_vm1, %v1940_v50, 0.0  ;;  %vm1953_vm2 = vcmp.eq.s32.totalorder %v2546_v2, %v1951_v47  ;;  %vm1954_vm3 = vcmp.eq.s32.totalorder %v2549_v3, %v1951_v47 }
 0x130   : > { %v1955_v53 = vsel %vm1952_vm0, %v1932_v44, 0.0  ;;  %v1956_v62 = vsel %vm1953_vm2, %v1933_v31, 0.0  ;;  %v1957_v39 = vsel %vm1954_vm3, %v1934_v6, 0.0  ;;  %v1968_v57 = vstv %s1967_s9 }
 0x131   : > { %v1945_v58 = vadd.f32 %v1944_v52, %v1943_v36  ;;  %v1958_v40 = vsel %vm76_vm1, %v1955_v53, 0.0  ;;  %v1959_v5 = vsel %vm76_vm1, %v1956_v62, 0.0  ;;  %v1961_v34 = vsel %vm76_vm1, %v1957_v39, 0.0  ;;  %s2194_s30 = sshra.s32 %s3836_s24, 1 }
 0x132   : > { %v1960_v8 = vadd.f32 %v1959_v5, %v1958_v40  ;;  %vm1969_vm4 = vcmp.eq.s32.totalorder %v2543_v1, %v1968_v57  ;;  %vm1970_vm5 = vcmp.eq.s32.totalorder %v2546_v2, %v1968_v57  ;;  %vm1971_vm6 = vcmp.eq.s32.totalorder %v2549_v3, %v1968_v57  ;;  %s2411_s4 = smul.u32 6, %s2194_s30 }
 0x133   : > { %1946 = vadd.xlane.f32.xlu0 %v1945_v58  ;;  %v1972_v12 = vsel %vm1969_vm4, %v1932_v44, 0.0  ;;  %v1973_v27 = vsel %vm1970_vm5, %v1933_v31, 0.0  ;;  %v1974_v63 = vsel %vm1971_vm6, %v1934_v6, 0.0  ;;  %vm982_vm7 = vcmask 319800  }
 0x134   : > { %v1962_v15 = vadd.f32 %v1961_v34, %v1960_v8  ;;  %v1975_v48 = vsel %vm76_vm1, %v1972_v12, 0.0  ;;  %v1976_v16 = vsel %vm76_vm1, %v1973_v27, 0.0  ;;  %v1978_v55 = vsel %vm76_vm1, %v1974_v63, 0.0  ;;  %983 = vst.msk [vmem:[%s3151_s22] sm:$0x1] %vm982_vm7, %v3673_v54  ;;  %v3814_v0 = vpop.xlane.xlu0 %1187 }
 0x135   : > { %v1977_v19 = vadd.f32 %v1976_v16, %v1975_v48  ;;  %vm999_vm8 = vcmask 328000   ;;  %vm1016_vm9 = vcmask 336200   ;;  %v1996_v4 = vstv %s3753_s5  ;;  %v3816_v29 = vpop.xlane.xlu1 %1204  ;;  %v2064_v44 = vld [vmem:[%s2063_s23] ss:$2 sm:$0x7]  ;;  %s2197_s5 = sand.u32 1, %s3836_s24 }
 0x136   : > { %1963 = vadd.xlane.f32.xlu1 %v1962_v15  ;;  %1000 = vst.msk [vmem:[%s3151_s22] sm:$0x1] %vm999_vm8, %v3675_v35  ;;  %vm1997_vm10 = vcmp.eq.s32.totalorder %v2543_v1, %v1996_v4  ;;  %vm1998_vm11 = vcmp.eq.s32.totalorder %v2546_v2, %v1996_v4  ;;  %vm1999_vm12 = vcmp.eq.s32.totalorder %v2549_v3, %v1996_v4  ;;  %v2001_v9 = vperm.slane %v1995_v11, 0  ;;  %s3900_s9 = sadd.s32 %s2411_s4, %s2197_s5 }
 0x137   : > { %v1979_v17 = vadd.f32 %v1978_v55, %v1977_v19  ;;  %1017 = vst.msk [vmem:[%s3151_s22] sm:$0x1] %vm1016_vm9, %v3688_v60  ;;  %v2002_v54 = vperm.slane %v1995_v11, 1  ;;  %v2003_v10 = vperm.slane %v1995_v11, 2  ;;  %v2020_v22 = vstv %s2019_s14  ;;  %s2201_s10 = scalar_lea.vmem [#allocation5], %s3900_s9 }
 0x138   : > { %v2007_v35 = vsel %vm1997_vm10, %v2001_v9, 0.0  ;;  %vm2021_vm13 = vcmp.eq.s32.totalorder %v2543_v1, %v2020_v22  ;;  %vm2022_vm14 = vcmp.eq.s32.totalorder %v2546_v2, %v2020_v22  ;;  %vm2023_vm15 = vcmp.eq.s32.totalorder %v2549_v3, %v2020_v22 }
 0x139   : > { %1980 = vadd.xlane.f32.xlu2 %v1979_v17  ;;  %v2008_v26 = vsel %vm1998_vm11, %v2002_v54, 0.0  ;;  %v2009_v60 = vsel %vm1999_vm12, %v2003_v10, 0.0  ;;  %v2010_v28 = vsel %vm76_vm1, %v2007_v35, 0.0  ;;  %v2024_v18 = vsel %vm2021_vm13, %v2001_v9, 0.0  ;;  %v3824_v20 = vpop.xlane.xlu2 %1221 }
 0x13a   : > { %v2011_v14 = vsel %vm76_vm1, %v2008_v26, 0.0  ;;  %v2013_v32 = vsel %vm76_vm1, %v2009_v60, 0.0  ;;  %v2025_v33 = vsel %vm2022_vm14, %v2002_v54, 0.0  ;;  %v2026_v24 = vsel %vm2023_vm15, %v2003_v10, 0.0 }
 0x13b   : > { %v2012_v13 = vadd.f32 %v2011_v14, %v2010_v28  ;;  %v2027_v37 = vsel %vm76_vm1, %v2024_v18, 0.0  ;;  %v2028_v38 = vsel %vm76_vm1, %v2025_v33, 0.0  ;;  %v2030_v25 = vsel %vm76_vm1, %v2026_v24, 0.0 }
 0x13c   : > { %v2029_v21 = vadd.f32 %v2028_v38, %v2027_v37  ;;  %v2037_v61 = vstv %s2036_s19  ;;  %vm1051_vm0 = vcmask 344400   ;;  %vm1068_vm2 = vcmask 352600  }
 0x13d   : > { %v2014_v43 = vadd.f32 %v2013_v32, %v2012_v13  ;;  %vm2038_vm3 = vcmp.eq.s32.totalorder %v2543_v1, %v2037_v61  ;;  %vm2039_vm4 = vcmp.eq.s32.totalorder %v2546_v2, %v2037_v61  ;;  %vm2040_vm5 = vcmp.eq.s32.totalorder %v2549_v3, %v2037_v61  ;;  %1052 = vst.msk [vmem:[%s3151_s22] sm:$0x1] %vm1051_vm0, %v3719_v23  ;;  %v3862_v40 = vpop.xlane.xlu0 %1256 }
 0x13e   : > { %v2031_v31 = vadd.f32 %v2030_v25, %v2029_v21  ;;  %v2041_v6 = vsel %vm2038_vm3, %v2001_v9, 0.0  ;;  %v2042_v45 = vsel %vm2039_vm4, %v2002_v54, 0.0  ;;  %v2043_v46 = vsel %vm2040_vm5, %v2003_v10, 0.0  ;;  %1069 = vst.msk [vmem:[%s3151_s22] sm:$0x1] %vm1068_vm2, %v3721_v42 }
 0x13f   : > { %2015 = vadd.xlane.f32.xlu0 %v2014_v43  ;;  %v2044_v49 = vsel %vm76_vm1, %v2041_v6, 0.0  ;;  %v2045_v23 = vsel %vm76_vm1, %v2042_v45, 0.0  ;;  %v2047_v47 = vsel %vm76_vm1, %v2043_v46, 0.0  ;;  %vm1085_vm6 = vcmask 360800  }
 0x140   : > { %2032 = vadd.xlane.f32.xlu1 %v2031_v31  ;;  %v2046_v50 = vadd.f32 %v2045_v23, %v2044_v49  ;;  %1086 = vst.msk [vmem:[%s3151_s22] sm:$0x1] %vm1085_vm6, %v3729_v30  ;;  %v2065_v51 = vstv %s3804_s17  ;;  %v2070_v56 = vperm.slane %v2064_v44, 0  ;;  %v2071_v36 = vperm.slane %v2064_v44, 1  ;;  %v3864_v5 = vpop.xlane.xlu1 %1273  ;;  %s2265_s17 = sshll.u32 (%p45_p0), %s2513_s16, 4  ;;  %s2266_s17 = int_to_ptr.vmem [resolvable:$true] %s2265_s17 }
 0x141   : > { %vm2066_vm7 = vcmp.eq.s32.totalorder %v2543_v1, %v2065_v51  ;;  %vm2067_vm8 = vcmp.eq.s32.totalorder %v2546_v2, %v2065_v51  ;;  %vm2068_vm9 = vcmp.eq.s32.totalorder %v2549_v3, %v2065_v51  ;;  %v2072_v42 = vperm.slane %v2064_v44, 2  ;;  %v2133_v9 = vld [vmem:[%s2132_s6] ss:$2 sm:$0x7] }
 0x142   : > { %v2048_v52 = vadd.f32 %v2047_v47, %v2046_v50  ;;  %v2076_v53 = vsel %vm2066_vm7, %v2070_v56, 0.0  ;;  %v2077_v62 = vsel %vm2067_vm8, %v2071_v36, 0.0  ;;  %v2089_v39 = vstv %s2088_s26 }
 0x143   : > { %v2078_v30 = vsel %vm2068_vm9, %v2072_v42, 0.0  ;;  %v2079_v57 = vsel %vm76_vm1, %v2076_v53, 0.0  ;;  %v2080_v58 = vsel %vm76_vm1, %v2077_v62, 0.0  ;;  %vm2090_vm10 = vcmp.eq.s32.totalorder %v2543_v1, %v2089_v39  ;;  %v3870_v15 = vpop.xlane.xlu2 %1290 }
 0x144   : > { %2049 = vadd.xlane.f32.xlu2 %v2048_v52  ;;  %v2081_v34 = vadd.f32 %v2080_v58, %v2079_v57  ;;  %v2082_v8 = vsel %vm76_vm1, %v2078_v30, 0.0  ;;  %vm2091_vm11 = vcmp.eq.s32.totalorder %v2546_v2, %v2089_v39  ;;  %vm2092_vm12 = vcmp.eq.s32.totalorder %v2549_v3, %v2089_v39 }
 0x145   : > { %v2093_v11 = vsel %vm2090_vm10, %v2070_v56, 0.0  ;;  %v2094_v12 = vsel %vm2091_vm11, %v2071_v36, 0.0  ;;  %v2095_v27 = vsel %vm2092_vm12, %v2072_v42, 0.0  ;;  %v2106_v63 = vstv %s2105_s29 }
 0x146   : > { %v2083_v48 = vadd.f32 %v2082_v8, %v2081_v34  ;;  %v2096_v16 = vsel %vm76_vm1, %v2093_v11, 0.0  ;;  %v2097_v55 = vsel %vm76_vm1, %v2094_v12, 0.0  ;;  %v2099_v19 = vsel %vm76_vm1, %v2095_v27, 0.0 }
 0x147   : > { %v2098_v4 = vadd.f32 %v2097_v55, %v2096_v16  ;;  %vm2107_vm13 = vcmp.eq.s32.totalorder %v2543_v1, %v2106_v63  ;;  %vm2108_vm14 = vcmp.eq.s32.totalorder %v2546_v2, %v2106_v63  ;;  %vm2109_vm15 = vcmp.eq.s32.totalorder %v2549_v3, %v2106_v63 }
 0x148   : > { %2084 = vadd.xlane.f32.xlu0 %v2083_v48  ;;  %v2110_v17 = vsel %vm2107_vm13, %v2070_v56, 0.0  ;;  %v2111_v54 = vsel %vm2108_vm14, %v2071_v36, 0.0  ;;  %v2112_v10 = vsel %vm2109_vm15, %v2072_v42, 0.0  ;;  %vm1120_vm0 = vcmask 369000  }
 0x149   : > { %v2100_v22 = vadd.f32 %v2099_v19, %v2098_v4  ;;  %v2113_v35 = vsel %vm76_vm1, %v2110_v17, 0.0  ;;  %v2114_v26 = vsel %vm76_vm1, %v2111_v54, 0.0  ;;  %v2116_v60 = vsel %vm76_vm1, %v2112_v10, 0.0  ;;  %1121 = vst.msk [vmem:[%s3151_s22] sm:$0x1] %vm1120_vm0, %v3769_v41  ;;  %v3892_v32 = vpop.xlane.xlu0 %1325 }
 0x14a   : > { %v2115_v28 = vadd.f32 %v2114_v26, %v2113_v35  ;;  %vm1137_vm2 = vcmask 377200   ;;  %vm1154_vm3 = vcmask 385400   ;;  %v2134_v18 = vstv %s3850_s27  ;;  %v2202_v56 = vld [vmem:[%s2201_s10] ss:$2 sm:$0x7] }
 0x14b   : > { %2101 = vadd.xlane.f32.xlu1 %v2100_v22  ;;  %1138 = vst.msk [vmem:[%s3151_s22] sm:$0x1] %vm1137_vm2, %v3771_v59  ;;  %vm2135_vm4 = vcmp.eq.s32.totalorder %v2543_v1, %v2134_v18  ;;  %vm2136_vm5 = vcmp.eq.s32.totalorder %v2546_v2, %v2134_v18  ;;  %vm2137_vm6 = vcmp.eq.s32.totalorder %v2549_v3, %v2134_v18  ;;  %v2139_v14 = vperm.slane %v2133_v9, 0  ;;  %v3902_v59 = vpop.xlane.xlu1 %1342 }
 0x14c   : > { %v2117_v33 = vadd.f32 %v2116_v60, %v2115_v28  ;;  %1155 = vst.msk [vmem:[%s3151_s22] sm:$0x1] %vm1154_vm3, %v3777_v7  ;;  %v2140_v41 = vperm.slane %v2133_v9, 1  ;;  %v2141_v24 = vperm.slane %v2133_v9, 2  ;;  %v2158_v13 = vstv %s2157_s7 }
 0x14d   : > { %v2145_v37 = vsel %vm2135_vm4, %v2139_v14, 0.0  ;;  %vm2159_vm7 = vcmp.eq.s32.totalorder %v2543_v1, %v2158_v13  ;;  %vm2160_vm8 = vcmp.eq.s32.totalorder %v2546_v2, %v2158_v13  ;;  %vm2161_vm9 = vcmp.eq.s32.totalorder %v2549_v3, %v2158_v13 }
 0x14e   : > { %2118 = vadd.xlane.f32.xlu2 %v2117_v33  ;;  %v2146_v7 = vsel %vm2136_vm5, %v2140_v41, 0.0  ;;  %v2147_v38 = vsel %vm2137_vm6, %v2141_v24, 0.0  ;;  %v2148_v25 = vsel %vm76_vm1, %v2145_v37, 0.0  ;;  %v2162_v21 = vsel %vm2159_vm7, %v2139_v14, 0.0  ;;  %v3915_v6 = vpop.xlane.xlu2 %1359 }
 0x14f   : > { %v2149_v61 = vsel %vm76_vm1, %v2146_v7, 0.0  ;;  %v2151_v43 = vsel %vm76_vm1, %v2147_v38, 0.0  ;;  %v2163_v44 = vsel %vm2160_vm8, %v2140_v41, 0.0  ;;  %v2164_v31 = vsel %vm2161_vm9, %v2141_v24, 0.0 }
 0x150   : > { %v2150_v45 = vadd.f32 %v2149_v61, %v2148_v25  ;;  %v2165_v46 = vsel %vm76_vm1, %v2162_v21, 0.0  ;;  %v2166_v49 = vsel %vm76_vm1, %v2163_v44, 0.0  ;;  %v2168_v23 = vsel %vm76_vm1, %v2164_v31, 0.0 }
 0x151   : > { %v2167_v47 = vadd.f32 %v2166_v49, %v2165_v46  ;;  %v2175_v50 = vstv %s2174_s2  ;;  %vm1189_vm10 = vcmask 393600   ;;  %vm1206_vm11 = vcmask 401800  }
 0x152   : > { %v2152_v51 = vadd.f32 %v2151_v43, %v2150_v45  ;;  %vm2176_vm12 = vcmp.eq.s32.totalorder %v2543_v1, %v2175_v50  ;;  %vm2177_vm13 = vcmp.eq.s32.totalorder %v2546_v2, %v2175_v50  ;;  %vm2178_vm14 = vcmp.eq.s32.totalorder %v2549_v3, %v2175_v50  ;;  %1190 = vst.msk [vmem:[%s3151_s22] sm:$0x1] %vm1189_vm10, %v3814_v0  ;;  %v3932_v0 = vpop.xlane.xlu0 %1394 }
 0x153   : > { %v2169_v36 = vadd.f32 %v2168_v23, %v2167_v47  ;;  %v2179_v42 = vsel %vm2176_vm12, %v2139_v14, 0.0  ;;  %v2180_v52 = vsel %vm2177_vm13, %v2140_v41, 0.0  ;;  %v2181_v53 = vsel %vm2178_vm14, %v2141_v24, 0.0  ;;  %1207 = vst.msk [vmem:[%s3151_s22] sm:$0x1] %vm1206_vm11, %v3816_v29 }
 0x154   : > { %2153 = vadd.xlane.f32.xlu0 %v2152_v51  ;;  %v2182_v62 = vsel %vm76_vm1, %v2179_v42, 0.0  ;;  %v2183_v39 = vsel %vm76_vm1, %v2180_v52, 0.0  ;;  %v2185_v30 = vsel %vm76_vm1, %v2181_v53, 0.0  ;;  %vm1223_vm15 = vcmask 410000  }
 0x155   : > { %2170 = vadd.xlane.f32.xlu1 %v2169_v36  ;;  %v2184_v57 = vadd.f32 %v2183_v39, %v2182_v62  ;;  %1224 = vst.msk [vmem:[%s3151_s22] sm:$0x1] %vm1223_vm15, %v3824_v20  ;;  %v2203_v58 = vstv %s3898_s8  ;;  %v2208_v34 = vperm.slane %v2202_v56, 0  ;;  %v2209_v8 = vperm.slane %v2202_v56, 1  ;;  %v1412_v11 = vpop.xlane.xlu1 %1411 }
 0x156   : > { %vm2204_vm0 = vcmp.eq.s32.totalorder %v2543_v1, %v2203_v58  ;;  %vm2205_vm2 = vcmp.eq.s32.totalorder %v2546_v2, %v2203_v58  ;;  %vm2206_vm3 = vcmp.eq.s32.totalorder %v2549_v3, %v2203_v58  ;;  %v2210_v29 = vperm.slane %v2202_v56, 2 }
 0x157   : > { %v2186_v12 = vadd.f32 %v2185_v30, %v2184_v57  ;;  %v2214_v27 = vsel %vm2204_vm0, %v2208_v34, 0.0  ;;  %v2215_v63 = vsel %vm2205_vm2, %v2209_v8, 0.0  ;;  %v2227_v48 = vstv %s2226_s11 }
 0x158   : > { %v2216_v16 = vsel %vm2206_vm3, %v2210_v29, 0.0  ;;  %v2217_v55 = vsel %vm76_vm1, %v2214_v27, 0.0  ;;  %v2218_v20 = vsel %vm76_vm1, %v2215_v63, 0.0  ;;  %vm2228_vm4 = vcmp.eq.s32.totalorder %v2543_v1, %v2227_v48  ;;  %v1429_v9 = vpop.xlane.xlu2 %1428 }
 0x159   : > { %2187 = vadd.xlane.f32.xlu2 %v2186_v12  ;;  %v2219_v19 = vadd.f32 %v2218_v20, %v2217_v55  ;;  %v2220_v4 = vsel %vm76_vm1, %v2216_v16, 0.0  ;;  %vm2229_vm5 = vcmp.eq.s32.totalorder %v2546_v2, %v2227_v48  ;;  %vm2230_vm6 = vcmp.eq.s32.totalorder %v2549_v3, %v2227_v48 }
 0x15a   : > { %v2231_v17 = vsel %vm2228_vm4, %v2208_v34, 0.0  ;;  %v2232_v54 = vsel %vm2229_vm5, %v2209_v8, 0.0  ;;  %v2233_v10 = vsel %vm2230_vm6, %v2210_v29, 0.0  ;;  %v2244_v22 = vstv %s2243_s12 }
 0x15b   : > { %v2221_v35 = vadd.f32 %v2220_v4, %v2219_v19  ;;  %v2234_v26 = vsel %vm76_vm1, %v2231_v17, 0.0  ;;  %v2235_v60 = vsel %vm76_vm1, %v2232_v54, 0.0  ;;  %v2237_v28 = vsel %vm76_vm1, %v2233_v10, 0.0 }
 0x15c   : > { %v2236_v18 = vadd.f32 %v2235_v60, %v2234_v26  ;;  %vm2245_vm7 = vcmp.eq.s32.totalorder %v2543_v1, %v2244_v22  ;;  %vm2246_vm8 = vcmp.eq.s32.totalorder %v2546_v2, %v2244_v22  ;;  %vm2247_vm9 = vcmp.eq.s32.totalorder %v2549_v3, %v2244_v22 }
 0x15d   : > { %2222 = vadd.xlane.f32.xlu0 %v2221_v35  ;;  %v2248_v14 = vsel %vm2245_vm7, %v2208_v34, 0.0  ;;  %v2249_v33 = vsel %vm2246_vm8, %v2209_v8, 0.0  ;;  %v2250_v41 = vsel %vm2247_vm9, %v2210_v29, 0.0  ;;  %vm1258_vm10 = vcmask 418200  }
 0x15e   : > { %v2238_v24 = vadd.f32 %v2237_v28, %v2236_v18  ;;  %v2251_v13 = vsel %vm76_vm1, %v2248_v14, 0.0  ;;  %v2252_v37 = vsel %vm76_vm1, %v2249_v33, 0.0  ;;  %v2254_v7 = vsel %vm76_vm1, %v2250_v41, 0.0  ;;  %1259 = vst.msk [vmem:[%s3151_s22] sm:$0x1] %vm1258_vm10, %v3862_v40  ;;  %v1464_v38 = vpop.xlane.xlu0 %1463 }
 0x15f   : > { %v2253_v25 = vadd.f32 %v2252_v37, %v2251_v13  ;;  %vm1275_vm11 = vcmask 426400   ;;  %vm1292_vm12 = vcmask 434600   ;;  %vm1327_vm13 = vcmask 442800   ;;  %v1481_v21 = vpop.xlane.xlu1 %1480 }
 0x160   : > { %2239 = vadd.xlane.f32.xlu1 %v2238_v24  ;;  %1276 = vst.msk [vmem:[%s3151_s22] sm:$0x1] %vm1275_vm11, %v3864_v5  ;;  %vm1344_vm14 = vcmask 451000   ;;  %vm1361_vm1 = vcmask 459200   ;;  %vm1396_vm15 = vcmask 467400   ;;  %vm1413_vm0 = vcmask 475600  }
 0x161   : > { %v2255_v61 = vadd.f32 %v2254_v7, %v2253_v25  ;;  %1293 = vst.msk [vmem:[%s3151_s22] sm:$0x1] %vm1292_vm12, %v3870_v15  ;;  %vm1430_vm2 = vcmask 483800   ;;  %vm1465_vm3 = vcmask 492000   ;;  %vm1482_vm4 = vcmask 500200  }
 0x162   : > { %1328 = vst.msk [vmem:[%s3151_s22] sm:$0x1] %vm1327_vm13, %v3892_v32  ;;  %vm1499_vm5 = vcmask 508400   ;;  %vm1534_vm6 = vcmask 516600   ;;  %vm1551_vm7 = vcmask 524800   ;;  %vm1568_vm8 = vcmask 533000  }
 0x163   : > { %2256 = vadd.xlane.f32.xlu2 %v2255_v61  ;;  %1345 = vst.msk [vmem:[%s3151_s22] sm:$0x1] %vm1344_vm14, %v3902_v59  ;;  %v1498_v40 = vpop.xlane.xlu2 %1497  ;;  %vm1603_vm9 = vcmask 541200   ;;  %vm1620_vm10 = vcmask 549400   ;;  %vm1637_vm11 = vcmask 557600   ;;  %vm1672_vm12 = vcmask 565800  }
 0x164   : > { %1362 = vst.msk [vmem:[%s3151_s22] sm:$0x1] %vm1361_vm1, %v3915_v6  ;;  %vm1689_vm13 = vcmask 574000   ;;  %vm1706_vm14 = vcmask 582200   ;;  %vm1741_vm1 = vcmask 590400  }
 0x165   : > { %1397 = vst.msk [vmem:[%s3151_s22] sm:$0x1] %vm1396_vm15, %v3932_v0  ;;  %vm1758_vm15 = vcmask 598600  }
 0x166   : > { %1414 = vst.msk [vmem:[%s3151_s22] sm:$0x1] %vm1413_vm0, %v1412_v11  ;;  %vm1775_vm0 = vcmask 606800  }
 0x167   : > { %1431 = vst.msk [vmem:[%s3151_s22] sm:$0x1] %vm1430_vm2, %v1429_v9  ;;  %v1533_v5 = vpop.xlane.xlu0 %1532  ;;  %vm1810_vm2 = vcmask 615000  }
 0x168   : > { %1466 = vst.msk [vmem:[%s3151_s22] sm:$0x1] %vm1465_vm3, %v1464_v38  ;;  %vm1827_vm3 = vcmask 623200  }
 0x169   : > { %1483 = vst.msk [vmem:[%s3151_s22] sm:$0x1] %vm1482_vm4, %v1481_v21  ;;  %vm1844_vm4 = vcmask 631400  }
 0x16a   : > { %1500 = vst.msk [vmem:[%s3151_s22] sm:$0x1] %vm1499_vm5, %v1498_v40  ;;  %v1550_v15 = vpop.xlane.xlu1 %1549  ;;  %vm1879_vm5 = vcmask 639600  }
 0x16b   : > { %1535 = vst.msk [vmem:[%s3151_s22] sm:$0x1] %vm1534_vm6, %v1533_v5  ;;  %vm1896_vm6 = vcmask 647800  }
 0x16c   : > { %1552 = vst.msk [vmem:[%s3151_s22] sm:$0x1] %vm1551_vm7, %v1550_v15  ;;  %vm1913_vm7 = vcmask 656000  }
 0x16d   : > { %v1567_v32 = vpop.xlane.xlu2 %1566 }
 0x16e   : > { %1569 = vst.msk [vmem:[%s3151_s22] sm:$0x1] %vm1568_vm8, %v1567_v32  ;;  %vm1948_vm8 = vcmask 664200  }
 0x173   : > { %v1602_v59 = vpop.xlane.xlu0 %1601 }
 0x174   : > { %1604 = vst.msk [vmem:[%s3151_s22] sm:$0x1] %vm1603_vm9, %v1602_v59  ;;  %v1619_v43 = vpop.xlane.xlu1 %1618  ;;  %vm1965_vm9 = vcmask 672400  }
 0x175   : > { %1621 = vst.msk [vmem:[%s3151_s22] sm:$0x1] %vm1620_vm10, %v1619_v43  ;;  %vm1982_vm10 = vcmask 680600  }
 0x178   : > { %v1636_v44 = vpop.xlane.xlu2 %1635 }
 0x179   : > { %1638 = vst.msk [vmem:[%s3151_s22] sm:$0x1] %vm1637_vm11, %v1636_v44  ;;  %vm2017_vm11 = vcmask 688800  }
 0x17c   : > { %v1671_v31 = vpop.xlane.xlu0 %1670 }
 0x17d   : > { %1673 = vst.msk [vmem:[%s3151_s22] sm:$0x1] %vm1672_vm12, %v1671_v31  ;;  %vm2034_vm12 = vcmask 697000  }
 0x17f   : > { %v1688_v6 = vpop.xlane.xlu1 %1687 }
 0x180   : > { %1690 = vst.msk [vmem:[%s3151_s22] sm:$0x1] %vm1689_vm13, %v1688_v6  ;;  %vm2051_vm13 = vcmask 705200  }
 0x182   : > { %v1705_v45 = vpop.xlane.xlu2 %1704 }
 0x183   : > { %1707 = vst.msk [vmem:[%s3151_s22] sm:$0x1] %vm1706_vm14, %v1705_v45  ;;  %vm2086_vm14 = vcmask 713400  }
 0x188   : > { %v1740_v46 = vpop.xlane.xlu0 %1739 }
 0x189   : > { %1742 = vst.msk [vmem:[%s3151_s22] sm:$0x1] %vm1741_vm1, %v1740_v46  ;;  %v1757_v49 = vpop.xlane.xlu1 %1756  ;;  %vm2103_vm1 = vcmask 721600  }
 0x18a   : > { %1759 = vst.msk [vmem:[%s3151_s22] sm:$0x1] %vm1758_vm15, %v1757_v49  ;;  %vm2120_vm15 = vcmask 729800  }
 0x18d   : > { %v1774_v23 = vpop.xlane.xlu2 %1773 }
 0x18e   : > { %1776 = vst.msk [vmem:[%s3151_s22] sm:$0x1] %vm1775_vm0, %v1774_v23  ;;  %vm2155_vm0 = vcmask 738000  }
 0x191   : > { %v1809_v47 = vpop.xlane.xlu0 %1808 }
 0x192   : > { %1811 = vst.msk [vmem:[%s3151_s22] sm:$0x1] %vm1810_vm2, %v1809_v47  ;;  %vm2172_vm2 = vcmask 746200  }
 0x194   : > { %v1826_v50 = vpop.xlane.xlu1 %1825 }
 0x195   : > { %1828 = vst.msk [vmem:[%s3151_s22] sm:$0x1] %vm1827_vm3, %v1826_v50  ;;  %vm2189_vm3 = vcmask 754400  }
 0x197   : > { %v1843_v51 = vpop.xlane.xlu2 %1842 }
 0x198   : > { %1845 = vst.msk [vmem:[%s3151_s22] sm:$0x1] %vm1844_vm4, %v1843_v51  ;;  %vm2224_vm4 = vcmask 762600  }
 0x19d   : > { %v1878_v56 = vpop.xlane.xlu0 %1877 }
 0x19e   : > { %1880 = vst.msk [vmem:[%s3151_s22] sm:$0x1] %vm1879_vm5, %v1878_v56  ;;  %v1895_v36 = vpop.xlane.xlu1 %1894  ;;  %vm2241_vm5 = vcmask 770800  }
 0x19f   : > { %1897 = vst.msk [vmem:[%s3151_s22] sm:$0x1] %vm1896_vm6, %v1895_v36  ;;  %vm2258_vm6 = vcmask 779000  }
 0x1a2   : > { %v1912_v42 = vpop.xlane.xlu2 %1911 }
 0x1a3   : > { %1914 = vst.msk [vmem:[%s3151_s22] sm:$0x1] %vm1913_vm7, %v1912_v42 }
 0x1a6   : > { %v1947_v52 = vpop.xlane.xlu0 %1946 }
 0x1a7   : > { %1949 = vst.msk [vmem:[%s3151_s22] sm:$0x1] %vm1948_vm8, %v1947_v52 }
 0x1a9   : > { %v1964_v53 = vpop.xlane.xlu1 %1963 }
 0x1aa   : > { %1966 = vst.msk [vmem:[%s3151_s22] sm:$0x1] %vm1965_vm9, %v1964_v53 }
 0x1ac   : > { %v1981_v62 = vpop.xlane.xlu2 %1980 }
 0x1ad   : > { %1983 = vst.msk [vmem:[%s3151_s22] sm:$0x1] %vm1982_vm10, %v1981_v62 }
 0x1b2   : > { %v2016_v39 = vpop.xlane.xlu0 %2015 }
 0x1b3   : > { %2018 = vst.msk [vmem:[%s3151_s22] sm:$0x1] %vm2017_vm11, %v2016_v39  ;;  %v2033_v30 = vpop.xlane.xlu1 %2032 }
 0x1b4   : > { %2035 = vst.msk [vmem:[%s3151_s22] sm:$0x1] %vm2034_vm12, %v2033_v30 }
 0x1b7   : > { %v2050_v0 = vpop.xlane.xlu2 %2049 }
 0x1b8   : > { %2052 = vst.msk [vmem:[%s3151_s22] sm:$0x1] %vm2051_vm13, %v2050_v0 }
 0x1bb   : > { %v2085_v57 = vpop.xlane.xlu0 %2084 }
 0x1bc   : > { %2087 = vst.msk [vmem:[%s3151_s22] sm:$0x1] %vm2086_vm14, %v2085_v57 }
 0x1be   : > { %v2102_v58 = vpop.xlane.xlu1 %2101 }
 0x1bf   : > { %2104 = vst.msk [vmem:[%s3151_s22] sm:$0x1] %vm2103_vm1, %v2102_v58 }
 0x1c1   : > { %v2119_v34 = vpop.xlane.xlu2 %2118 }
 0x1c2   : > { %2121 = vst.msk [vmem:[%s3151_s22] sm:$0x1] %vm2120_vm15, %v2119_v34 }
 0x1c7   : > { %v2154_v8 = vpop.xlane.xlu0 %2153 }
 0x1c8   : > { %2156 = vst.msk [vmem:[%s3151_s22] sm:$0x1] %vm2155_vm0, %v2154_v8  ;;  %v2171_v29 = vpop.xlane.xlu1 %2170 }
 0x1c9   : > { %2173 = vst.msk [vmem:[%s3151_s22] sm:$0x1] %vm2172_vm2, %v2171_v29 }
 0x1cc   : > { %v2188_v11 = vpop.xlane.xlu2 %2187 }
 0x1cd   : > { %2190 = vst.msk [vmem:[%s3151_s22] sm:$0x1] %vm2189_vm3, %v2188_v11 }
 0x1d0   : > { %v2223_v12 = vpop.xlane.xlu0 %2222 }
 0x1d1   : > { %2225 = vst.msk [vmem:[%s3151_s22] sm:$0x1] %vm2224_vm4, %v2223_v12 }
 0x1d3   : > { %v2240_v27 = vpop.xlane.xlu1 %2239  ;;  %47 = sbr.rel (!%p45_p0) target bundleno = 17 (0x11), region = 68 }
 0x1d4   : > { %2242 = vst.msk [vmem:[%s3151_s22] sm:$0x1] %vm2241_vm5, %v2240_v27 }
 0x1d6   : > { %v2257_v63 = vpop.xlane.xlu2 %2256 }
 0x1d7   : > { %2259 = vst.msk [vmem:[%s3151_s22] sm:$0x1] %vm2258_vm6, %v2257_v63 }
 0x1d8   :  { %2270 = dma.vmem_to_hbm [thread:$0]  %s2266_s17, 128, %s2268_s15, [#allocation7]  }
 0x1d9   :  { %2504 = dma.done.wait [#allocation7], 128  }
 0x1da   :  { %2505 = vsyncadd [#allocation7], 4294967168 }
 0x1db   :  { %2275 = vsyncpa [#allocation6], 1 }
 0x1dc   :  { %2276 = vsyncpa [#allocation7], 1 }

</bundles_post_ra>
